<compile_context>
chip_gen: v5e
topology: v5e:2x2
jax: 0.10.0
libtpu: 0.0.40
codegen_flags: <defaults>
</compile_context>

<pallas_src>
import jax
import jax.numpy as jnp
from jax import lax
from jax.experimental import pallas as pl
from jax.experimental.pallas import tpu as pltpu


# Row layout of the packed per-channel parameter array (16 rows keeps the
# sublane dim a multiple of 8; rows 11-15 hold host-precomputed (1 - m)).
LN1_W, LN1_B, LN2_W, LN2_B = 0, 1, 2, 3
TM_K, TM_V, TM_R = 4, 5, 6
T_DECAY, T_FIRST = 7, 8
CM_K, CM_R = 9, 10
TM_K1, TM_V1, TM_R1 = 11, 12, 13
CM_K1, CM_R1 = 14, 15
N_PARAM_ROWS = 16

WKV_CHUNK = 8        # recurrence rows per fori_loop step (dense tile stores)
FFN_CHUNK = 512      # channel-mixing tile over the 4C dim


# ----------------------------------------------------------------------------
# Pallas kernel: the whole block stack (grid axis = layer index)
# ----------------------------------------------------------------------------
def rwkv_stack_kernel(
    x_ref,                                   # (T, C) f32  (read at layer 0)
    prm_ref,                                 # (16, C) f32 packed per-channel params
    wk_ref, wv_ref, wr_ref, wo_ref,          # (C, C) bf16, pre-transposed (in, out)
    ck_ref,                                  # (C, 4C) bf16
    cr_ref,                                  # (C, C)  bf16
    cv_ref,                                  # (4C, C) bf16
    o_ref,                                   # (T, C) f32  resident activation carry / output
    k_scr,                                   # VMEM (T//8, 8, C//128, 128) f32
    v_scr,                                   # VMEM (T//8, 8, C//128, 128) f32
):
    layer = pl.program_id(0)

    @pl.when(layer == 0)
    def _():
        o_ref[...] = x_ref[...]

    x = o_ref[...]                           # (T, C) f32 activation carry
    T, C = x.shape
    CSUB = C // 128
    NCH = T // WKV_CHUNK
    prm = prm_ref[...]                       # (16, C) f32

    def row(i):
        return prm[i:i + 1]                  # (1, C)

    def layer_norm(v, w, b):
        mu = jnp.mean(v, axis=-1, keepdims=True)
        var = jnp.mean((v - mu) ** 2, axis=-1, keepdims=True)
        return (v - mu) * lax.rsqrt(var + 1e-5) * w + b

    # (T, 1) mask; jnp.where broadcasts along lanes (no (T, C) mask material).
    col0 = lax.broadcasted_iota(jnp.int32, (T, 1), 0) == 0

    def token_shift(v):
        # xprev[t] = v[t-1], xprev[0] = 0   (nn.ZeroPad2d((0,0,1,-1)) in RWKV)
        return jnp.where(col0, 0.0, pltpu.roll(v, shift=1, axis=0))

    def matmul(a, w):
        # bf16 MXU inputs, f32 accumulation.
        return jnp.dot(a.astype(jnp.bfloat16), w,
                       preferred_element_type=jnp.float32)

    # ------------------------- time mixing (attention) ----------------------
    xx = layer_norm(x, row(LN1_W), row(LN1_B))
    xp = token_shift(xx)
    xk = xx * row(TM_K) + xp * row(TM_K1)
    xv = xx * row(TM_V) + xp * row(TM_V1)
    xr = xx * row(TM_R) + xp * row(TM_R1)

    k = matmul(xk, wk_ref[...])                        # (T, C) f32
    v = matmul(xv, wv_ref[...])                        # (T, C) f32
    r = jax.nn.sigmoid(matmul(xr, wr_ref[...]))        # (T, C) f32

    # One-time relayout: per-step operands become sublane-dense (CSUB, 128)
    # tiles, grouped into chunks of WKV_CHUNK rows for dense loads/stores.
    k_scr[...] = k.reshape(NCH, WKV_CHUNK, CSUB, 128)
    v_scr[...] = v.reshape(NCH, WKV_CHUNK, CSUB, 128)

    u = row(T_FIRST).reshape(CSUB, 128)
    w = (-jnp.exp(row(T_DECAY))).reshape(CSUB, 128)

    # Numerically-stable WKV recurrence, 8 rows per step, dense tiles.
    def wkv_chunk(c, carry):
        aa, bb, pp = carry
        k_blk = k_scr[c]                               # (8, CSUB, 128) dense load
        v_blk = v_scr[c]
        rows = []
        for i in range(WKV_CHUNK):                     # fully unrolled
            kt = k_blk[i]                              # (CSUB, 128)
            vt = v_blk[i]
            ww = u + kt
            qq = jnp.maximum(pp, ww)
            e1 = jnp.exp(pp - qq)
            e2 = jnp.exp(ww - qq)
            num = e1 * aa + e2 * vt
            den = e1 * bb + e2
            inv = pl.reciprocal(den, approx=True)      # EUP slot
            inv = inv * (2.0 - den * inv)              # one Newton step -> ~exact
            rows.append(num * inv)
            ww = pp + w
            qq = jnp.maximum(ww, kt)
            e1 = jnp.exp(ww - qq)
            e2 = jnp.exp(kt - qq)
            aa = e1 * aa + e2 * vt
            bb = e1 * bb + e2
            pp = qq
        # one dense store of 8 rows; k_scr doubles as WKV storage (this
        # chunk's kt/vt were already loaded above, so overwriting is safe).
        k_scr[c] = jnp.stack(rows, axis=0)
        return (aa, bb, pp)

    lax.fori_loop(
        0, NCH, wkv_chunk,
        (jnp.zeros((CSUB, 128), jnp.float32),
         jnp.zeros((CSUB, 128), jnp.float32),
         jnp.full((CSUB, 128), -1e38, jnp.float32)))

    wkv = k_scr[...].reshape(T, C)
    x = x + matmul(r * wkv, wo_ref[...])

    # ------------------------- channel mixing (FFN) -------------------------
    xx = layer_norm(x, row(LN2_W), row(LN2_B))
    xp = token_shift(xx)
    xk = xx * row(CM_K) + xp * row(CM_K1)
    xr = xx * row(CM_R) + xp * row(CM_R1)

    rr = jax.nn.sigmoid(matmul(xr, cr_ref[...]))

    ffn = ck_ref.shape[1]
    chunk = min(FFN_CHUNK, ffn)
    assert ffn % chunk == 0
    acc = jnp.zeros((T, C), jnp.float32)
    for j in range(ffn // chunk):                      # static loop over 4C tiles
        cs = slice(j * chunk, (j + 1) * chunk)
        kkj = jnp.square(jnp.maximum(matmul(xk, ck_ref[:, cs]), 0.0))
        acc = acc + matmul(kkj, cv_ref[cs, :])
    x = x + rr * acc

    o_ref[...] = x                                     # activation carry / final output


# ----------------------------------------------------------------------------
# Wrapper: single fused pallas_call over all layers
# ----------------------------------------------------------------------------
def _layer_spec(arr):
    n_rest = arr.ndim - 1
    return pl.BlockSpec(
        (None,) + arr.shape[1:],                       # squeeze the layer dim
        lambda l, _n=n_rest: (l,) + (0,) * _n,
    )


def _vmem_limit_bytes():
    cap = 64 * 1024 * 1024                             # conservative fallback (v7x)
    try:
        cap = int(pltpu.get_tpu_info().vmem_capacity_bytes)
    except Exception:
        pass
    # leave headroom for Mosaic-internal scratch; 110 MiB on v5e/v6e, ~56 MiB on v7x
    return min(cap - 8 * 1024 * 1024, 110 * 1024 * 1024)


def rwkv_forward(x, stacked):
    T, C = x.shape
    assert T % WKV_CHUNK == 0, "T must be a multiple of 8"
    assert C % 128 == 0, "C must be a multiple of 128"
    L = stacked["params"].shape[0]

    weight_names = ("params", "Wk_T", "Wv_T", "Wr_T", "Wo_T",
                    "Ck_T", "Cr_T", "Cv_T")
    weights = [stacked[n] for n in weight_names]

    in_specs = [pl.BlockSpec((T, C), lambda l: (0, 0))] + [
        _layer_spec(w) for w in weights
    ]
    out_spec = pl.BlockSpec((T, C), lambda l: (0, 0))  # resident across layers

    return pl.pallas_call(
        rwkv_stack_kernel,
        out_shape=jax.ShapeDtypeStruct((T, C), jnp.float32),
        grid_spec=pltpu.PrefetchScalarGridSpec(
            num_scalar_prefetch=0,
            grid=(L,),
            in_specs=in_specs,
            out_specs=out_spec,
            scratch_shapes=[
                pltpu.VMEM((T // WKV_CHUNK, WKV_CHUNK, C // 128, 128), jnp.float32)
                for _ in range(2)
            ],
        ),
        compiler_params=pltpu.CompilerParams(
            dimension_semantics=("arbitrary",),        # layer axis is sequential
            vmem_limit_bytes=_vmem_limit_bytes(),
        ),
    )(x, *weights)


# ----------------------------------------------------------------------------
# Deterministic synthetic parameters (mirrors RWKV block __init__ shapes)
# ----------------------------------------------------------------------------
def init_block_params(key, C, ffn):
    ks = jax.random.split(key, 7)
    nrm = lambda k, shape: 0.05 * jax.random.normal(k, shape, dtype=jnp.float32)
    lin = lambda lo, hi: jnp.linspace(lo, hi, C, dtype=jnp.float32)

    mk_t, mv_t, mr_t = lin(0.1, 0.9), lin(0.2, 0.8), lin(0.3, 0.7)
    cm_k, cm_r = lin(0.15, 0.85), lin(0.25, 0.75)

    prm = jnp.zeros((N_PARAM_ROWS, C), jnp.float32)
    prm = prm.at[LN1_W].set(1.0).at[LN2_W].set(1.0)
    prm = prm.at[TM_K].set(mk_t).at[TM_V].set(mv_t).at[TM_R].set(mr_t)
    prm = prm.at[TM_K1].set(1.0 - mk_t).at[TM_V1].set(1.0 - mv_t).at[TM_R1].set(1.0 - mr_t)
    prm = prm.at[T_DECAY].set(lin(-5.0, -1.0))
    prm = prm.at[T_FIRST].set(0.5)
    prm = prm.at[CM_K].set(cm_k).at[CM_R].set(cm_r)
    prm = prm.at[CM_K1].set(1.0 - cm_k).at[CM_R1].set(1.0 - cm_r)

    # PyTorch nn.Linear weights are (out, in); transpose once here (glue) so
    # the kernel computes x @ W on the MXU.  bf16 = MXU-native input dtype.
    Wk, Wv, Wr, Wo = (nrm(ks[i], (C, C)) for i in range(4))
    Ck = nrm(ks[4], (ffn, C))
    Cr = nrm(ks[5], (C, C))
    Cv = nrm(ks[6], (C, ffn))
    bf = jnp.bfloat16
    return dict(
        params=prm,
        Wk_T=Wk.T.astype(bf), Wv_T=Wv.T.astype(bf),
        Wr_T=Wr.T.astype(bf), Wo_T=Wo.T.astype(bf),
        Ck_T=Ck.T.astype(bf), Cr_T=Cr.T.astype(bf), Cv_T=Cv.T.astype(bf),
    )


def stack_blocks(blocks):
    return {k: jnp.stack([b[k] for b in blocks], axis=0) for k in blocks[0]}


# ----------------------------------------------------------------------------
# Pure-JAX reference (same math / same bf16 matmul inputs) for correctness
# ----------------------------------------------------------------------------
def rwkv_block_ref(x, p):
    T, C = x.shape
    prm = p["params"]
    row = lambda i: prm[i:i + 1]
    mm = lambda a, w: jnp.dot(a.astype(jnp.bfloat16), w,
                              preferred_element_type=jnp.float32)

    def layer_norm(v, w, b):
        mu = jnp.mean(v, -1, keepdims=True)
        var = jnp.mean((v - mu) ** 2, -1, keepdims=True)
        return (v - mu) * lax.rsqrt(var + 1e-5) * w + b

    shift = lambda v: jnp.concatenate([jnp.zeros((1, C), v.dtype), v[:-1]], 0)

    # time mixing
    xx = layer_norm(x, row(LN1_W), row(LN1_B))
    xp = shift(xx)
    xk = xx * row(TM_K) + xp * (1 - row(TM_K))
    xv = xx * row(TM_V) + xp * (1 - row(TM_V))
    xr = xx * row(TM_R) + xp * (1 - row(TM_R))
    k, v = mm(xk, p["Wk_T"]), mm(xv, p["Wv_T"])
    r = jax.nn.sigmoid(mm(xr, p["Wr_T"]))
    u, w = row(T_FIRST), -jnp.exp(row(T_DECAY))
    aa = jnp.zeros((1, C)); bb = jnp.zeros((1, C)); pp = jnp.full((1, C), -1e38)
    rows = []
    for t in range(T):
        kt, vt = k[t:t + 1], v[t:t + 1]
        ww = u + kt; qq = jnp.maximum(pp, ww)
        e1, e2 = jnp.exp(pp - qq), jnp.exp(ww - qq)
        rows.append((e1 * aa + e2 * vt) / (e1 * bb + e2))
        ww = pp + w; qq = jnp.maximum(ww, kt)
        e1, e2 = jnp.exp(ww - qq), jnp.exp(kt - qq)
        aa, bb, pp = e1 * aa + e2 * vt, e1 * bb + e2, qq
    wkv = jnp.concatenate(rows, 0)
    x = x + mm(r * wkv, p["Wo_T"])

    # channel mixing
    xx = layer_norm(x, row(LN2_W), row(LN2_B))
    xp = shift(xx)
    xk = xx * row(CM_K) + xp * (1 - row(CM_K))
    xr = xx * row(CM_R) + xp * (1 - row(CM_R))
    kk = jnp.square(jnp.maximum(mm(xk, p["Ck_T"]), 0.0))
    rr = jax.nn.sigmoid(mm(xr, p["Cr_T"]))
    return x + rr * mm(kk, p["Cv_T"])


if __name__ == "__main__":
    T, C = 32, 128        # small but lane/MXU aligned (C % 128 == 0, T % 8 == 0)
    FFN = 4 * C
    N_BLOCKS = 2

    key = jax.random.PRNGKey(0)
    kx, *kb = jax.random.split(key, 1 + N_BLOCKS)
    x = jax.random.normal(kx, (T, C), dtype=jnp.float32)
    blocks = [init_block_params(kb[i], C, FFN) for i in range(N_BLOCKS)]
    stacked = stack_blocks(blocks)

    out = jax.block_until_ready(rwkv_forward(x, stacked))

    # cross-check against pure-JAX reference of the same math
    ref = x
    for p in blocks:
        ref = rwkv_block_ref(ref, p)
    assert out.shape == (T, C)
    assert jnp.allclose(out, ref, rtol=2e-2, atol=2e-2), (
        "mismatch vs reference: max |diff| = %f"
        % float(jnp.max(jnp.abs(out - ref))))

    # TODO(synk): the surrounding PyTorch model also has embedding / head
    # layers outside `RWKV.blocks`; only the block stack (the given module) is
    # implemented here.
    print("KERNEL_OK")
</pallas_src>

<mosaic_0001>
module attributes {stable_mosaic.version = 11 : i64} {
  func.func @rwkv_stack_kernel(%arg0: i32, %arg1: memref<32x128xf32, #tpu.memory_space<vmem>>, %arg2: memref<1x16x128xf32, #tpu.memory_space<vmem>>, %arg3: memref<1x128x128xbf16, #tpu.memory_space<vmem>>, %arg4: memref<1x128x128xbf16, #tpu.memory_space<vmem>>, %arg5: memref<1x128x128xbf16, #tpu.memory_space<vmem>>, %arg6: memref<1x128x128xbf16, #tpu.memory_space<vmem>>, %arg7: memref<1x128x512xbf16, #tpu.memory_space<vmem>>, %arg8: memref<1x128x128xbf16, #tpu.memory_space<vmem>>, %arg9: memref<1x512x128xbf16, #tpu.memory_space<vmem>>, %arg10: memref<32x128xf32, #tpu.memory_space<vmem>>, %arg11: memref<4x8x1x128xf32, #tpu.memory_space<vmem>>, %arg12: memref<4x8x1x128xf32, #tpu.memory_space<vmem>>) attributes {dimension_semantics = [#tpu.dimension_semantics<arbitrary>], iteration_bounds = array<i64: 2>, scalar_prefetch = 0 : i64, scratch_operands = 2 : i64, tpu.core_type = #tpu.core_type<tc>, window_params = [{pipeline_mode = #tpu.pipeline_mode<synchronous>, transform_indices = @transform_0, window_bounds = array<i64: 32, 128>}, {transform_indices = @transform_1, window_bounds = array<i64: 1, 16, 128>}, {transform_indices = @transform_2, window_bounds = array<i64: 1, 128, 128>}, {transform_indices = @transform_3, window_bounds = array<i64: 1, 128, 128>}, {transform_indices = @transform_4, window_bounds = array<i64: 1, 128, 128>}, {transform_indices = @transform_5, window_bounds = array<i64: 1, 128, 128>}, {transform_indices = @transform_6, window_bounds = array<i64: 1, 128, 512>}, {transform_indices = @transform_7, window_bounds = array<i64: 1, 128, 128>}, {transform_indices = @transform_8, window_bounds = array<i64: 1, 512, 128>}, {pipeline_mode = #tpu.pipeline_mode<synchronous>, transform_indices = @transform_9, window_bounds = array<i64: 32, 128>}]} {
    %c0_i32 = arith.constant 0 : i32
    %0 = arith.cmpi eq, %arg0, %c0_i32 : i32
    %1 = arith.extui %0 : i1 to i32
    %c0_i32_0 = arith.constant 0 : i32
    %2 = arith.cmpi ne, %1, %c0_i32_0 : i32
    scf.if %2 {
      %c0_71 = arith.constant 0 : index
      %c0_72 = arith.constant 0 : index
      %166 = vector.load %arg1[%c0_71, %c0_72] : memref<32x128xf32, #tpu.memory_space<vmem>>, vector<32x128xf32>
      %c0_73 = arith.constant 0 : index
      %c0_74 = arith.constant 0 : index
      %167 = vector.load %arg10[%c0_73, %c0_74] : memref<32x128xf32, #tpu.memory_space<vmem>>, vector<32x128xf32>
      tpu.vector_store %arg10[%c0_73, %c0_74], %166 {strides = array<i32>} : memref<32x128xf32, #tpu.memory_space<vmem>>, vector<32x128xf32>,
    } else {
    }
    %c0 = arith.constant 0 : index
    %c0_1 = arith.constant 0 : index
    %3 = vector.load %arg10[%c0, %c0_1] : memref<32x128xf32, #tpu.memory_space<vmem>>, vector<32x128xf32>
    %c0_2 = arith.constant 0 : index
    %c0_3 = arith.constant 0 : index
    %c0_4 = arith.constant 0 : index
    %4 = vector.load %arg2[%c0_2, %c0_3, %c0_4] : memref<1x16x128xf32, #tpu.memory_space<vmem>>, vector<1x16x128xf32>
    %5 = vector.shape_cast %4 : vector<1x16x128xf32> to vector<16x128xf32>
    %6 = tpu.iota {dimensions = array<i32: 0>} : vector<32x1xi32>
    %c0_i32_5 = arith.constant 0 : i32
    %7 = vector.broadcast %c0_i32_5 : i32 to vector<32x1xi32>
    %8 = arith.cmpi eq, %6, %7 : vector<32x1xi32>
    %9 = vector.extract_strided_slice %5 {offsets = [0, 0], sizes = [1, 128], strides = [1, 1]} : vector<16x128xf32> to vector<1x128xf32>
    %10 = vector.extract_strided_slice %5 {offsets = [1, 0], sizes = [1, 128], strides = [1, 1]} : vector<16x128xf32> to vector<1x128xf32>
    %cst = arith.constant dense<0.000000e+00> : vector<32xf32>
    %11 = vector.multi_reduction <add>, %3, %cst [1] : vector<32x128xf32> to vector<32xf32>
    %12 = vector.shape_cast %11 : vector<32xf32> to vector<32x1xf32>
    %cst_6 = arith.constant 1.280000e+02 : f32
    %13 = vector.broadcast %cst_6 : f32 to vector<32x1xf32>
    %14 = arith.divf %12, %13 : vector<32x1xf32>
    %15 = vector.broadcast %14 : vector<32x1xf32> to vector<32x128xf32>
    %16 = arith.subf %3, %15 : vector<32x128xf32>
    %17 = arith.mulf %16, %16 : vector<32x128xf32>
    %cst_7 = arith.constant dense<0.000000e+00> : vector<32xf32>
    %18 = vector.multi_reduction <add>, %17, %cst_7 [1] : vector<32x128xf32> to vector<32xf32>
    %19 = vector.shape_cast %18 : vector<32xf32> to vector<32x1xf32>
    %cst_8 = arith.constant 1.280000e+02 : f32
    %20 = vector.broadcast %cst_8 : f32 to vector<32x1xf32>
    %21 = arith.divf %19, %20 : vector<32x1xf32>
    %22 = vector.broadcast %14 : vector<32x1xf32> to vector<32x128xf32>
    %23 = arith.subf %3, %22 : vector<32x128xf32>
    %cst_9 = arith.constant 9.99999974E-6 : f32
    %24 = vector.broadcast %cst_9 : f32 to vector<32x1xf32>
    %25 = arith.addf %21, %24 : vector<32x1xf32>
    %26 = math.rsqrt %25 : vector<32x1xf32>
    %27 = vector.broadcast %26 : vector<32x1xf32> to vector<32x128xf32>
    %28 = arith.mulf %23, %27 : vector<32x128xf32>
    %29 = vector.broadcast %9 : vector<1x128xf32> to vector<32x128xf32>
    %30 = arith.mulf %28, %29 : vector<32x128xf32>
    %31 = vector.broadcast %10 : vector<1x128xf32> to vector<32x128xf32>
    %32 = arith.addf %30, %31 : vector<32x128xf32>
    %c1_i32 = arith.constant 1 : i32
    %33 = tpu.dynamic_rotate %32 by %c1_i32 dim 0 : vector<32x128xf32>, i32 -> vector<32x128xf32>
    %cst_10 = arith.constant 0.000000e+00 : f32
    %34 = vector.shape_cast %8 : vector<32x1xi1> to vector<32x1xi1>
    %35 = vector.broadcast %34 : vector<32x1xi1> to vector<32x128xi1>
    %36 = vector.broadcast %cst_10 : f32 to vector<32x128xf32>
    %37 = arith.select %35, %36, %33 : vector<32x128xi1>, vector<32x128xf32>
    %38 = vector.extract_strided_slice %5 {offsets = [4, 0], sizes = [1, 128], strides = [1, 1]} : vector<16x128xf32> to vector<1x128xf32>
    %39 = vector.broadcast %38 : vector<1x128xf32> to vector<32x128xf32>
    %40 = arith.mulf %32, %39 : vector<32x128xf32>
    %41 = vector.extract_strided_slice %5 {offsets = [11, 0], sizes = [1, 128], strides = [1, 1]} : vector<16x128xf32> to vector<1x128xf32>
    %42 = vector.broadcast %41 : vector<1x128xf32> to vector<32x128xf32>
    %43 = arith.mulf %37, %42 : vector<32x128xf32>
    %44 = arith.addf %40, %43 : vector<32x128xf32>
    %45 = vector.extract_strided_slice %5 {offsets = [5, 0], sizes = [1, 128], strides = [1, 1]} : vector<16x128xf32> to vector<1x128xf32>
    %46 = vector.broadcast %45 : vector<1x128xf32> to vector<32x128xf32>
    %47 = arith.mulf %32, %46 : vector<32x128xf32>
    %48 = vector.extract_strided_slice %5 {offsets = [12, 0], sizes = [1, 128], strides = [1, 1]} : vector<16x128xf32> to vector<1x128xf32>
    %49 = vector.broadcast %48 : vector<1x128xf32> to vector<32x128xf32>
    %50 = arith.mulf %37, %49 : vector<32x128xf32>
    %51 = arith.addf %47, %50 : vector<32x128xf32>
    %52 = vector.extract_strided_slice %5 {offsets = [6, 0], sizes = [1, 128], strides = [1, 1]} : vector<16x128xf32> to vector<1x128xf32>
    %53 = vector.broadcast %52 : vector<1x128xf32> to vector<32x128xf32>
    %54 = arith.mulf %32, %53 : vector<32x128xf32>
    %55 = vector.extract_strided_slice %5 {offsets = [13, 0], sizes = [1, 128], strides = [1, 1]} : vector<16x128xf32> to vector<1x128xf32>
    %56 = vector.broadcast %55 : vector<1x128xf32> to vector<32x128xf32>
    %57 = arith.mulf %37, %56 : vector<32x128xf32>
    %58 = arith.addf %54, %57 : vector<32x128xf32>
    %c0_11 = arith.constant 0 : index
    %c0_12 = arith.constant 0 : index
    %c0_13 = arith.constant 0 : index
    %59 = vector.load %arg3[%c0_11, %c0_12, %c0_13] : memref<1x128x128xbf16, #tpu.memory_space<vmem>>, vector<1x128x128xbf16>
    %60 = vector.shape_cast %59 : vector<1x128x128xbf16> to vector<128x128xbf16>
    %61 = arith.truncf %44 : vector<32x128xf32> to vector<32x128xbf16>
    %cst_14 = arith.constant dense<0.000000e+00> : vector<32x128xf32>
    %62 = tpu.matmul %61, %60, %cst_14 {dimension_numbers = #tpu.dot_dimension_numbers<[1], [0], [0], [1], [0, 0, 1, 1], [], []>} : vector<32x128xbf16>, vector<128x128xbf16>, vector<32x128xf32> -> vector<32x128xf32>
    %c0_15 = arith.constant 0 : index
    %c0_16 = arith.constant 0 : index
    %c0_17 = arith.constant 0 : index
    %63 = vector.load %arg4[%c0_15, %c0_16, %c0_17] : memref<1x128x128xbf16, #tpu.memory_space<vmem>>, vector<1x128x128xbf16>
    %64 = vector.shape_cast %63 : vector<1x128x128xbf16> to vector<128x128xbf16>
    %65 = arith.truncf %51 : vector<32x128xf32> to vector<32x128xbf16>
    %cst_18 = arith.constant dense<0.000000e+00> : vector<32x128xf32>
    %66 = tpu.matmul %65, %64, %cst_18 {dimension_numbers = #tpu.dot_dimension_numbers<[1], [0], [0], [1], [0, 0, 1, 1], [], []>} : vector<32x128xbf16>, vector<128x128xbf16>, vector<32x128xf32> -> vector<32x128xf32>
    %c0_19 = arith.constant 0 : index
    %c0_20 = arith.constant 0 : index
    %c0_21 = arith.constant 0 : index
    %67 = vector.load %arg5[%c0_19, %c0_20, %c0_21] : memref<1x128x128xbf16, #tpu.memory_space<vmem>>, vector<1x128x128xbf16>
    %68 = vector.shape_cast %67 : vector<1x128x128xbf16> to vector<128x128xbf16>
    %69 = arith.truncf %58 : vector<32x128xf32> to vector<32x128xbf16>
    %cst_22 = arith.constant dense<0.000000e+00> : vector<32x128xf32>
    %70 = tpu.matmul %69, %68, %cst_22 {dimension_numbers = #tpu.dot_dimension_numbers<[1], [0], [0], [1], [0, 0, 1, 1], [], []>} : vector<32x128xbf16>, vector<128x128xbf16>, vector<32x128xf32> -> vector<32x128xf32>
    %71 = arith.negf %70 : vector<32x128xf32>
    %72 = math.exp %71 : vector<32x128xf32>
    %cst_23 = arith.constant 1.000000e+00 : f32
    %73 = vector.broadcast %cst_23 : f32 to vector<32x128xf32>
    %74 = arith.addf %73, %72 : vector<32x128xf32>
    %75 = arith.divf %73, %74 : vector<32x128xf32>
    %76 = vector.shape_cast %62 : vector<32x128xf32> to vector<4x8x1x128xf32>
    %c0_24 = arith.constant 0 : index
    %c0_25 = arith.constant 0 : index
    %c0_26 = arith.constant 0 : index
    %c0_27 = arith.constant 0 : index
    %77 = vector.load %arg11[%c0_24, %c0_25, %c0_26, %c0_27] : memref<4x8x1x128xf32, #tpu.memory_space<vmem>>, vector<4x8x1x128xf32>
    tpu.vector_store %arg11[%c0_24, %c0_25, %c0_26, %c0_27], %76 {strides = array<i32>} : memref<4x8x1x128xf32, #tpu.memory_space<vmem>>, vector<4x8x1x128xf32>,
    %78 = vector.shape_cast %66 : vector<32x128xf32> to vector<4x8x1x128xf32>
    %c0_28 = arith.constant 0 : index
    %c0_29 = arith.constant 0 : index
    %c0_30 = arith.constant 0 : index
    %c0_31 = arith.constant 0 : index
    %79 = vector.load %arg12[%c0_28, %c0_29, %c0_30, %c0_31] : memref<4x8x1x128xf32, #tpu.memory_space<vmem>>, vector<4x8x1x128xf32>
    tpu.vector_store %arg12[%c0_28, %c0_29, %c0_30, %c0_31], %78 {strides = array<i32>} : memref<4x8x1x128xf32, #tpu.memory_space<vmem>>, vector<4x8x1x128xf32>,
    %80 = vector.extract_strided_slice %5 {offsets = [8, 0], sizes = [1, 128], strides = [1, 1]} : vector<16x128xf32> to vector<1x128xf32>
    %81 = vector.extract_strided_slice %5 {offsets = [7, 0], sizes = [1, 128], strides = [1, 1]} : vector<16x128xf32> to vector<1x128xf32>
    %82 = math.exp %81 : vector<1x128xf32>
    %cst_32 = arith.constant 0.000000e+00 : f32
    %83 = vector.broadcast %cst_32 : f32 to vector<1x128xf32>
    %84 = arith.subf %83, %82 : vector<1x128xf32>
    %cst_33 = arith.constant 0.000000e+00 : f32
    %85 = vector.broadcast %cst_33 : f32 to vector<1x128xf32>
    %cst_34 = arith.constant 0.000000e+00 : f32
    %86 = vector.broadcast %cst_34 : f32 to vector<1x128xf32>
    %cst_35 = arith.constant -9.99999968E+37 : f32
    %87 = vector.broadcast %cst_35 : f32 to vector<1x128xf32>
    %c0_i32_36 = arith.constant 0 : i32
    %c4_i32 = arith.constant 4 : i32
    %88 = arith.addi %c0_i32_36, %c4_i32 : i32
    %c1_i32_37 = arith.constant 1 : i32
    %89:3 = scf.for %arg13 = %c0_i32_36 to %88 step %c1_i32_37 iter_args(%arg14 = %85, %arg15 = %86, %arg16 = %87) -> (vector<1x128xf32>, vector<1x128xf32>, vector<1x128xf32>)  : i32 {
      %166 = arith.index_cast %arg13 : i32 to index
      %c0_71 = arith.constant 0 : index
      %c0_72 = arith.constant 0 : index
      %c0_73 = arith.constant 0 : index
      %167 = vector.load %arg11[%166, %c0_71, %c0_72, %c0_73] : memref<4x8x1x128xf32, #tpu.memory_space<vmem>>, vector<1x8x1x128xf32>
      %168 = vector.shape_cast %167 : vector<1x8x1x128xf32> to vector<8x1x128xf32>
      %169 = arith.index_cast %arg13 : i32 to index
      %c0_74 = arith.constant 0 : index
      %c0_75 = arith.constant 0 : index
      %c0_76 = arith.constant 0 : index
      %170 = vector.load %arg12[%169, %c0_74, %c0_75, %c0_76] : memref<4x8x1x128xf32, #tpu.memory_space<vmem>>, vector<1x8x1x128xf32>
      %171 = vector.shape_cast %170 : vector<1x8x1x128xf32> to vector<8x1x128xf32>
      %172 = vector.extract_strided_slice %168 {offsets = [0, 0, 0], sizes = [1, 1, 128], strides = [1, 1, 1]} : vector<8x1x128xf32> to vector<1x1x128xf32>
      %173 = vector.shape_cast %172 : vector<1x1x128xf32> to vector<1x128xf32>
      %174 = vector.extract_strided_slice %171 {offsets = [0, 0, 0], sizes = [1, 1, 128], strides = [1, 1, 1]} : vector<8x1x128xf32> to vector<1x1x128xf32>
      %175 = vector.shape_cast %174 : vector<1x1x128xf32> to vector<1x128xf32>
      %176 = arith.addf %80, %173 : vector<1x128xf32>
      %177 = arith.maximumf %arg16, %176 : vector<1x128xf32>
      %178 = arith.subf %arg16, %177 : vector<1x128xf32>
      %179 = math.exp %178 : vector<1x128xf32>
      %180 = arith.subf %176, %177 : vector<1x128xf32>
      %181 = math.exp %180 : vector<1x128xf32>
      %182 = arith.mulf %179, %arg14 : vector<1x128xf32>
      %183 = arith.mulf %181, %175 : vector<1x128xf32>
      %184 = arith.addf %182, %183 : vector<1x128xf32>
      %185 = arith.mulf %179, %arg15 : vector<1x128xf32>
      %186 = arith.addf %185, %181 : vector<1x128xf32>
      %187 = tpu.reciprocal %186 {approx = true} : vector<1x128xf32> -> vector<1x128xf32>
      %188 = arith.mulf %186, %187 : vector<1x128xf32>
      %cst_77 = arith.constant 2.000000e+00 : f32
      %189 = vector.broadcast %cst_77 : f32 to vector<1x128xf32>
      %190 = arith.subf %189, %188 : vector<1x128xf32>
      %191 = arith.mulf %187, %190 : vector<1x128xf32>
      %192 = arith.mulf %184, %191 : vector<1x128xf32>
      %193 = arith.addf %arg16, %84 : vector<1x128xf32>
      %194 = arith.maximumf %193, %173 : vector<1x128xf32>
      %195 = arith.subf %193, %194 : vector<1x128xf32>
      %196 = math.exp %195 : vector<1x128xf32>
      %197 = arith.subf %173, %194 : vector<1x128xf32>
      %198 = math.exp %197 : vector<1x128xf32>
      %199 = arith.mulf %196, %arg14 : vector<1x128xf32>
      %200 = arith.mulf %198, %175 : vector<1x128xf32>
      %201 = arith.addf %199, %200 : vector<1x128xf32>
      %202 = arith.mulf %196, %arg15 : vector<1x128xf32>
      %203 = arith.addf %202, %198 : vector<1x128xf32>
      %204 = vector.extract_strided_slice %168 {offsets = [1, 0, 0], sizes = [1, 1, 128], strides = [1, 1, 1]} : vector<8x1x128xf32> to vector<1x1x128xf32>
      %205 = vector.shape_cast %204 : vector<1x1x128xf32> to vector<1x128xf32>
      %206 = vector.extract_strided_slice %171 {offsets = [1, 0, 0], sizes = [1, 1, 128], strides = [1, 1, 1]} : vector<8x1x128xf32> to vector<1x1x128xf32>
      %207 = vector.shape_cast %206 : vector<1x1x128xf32> to vector<1x128xf32>
      %208 = arith.addf %80, %205 : vector<1x128xf32>
      %209 = arith.maximumf %194, %208 : vector<1x128xf32>
      %210 = arith.subf %194, %209 : vector<1x128xf32>
      %211 = math.exp %210 : vector<1x128xf32>
      %212 = arith.subf %208, %209 : vector<1x128xf32>
      %213 = math.exp %212 : vector<1x128xf32>
      %214 = arith.mulf %211, %201 : vector<1x128xf32>
      %215 = arith.mulf %213, %207 : vector<1x128xf32>
      %216 = arith.addf %214, %215 : vector<1x128xf32>
      %217 = arith.mulf %211, %203 : vector<1x128xf32>
      %218 = arith.addf %217, %213 : vector<1x128xf32>
      %219 = tpu.reciprocal %218 {approx = true} : vector<1x128xf32> -> vector<1x128xf32>
      %220 = arith.mulf %218, %219 : vector<1x128xf32>
      %cst_78 = arith.constant 2.000000e+00 : f32
      %221 = vector.broadcast %cst_78 : f32 to vector<1x128xf32>
      %222 = arith.subf %221, %220 : vector<1x128xf32>
      %223 = arith.mulf %219, %222 : vector<1x128xf32>
      %224 = arith.mulf %216, %223 : vector<1x128xf32>
      %225 = arith.addf %194, %84 : vector<1x128xf32>
      %226 = arith.maximumf %225, %205 : vector<1x128xf32>
      %227 = arith.subf %225, %226 : vector<1x128xf32>
      %228 = math.exp %227 : vector<1x128xf32>
      %229 = arith.subf %205, %226 : vector<1x128xf32>
      %230 = math.exp %229 : vector<1x128xf32>
      %231 = arith.mulf %228, %201 : vector<1x128xf32>
      %232 = arith.mulf %230, %207 : vector<1x128xf32>
      %233 = arith.addf %231, %232 : vector<1x128xf32>
      %234 = arith.mulf %228, %203 : vector<1x128xf32>
      %235 = arith.addf %234, %230 : vector<1x128xf32>
      %236 = vector.extract_strided_slice %168 {offsets = [2, 0, 0], sizes = [1, 1, 128], strides = [1, 1, 1]} : vector<8x1x128xf32> to vector<1x1x128xf32>
      %237 = vector.shape_cast %236 : vector<1x1x128xf32> to vector<1x128xf32>
      %238 = vector.extract_strided_slice %171 {offsets = [2, 0, 0], sizes = [1, 1, 128], strides = [1, 1, 1]} : vector<8x1x128xf32> to vector<1x1x128xf32>
      %239 = vector.shape_cast %238 : vector<1x1x128xf32> to vector<1x128xf32>
      %240 = arith.addf %80, %237 : vector<1x128xf32>
      %241 = arith.maximumf %226, %240 : vector<1x128xf32>
      %242 = arith.subf %226, %241 : vector<1x128xf32>
      %243 = math.exp %242 : vector<1x128xf32>
      %244 = arith.subf %240, %241 : vector<1x128xf32>
      %245 = math.exp %244 : vector<1x128xf32>
      %246 = arith.mulf %243, %233 : vector<1x128xf32>
      %247 = arith.mulf %245, %239 : vector<1x128xf32>
      %248 = arith.addf %246, %247 : vector<1x128xf32>
      %249 = arith.mulf %243, %235 : vector<1x128xf32>
      %250 = arith.addf %249, %245 : vector<1x128xf32>
      %251 = tpu.reciprocal %250 {approx = true} : vector<1x128xf32> -> vector<1x128xf32>
      %252 = arith.mulf %250, %251 : vector<1x128xf32>
      %cst_79 = arith.constant 2.000000e+00 : f32
      %253 = vector.broadcast %cst_79 : f32 to vector<1x128xf32>
      %254 = arith.subf %253, %252 : vector<1x128xf32>
      %255 = arith.mulf %251, %254 : vector<1x128xf32>
      %256 = arith.mulf %248, %255 : vector<1x128xf32>
      %257 = arith.addf %226, %84 : vector<1x128xf32>
      %258 = arith.maximumf %257, %237 : vector<1x128xf32>
      %259 = arith.subf %257, %258 : vector<1x128xf32>
      %260 = math.exp %259 : vector<1x128xf32>
      %261 = arith.subf %237, %258 : vector<1x128xf32>
      %262 = math.exp %261 : vector<1x128xf32>
      %263 = arith.mulf %260, %233 : vector<1x128xf32>
      %264 = arith.mulf %262, %239 : vector<1x128xf32>
      %265 = arith.addf %263, %264 : vector<1x128xf32>
      %266 = arith.mulf %260, %235 : vector<1x128xf32>
      %267 = arith.addf %266, %262 : vector<1x128xf32>
      %268 = vector.extract_strided_slice %168 {offsets = [3, 0, 0], sizes = [1, 1, 128], strides = [1, 1, 1]} : vector<8x1x128xf32> to vector<1x1x128xf32>
      %269 = vector.shape_cast %268 : vector<1x1x128xf32> to vector<1x128xf32>
      %270 = vector.extract_strided_slice %171 {offsets = [3, 0, 0], sizes = [1, 1, 128], strides = [1, 1, 1]} : vector<8x1x128xf32> to vector<1x1x128xf32>
      %271 = vector.shape_cast %270 : vector<1x1x128xf32> to vector<1x128xf32>
      %272 = arith.addf %80, %269 : vector<1x128xf32>
      %273 = arith.maximumf %258, %272 : vector<1x128xf32>
      %274 = arith.subf %258, %273 : vector<1x128xf32>
      %275 = math.exp %274 : vector<1x128xf32>
      %276 = arith.subf %272, %273 : vector<1x128xf32>
      %277 = math.exp %276 : vector<1x128xf32>
      %278 = arith.mulf %275, %265 : vector<1x128xf32>
      %279 = arith.mulf %277, %271 : vector<1x128xf32>
      %280 = arith.addf %278, %279 : vector<1x128xf32>
      %281 = arith.mulf %275, %267 : vector<1x128xf32>
      %282 = arith.addf %281, %277 : vector<1x128xf32>
      %283 = tpu.reciprocal %282 {approx = true} : vector<1x128xf32> -> vector<1x128xf32>
      %284 = arith.mulf %282, %283 : vector<1x128xf32>
      %cst_80 = arith.constant 2.000000e+00 : f32
      %285 = vector.broadcast %cst_80 : f32 to vector<1x128xf32>
      %286 = arith.subf %285, %284 : vector<1x128xf32>
      %287 = arith.mulf %283, %286 : vector<1x128xf32>
      %288 = arith.mulf %280, %287 : vector<1x128xf32>
      %289 = arith.addf %258, %84 : vector<1x128xf32>
      %290 = arith.maximumf %289, %269 : vector<1x128xf32>
      %291 = arith.subf %289, %290 : vector<1x128xf32>
      %292 = math.exp %291 : vector<1x128xf32>
      %293 = arith.subf %269, %290 : vector<1x128xf32>
      %294 = math.exp %293 : vector<1x128xf32>
      %295 = arith.mulf %292, %265 : vector<1x128xf32>
      %296 = arith.mulf %294, %271 : vector<1x128xf32>
      %297 = arith.addf %295, %296 : vector<1x128xf32>
      %298 = arith.mulf %292, %267 : vector<1x128xf32>
      %299 = arith.addf %298, %294 : vector<1x128xf32>
      %300 = vector.extract_strided_slice %168 {offsets = [4, 0, 0], sizes = [1, 1, 128], strides = [1, 1, 1]} : vector<8x1x128xf32> to vector<1x1x128xf32>
      %301 = vector.shape_cast %300 : vector<1x1x128xf32> to vector<1x128xf32>
      %302 = vector.extract_strided_slice %171 {offsets = [4, 0, 0], sizes = [1, 1, 128], strides = [1, 1, 1]} : vector<8x1x128xf32> to vector<1x1x128xf32>
      %303 = vector.shape_cast %302 : vector<1x1x128xf32> to vector<1x128xf32>
      %304 = arith.addf %80, %301 : vector<1x128xf32>
      %305 = arith.maximumf %290, %304 : vector<1x128xf32>
      %306 = arith.subf %290, %305 : vector<1x128xf32>
      %307 = math.exp %306 : vector<1x128xf32>
      %308 = arith.subf %304, %305 : vector<1x128xf32>
      %309 = math.exp %308 : vector<1x128xf32>
      %310 = arith.mulf %307, %297 : vector<1x128xf32>
      %311 = arith.mulf %309, %303 : vector<1x128xf32>
      %312 = arith.addf %310, %311 : vector<1x128xf32>
      %313 = arith.mulf %307, %299 : vector<1x128xf32>
      %314 = arith.addf %313, %309 : vector<1x128xf32>
      %315 = tpu.reciprocal %314 {approx = true} : vector<1x128xf32> -> vector<1x128xf32>
      %316 = arith.mulf %314, %315 : vector<1x128xf32>
      %cst_81 = arith.constant 2.000000e+00 : f32
      %317 = vector.broadcast %cst_81 : f32 to vector<1x128xf32>
      %318 = arith.subf %317, %316 : vector<1x128xf32>
      %319 = arith.mulf %315, %318 : vector<1x128xf32>
      %320 = arith.mulf %312, %319 : vector<1x128xf32>
      %321 = arith.addf %290, %84 : vector<1x128xf32>
      %322 = arith.maximumf %321, %301 : vector<1x128xf32>
      %323 = arith.subf %321, %322 : vector<1x128xf32>
      %324 = math.exp %323 : vector<1x128xf32>
      %325 = arith.subf %301, %322 : vector<1x128xf32>
      %326 = math.exp %325 : vector<1x128xf32>
      %327 = arith.mulf %324, %297 : vector<1x128xf32>
      %328 = arith.mulf %326, %303 : vector<1x128xf32>
      %329 = arith.addf %327, %328 : vector<1x128xf32>
      %330 = arith.mulf %324, %299 : vector<1x128xf32>
      %331 = arith.addf %330, %326 : vector<1x128xf32>
      %332 = vector.extract_strided_slice %168 {offsets = [5, 0, 0], sizes = [1, 1, 128], strides = [1, 1, 1]} : vector<8x1x128xf32> to vector<1x1x128xf32>
      %333 = vector.shape_cast %332 : vector<1x1x128xf32> to vector<1x128xf32>
      %334 = vector.extract_strided_slice %171 {offsets = [5, 0, 0], sizes = [1, 1, 128], strides = [1, 1, 1]} : vector<8x1x128xf32> to vector<1x1x128xf32>
      %335 = vector.shape_cast %334 : vector<1x1x128xf32> to vector<1x128xf32>
      %336 = arith.addf %80, %333 : vector<1x128xf32>
      %337 = arith.maximumf %322, %336 : vector<1x128xf32>
      %338 = arith.subf %322, %337 : vector<1x128xf32>
      %339 = math.exp %338 : vector<1x128xf32>
      %340 = arith.subf %336, %337 : vector<1x128xf32>
      %341 = math.exp %340 : vector<1x128xf32>
      %342 = arith.mulf %339, %329 : vector<1x128xf32>
      %343 = arith.mulf %341, %335 : vector<1x128xf32>
      %344 = arith.addf %342, %343 : vector<1x128xf32>
      %345 = arith.mulf %339, %331 : vector<1x128xf32>
      %346 = arith.addf %345, %341 : vector<1x128xf32>
      %347 = tpu.reciprocal %346 {approx = true} : vector<1x128xf32> -> vector<1x128xf32>
      %348 = arith.mulf %346, %347 : vector<1x128xf32>
      %cst_82 = arith.constant 2.000000e+00 : f32
      %349 = vector.broadcast %cst_82 : f32 to vector<1x128xf32>
      %350 = arith.subf %349, %348 : vector<1x128xf32>
      %351 = arith.mulf %347, %350 : vector<1x128xf32>
      %352 = arith.mulf %344, %351 : vector<1x128xf32>
      %353 = arith.addf %322, %84 : vector<1x128xf32>
      %354 = arith.maximumf %353, %333 : vector<1x128xf32>
      %355 = arith.subf %353, %354 : vector<1x128xf32>
      %356 = math.exp %355 : vector<1x128xf32>
      %357 = arith.subf %333, %354 : vector<1x128xf32>
      %358 = math.exp %357 : vector<1x128xf32>
      %359 = arith.mulf %356, %329 : vector<1x128xf32>
      %360 = arith.mulf %358, %335 : vector<1x128xf32>
      %361 = arith.addf %359, %360 : vector<1x128xf32>
      %362 = arith.mulf %356, %331 : vector<1x128xf32>
      %363 = arith.addf %362, %358 : vector<1x128xf32>
      %364 = vector.extract_strided_slice %168 {offsets = [6, 0, 0], sizes = [1, 1, 128], strides = [1, 1, 1]} : vector<8x1x128xf32> to vector<1x1x128xf32>
      %365 = vector.shape_cast %364 : vector<1x1x128xf32> to vector<1x128xf32>
      %366 = vector.extract_strided_slice %171 {offsets = [6, 0, 0], sizes = [1, 1, 128], strides = [1, 1, 1]} : vector<8x1x128xf32> to vector<1x1x128xf32>
      %367 = vector.shape_cast %366 : vector<1x1x128xf32> to vector<1x128xf32>
      %368 = arith.addf %80, %365 : vector<1x128xf32>
      %369 = arith.maximumf %354, %368 : vector<1x128xf32>
      %370 = arith.subf %354, %369 : vector<1x128xf32>
      %371 = math.exp %370 : vector<1x128xf32>
      %372 = arith.subf %368, %369 : vector<1x128xf32>
      %373 = math.exp %372 : vector<1x128xf32>
      %374 = arith.mulf %371, %361 : vector<1x128xf32>
      %375 = arith.mulf %373, %367 : vector<1x128xf32>
      %376 = arith.addf %374, %375 : vector<1x128xf32>
      %377 = arith.mulf %371, %363 : vector<1x128xf32>
      %378 = arith.addf %377, %373 : vector<1x128xf32>
      %379 = tpu.reciprocal %378 {approx = true} : vector<1x128xf32> -> vector<1x128xf32>
      %380 = arith.mulf %378, %379 : vector<1x128xf32>
      %cst_83 = arith.constant 2.000000e+00 : f32
      %381 = vector.broadcast %cst_83 : f32 to vector<1x128xf32>
      %382 = arith.subf %381, %380 : vector<1x128xf32>
      %383 = arith.mulf %379, %382 : vector<1x128xf32>
      %384 = arith.mulf %376, %383 : vector<1x128xf32>
      %385 = arith.addf %354, %84 : vector<1x128xf32>
      %386 = arith.maximumf %385, %365 : vector<1x128xf32>
      %387 = arith.subf %385, %386 : vector<1x128xf32>
      %388 = math.exp %387 : vector<1x128xf32>
      %389 = arith.subf %365, %386 : vector<1x128xf32>
      %390 = math.exp %389 : vector<1x128xf32>
      %391 = arith.mulf %388, %361 : vector<1x128xf32>
      %392 = arith.mulf %390, %367 : vector<1x128xf32>
      %393 = arith.addf %391, %392 : vector<1x128xf32>
      %394 = arith.mulf %388, %363 : vector<1x128xf32>
      %395 = arith.addf %394, %390 : vector<1x128xf32>
      %396 = vector.extract_strided_slice %168 {offsets = [7, 0, 0], sizes = [1, 1, 128], strides = [1, 1, 1]} : vector<8x1x128xf32> to vector<1x1x128xf32>
      %397 = vector.shape_cast %396 : vector<1x1x128xf32> to vector<1x128xf32>
      %398 = vector.extract_strided_slice %171 {offsets = [7, 0, 0], sizes = [1, 1, 128], strides = [1, 1, 1]} : vector<8x1x128xf32> to vector<1x1x128xf32>
      %399 = vector.shape_cast %398 : vector<1x1x128xf32> to vector<1x128xf32>
      %400 = arith.addf %80, %397 : vector<1x128xf32>
      %401 = arith.maximumf %386, %400 : vector<1x128xf32>
      %402 = arith.subf %386, %401 : vector<1x128xf32>
      %403 = math.exp %402 : vector<1x128xf32>
      %404 = arith.subf %400, %401 : vector<1x128xf32>
      %405 = math.exp %404 : vector<1x128xf32>
      %406 = arith.mulf %403, %393 : vector<1x128xf32>
      %407 = arith.mulf %405, %399 : vector<1x128xf32>
      %408 = arith.addf %406, %407 : vector<1x128xf32>
      %409 = arith.mulf %403, %395 : vector<1x128xf32>
      %410 = arith.addf %409, %405 : vector<1x128xf32>
      %411 = tpu.reciprocal %410 {approx = true} : vector<1x128xf32> -> vector<1x128xf32>
      %412 = arith.mulf %410, %411 : vector<1x128xf32>
      %cst_84 = arith.constant 2.000000e+00 : f32
      %413 = vector.broadcast %cst_84 : f32 to vector<1x128xf32>
      %414 = arith.subf %413, %412 : vector<1x128xf32>
      %415 = arith.mulf %411, %414 : vector<1x128xf32>
      %416 = arith.mulf %408, %415 : vector<1x128xf32>
      %417 = arith.addf %386, %84 : vector<1x128xf32>
      %418 = arith.maximumf %417, %397 : vector<1x128xf32>
      %419 = arith.subf %417, %418 : vector<1x128xf32>
      %420 = math.exp %419 : vector<1x128xf32>
      %421 = arith.subf %397, %418 : vector<1x128xf32>
      %422 = math.exp %421 : vector<1x128xf32>
      %423 = arith.mulf %420, %393 : vector<1x128xf32>
      %424 = arith.mulf %422, %399 : vector<1x128xf32>
      %425 = arith.addf %423, %424 : vector<1x128xf32>
      %426 = arith.mulf %420, %395 : vector<1x128xf32>
      %427 = arith.addf %426, %422 : vector<1x128xf32>
      %428 = vector.shape_cast %192 : vector<1x128xf32> to vector<1x1x128xf32>
      %429 = vector.shape_cast %224 : vector<1x128xf32> to vector<1x1x128xf32>
      %430 = vector.shape_cast %256 : vector<1x128xf32> to vector<1x1x128xf32>
      %431 = vector.shape_cast %288 : vector<1x128xf32> to vector<1x1x128xf32>
      %432 = vector.shape_cast %320 : vector<1x128xf32> to vector<1x1x128xf32>
      %433 = vector.shape_cast %352 : vector<1x128xf32> to vector<1x1x128xf32>
      %434 = vector.shape_cast %384 : vector<1x128xf32> to vector<1x1x128xf32>
      %435 = vector.shape_cast %416 : vector<1x128xf32> to vector<1x1x128xf32>
      %436 = tpu.concatenate %428, %429, %430, %431, %432, %433, %434, %435 in 0 : vector<1x1x128xf32>, vector<1x1x128xf32>, vector<1x1x128xf32>, vector<1x1x128xf32>, vector<1x1x128xf32>, vector<1x1x128xf32>, vector<1x1x128xf32>, vector<1x1x128xf32> -> vector<8x1x128xf32>
      %437 = arith.index_cast %arg13 : i32 to index
      %c0_85 = arith.constant 0 : index
      %c0_86 = arith.constant 0 : index
      %c0_87 = arith.constant 0 : index
      %438 = vector.load %arg11[%437, %c0_85, %c0_86, %c0_87] : memref<4x8x1x128xf32, #tpu.memory_space<vmem>>, vector<1x8x1x128xf32>
      %439 = vector.shape_cast %438 : vector<1x8x1x128xf32> to vector<8x1x128xf32>
      %440 = vector.shape_cast %436 : vector<8x1x128xf32> to vector<1x8x1x128xf32>
      tpu.vector_store %arg11[%437, %c0_85, %c0_86, %c0_87], %440 {strides = array<i32>} : memref<4x8x1x128xf32, #tpu.memory_space<vmem>>, vector<1x8x1x128xf32>,
      scf.yield %425, %427, %418 : vector<1x128xf32>, vector<1x128xf32>, vector<1x128xf32>
    }
    %c4_i32_38 = arith.constant 4 : i32
    %c0_39 = arith.constant 0 : index
    %c0_40 = arith.constant 0 : index
    %c0_41 = arith.constant 0 : index
    %c0_42 = arith.constant 0 : index
    %90 = vector.load %arg11[%c0_39, %c0_40, %c0_41, %c0_42] : memref<4x8x1x128xf32, #tpu.memory_space<vmem>>, vector<4x8x1x128xf32>
    %91 = vector.shape_cast %90 : vector<4x8x1x128xf32> to vector<32x128xf32>
    %92 = arith.mulf %75, %91 : vector<32x128xf32>
    %c0_43 = arith.constant 0 : index
    %c0_44 = arith.constant 0 : index
    %c0_45 = arith.constant 0 : index
    %93 = vector.load %arg6[%c0_43, %c0_44, %c0_45] : memref<1x128x128xbf16, #tpu.memory_space<vmem>>, vector<1x128x128xbf16>
    %94 = vector.shape_cast %93 : vector<1x128x128xbf16> to vector<128x128xbf16>
    %95 = arith.truncf %92 : vector<32x128xf32> to vector<32x128xbf16>
    %cst_46 = arith.constant dense<0.000000e+00> : vector<32x128xf32>
    %96 = tpu.matmul %95, %94, %cst_46 {dimension_numbers = #tpu.dot_dimension_numbers<[1], [0], [0], [1], [0, 0, 1, 1], [], []>} : vector<32x128xbf16>, vector<128x128xbf16>, vector<32x128xf32> -> vector<32x128xf32>
    %97 = arith.addf %3, %96 : vector<32x128xf32>
    %98 = vector.extract_strided_slice %5 {offsets = [2, 0], sizes = [1, 128], strides = [1, 1]} : vector<16x128xf32> to vector<1x128xf32>
    %99 = vector.extract_strided_slice %5 {offsets = [3, 0], sizes = [1, 128], strides = [1, 1]} : vector<16x128xf32> to vector<1x128xf32>
    %cst_47 = arith.constant dense<0.000000e+00> : vector<32xf32>
    %100 = vector.multi_reduction <add>, %97, %cst_47 [1] : vector<32x128xf32> to vector<32xf32>
    %101 = vector.shape_cast %100 : vector<32xf32> to vector<32x1xf32>
    %cst_48 = arith.constant 1.280000e+02 : f32
    %102 = vector.broadcast %cst_48 : f32 to vector<32x1xf32>
    %103 = arith.divf %101, %102 : vector<32x1xf32>
    %104 = vector.broadcast %103 : vector<32x1xf32> to vector<32x128xf32>
    %105 = arith.subf %97, %104 : vector<32x128xf32>
    %106 = arith.mulf %105, %105 : vector<32x128xf32>
    %cst_49 = arith.constant dense<0.000000e+00> : vector<32xf32>
    %107 = vector.multi_reduction <add>, %106, %cst_49 [1] : vector<32x128xf32> to vector<32xf32>
    %108 = vector.shape_cast %107 : vector<32xf32> to vector<32x1xf32>
    %cst_50 = arith.constant 1.280000e+02 : f32
    %109 = vector.broadcast %cst_50 : f32 to vector<32x1xf32>
    %110 = arith.divf %108, %109 : vector<32x1xf32>
    %111 = vector.broadcast %103 : vector<32x1xf32> to vector<32x128xf32>
    %112 = arith.subf %97, %111 : vector<32x128xf32>
    %cst_51 = arith.constant 9.99999974E-6 : f32
    %113 = vector.broadcast %cst_51 : f32 to vector<32x1xf32>
    %114 = arith.addf %110, %113 : vector<32x1xf32>
    %115 = math.rsqrt %114 : vector<32x1xf32>
    %116 = vector.broadcast %115 : vector<32x1xf32> to vector<32x128xf32>
    %117 = arith.mulf %112, %116 : vector<32x128xf32>
    %118 = vector.broadcast %98 : vector<1x128xf32> to vector<32x128xf32>
    %119 = arith.mulf %117, %118 : vector<32x128xf32>
    %120 = vector.broadcast %99 : vector<1x128xf32> to vector<32x128xf32>
    %121 = arith.addf %119, %120 : vector<32x128xf32>
    %c1_i32_52 = arith.constant 1 : i32
    %122 = tpu.dynamic_rotate %121 by %c1_i32_52 dim 0 : vector<32x128xf32>, i32 -> vector<32x128xf32>
    %cst_53 = arith.constant 0.000000e+00 : f32
    %123 = vector.shape_cast %8 : vector<32x1xi1> to vector<32x1xi1>
    %124 = vector.broadcast %123 : vector<32x1xi1> to vector<32x128xi1>
    %125 = vector.broadcast %cst_53 : f32 to vector<32x128xf32>
    %126 = arith.select %124, %125, %122 : vector<32x128xi1>, vector<32x128xf32>
    %127 = vector.extract_strided_slice %5 {offsets = [9, 0], sizes = [1, 128], strides = [1, 1]} : vector<16x128xf32> to vector<1x128xf32>
    %128 = vector.broadcast %127 : vector<1x128xf32> to vector<32x128xf32>
    %129 = arith.mulf %121, %128 : vector<32x128xf32>
    %130 = vector.extract_strided_slice %5 {offsets = [14, 0], sizes = [1, 128], strides = [1, 1]} : vector<16x128xf32> to vector<1x128xf32>
    %131 = vector.broadcast %130 : vector<1x128xf32> to vector<32x128xf32>
    %132 = arith.mulf %126, %131 : vector<32x128xf32>
    %133 = arith.addf %129, %132 : vector<32x128xf32>
    %134 = vector.extract_strided_slice %5 {offsets = [10, 0], sizes = [1, 128], strides = [1, 1]} : vector<16x128xf32> to vector<1x128xf32>
    %135 = vector.broadcast %134 : vector<1x128xf32> to vector<32x128xf32>
    %136 = arith.mulf %121, %135 : vector<32x128xf32>
    %137 = vector.extract_strided_slice %5 {offsets = [15, 0], sizes = [1, 128], strides = [1, 1]} : vector<16x128xf32> to vector<1x128xf32>
    %138 = vector.broadcast %137 : vector<1x128xf32> to vector<32x128xf32>
    %139 = arith.mulf %126, %138 : vector<32x128xf32>
    %140 = arith.addf %136, %139 : vector<32x128xf32>
    %c0_54 = arith.constant 0 : index
    %c0_55 = arith.constant 0 : index
    %c0_56 = arith.constant 0 : index
    %141 = vector.load %arg8[%c0_54, %c0_55, %c0_56] : memref<1x128x128xbf16, #tpu.memory_space<vmem>>, vector<1x128x128xbf16>
    %142 = vector.shape_cast %141 : vector<1x128x128xbf16> to vector<128x128xbf16>
    %143 = arith.truncf %140 : vector<32x128xf32> to vector<32x128xbf16>
    %cst_57 = arith.constant dense<0.000000e+00> : vector<32x128xf32>
    %144 = tpu.matmul %143, %142, %cst_57 {dimension_numbers = #tpu.dot_dimension_numbers<[1], [0], [0], [1], [0, 0, 1, 1], [], []>} : vector<32x128xbf16>, vector<128x128xbf16>, vector<32x128xf32> -> vector<32x128xf32>
    %145 = arith.negf %144 : vector<32x128xf32>
    %146 = math.exp %145 : vector<32x128xf32>
    %cst_58 = arith.constant 1.000000e+00 : f32
    %147 = vector.broadcast %cst_58 : f32 to vector<32x128xf32>
    %148 = arith.addf %147, %146 : vector<32x128xf32>
    %149 = arith.divf %147, %148 : vector<32x128xf32>
    %cst_59 = arith.constant 0.000000e+00 : f32
    %150 = vector.broadcast %cst_59 : f32 to vector<32x128xf32>
    %c0_60 = arith.constant 0 : index
    %c0_61 = arith.constant 0 : index
    %c0_62 = arith.constant 0 : index
    %151 = vector.load %arg7[%c0_60, %c0_61, %c0_62] : memref<1x128x512xbf16, #tpu.memory_space<vmem>>, vector<1x128x512xbf16>
    %152 = vector.shape_cast %151 : vector<1x128x512xbf16> to vector<128x512xbf16>
    %153 = arith.truncf %133 : vector<32x128xf32> to vector<32x128xbf16>
    %cst_63 = arith.constant dense<0.000000e+00> : vector<32x512xf32>
    %154 = tpu.matmul %153, %152, %cst_63 {dimension_numbers = #tpu.dot_dimension_numbers<[1], [0], [0], [1], [0, 0, 1, 1], [], []>} : vector<32x128xbf16>, vector<128x512xbf16>, vector<32x512xf32> -> vector<32x512xf32>
    %cst_64 = arith.constant 0.000000e+00 : f32
    %155 = vector.broadcast %cst_64 : f32 to vector<32x512xf32>
    %156 = arith.maximumf %154, %155 : vector<32x512xf32>
    %157 = arith.mulf %156, %156 : vector<32x512xf32>
    %c0_65 = arith.constant 0 : index
    %c0_66 = arith.constant 0 : index
    %c0_67 = arith.constant 0 : index
    %158 = vector.load %arg9[%c0_65, %c0_66, %c0_67] : memref<1x512x128xbf16, #tpu.memory_space<vmem>>, vector<1x512x128xbf16>
    %159 = vector.shape_cast %158 : vector<1x512x128xbf16> to vector<512x128xbf16>
    %160 = arith.truncf %157 : vector<32x512xf32> to vector<32x512xbf16>
    %cst_68 = arith.constant dense<0.000000e+00> : vector<32x128xf32>
    %161 = tpu.matmul %160, %159, %cst_68 {dimension_numbers = #tpu.dot_dimension_numbers<[1], [0], [0], [1], [0, 0, 1, 1], [], []>} : vector<32x512xbf16>, vector<512x128xbf16>, vector<32x128xf32> -> vector<32x128xf32>
    %162 = arith.addf %150, %161 : vector<32x128xf32>
    %163 = arith.mulf %149, %162 : vector<32x128xf32>
    %164 = arith.addf %97, %163 : vector<32x128xf32>
    %c0_69 = arith.constant 0 : index
    %c0_70 = arith.constant 0 : index
    %165 = vector.load %arg10[%c0_69, %c0_70] : memref<32x128xf32, #tpu.memory_space<vmem>>, vector<32x128xf32>
    tpu.vector_store %arg10[%c0_69, %c0_70], %164 {strides = array<i32>} : memref<32x128xf32, #tpu.memory_space<vmem>>, vector<32x128xf32>,
    return
  }
  func.func @transform_0(%arg0: i32) -> (i32, i32) {
    %c0_i32 = arith.constant 0 : i32
    %c0_i32_0 = arith.constant 0 : i32
    %c0_i32_1 = arith.constant 0 : i32
    return %c0_i32, %c0_i32_0 : i32, i32
  }
  func.func @transform_1(%arg0: i32) -> (i32, i32, i32) {
    %c0_i32 = arith.constant 0 : i32
    %c0_i32_0 = arith.constant 0 : i32
    %c0_i32_1 = arith.constant 0 : i32
    return %arg0, %c0_i32, %c0_i32_0 : i32, i32, i32
  }
  func.func @transform_2(%arg0: i32) -> (i32, i32, i32) {
    %c0_i32 = arith.constant 0 : i32
    %c0_i32_0 = arith.constant 0 : i32
    %c0_i32_1 = arith.constant 0 : i32
    return %arg0, %c0_i32, %c0_i32_0 : i32, i32, i32
  }
  func.func @transform_3(%arg0: i32) -> (i32, i32, i32) {
    %c0_i32 = arith.constant 0 : i32
    %c0_i32_0 = arith.constant 0 : i32
    %c0_i32_1 = arith.constant 0 : i32
    return %arg0, %c0_i32, %c0_i32_0 : i32, i32, i32
  }
  func.func @transform_4(%arg0: i32) -> (i32, i32, i32) {
    %c0_i32 = arith.constant 0 : i32
    %c0_i32_0 = arith.constant 0 : i32
    %c0_i32_1 = arith.constant 0 : i32
    return %arg0, %c0_i32, %c0_i32_0 : i32, i32, i32
  }
  func.func @transform_5(%arg0: i32) -> (i32, i32, i32) {
    %c0_i32 = arith.constant 0 : i32
    %c0_i32_0 = arith.constant 0 : i32
    %c0_i32_1 = arith.constant 0 : i32
    return %arg0, %c0_i32, %c0_i32_0 : i32, i32, i32
  }
  func.func @transform_6(%arg0: i32) -> (i32, i32, i32) {
    %c0_i32 = arith.constant 0 : i32
    %c0_i32_0 = arith.constant 0 : i32
    %c0_i32_1 = arith.constant 0 : i32
    return %arg0, %c0_i32, %c0_i32_0 : i32, i32, i32
  }
  func.func @transform_7(%arg0: i32) -> (i32, i32, i32) {
    %c0_i32 = arith.constant 0 : i32
    %c0_i32_0 = arith.constant 0 : i32
    %c0_i32_1 = arith.constant 0 : i32
    return %arg0, %c0_i32, %c0_i32_0 : i32, i32, i32
  }
  func.func @transform_8(%arg0: i32) -> (i32, i32, i32) {
    %c0_i32 = arith.constant 0 : i32
    %c0_i32_0 = arith.constant 0 : i32
    %c0_i32_1 = arith.constant 0 : i32
    return %arg0, %c0_i32, %c0_i32_0 : i32, i32, i32
  }
  func.func @transform_9(%arg0: i32) -> (i32, i32) {
    %c0_i32 = arith.constant 0 : i32
    %c0_i32_0 = arith.constant 0 : i32
    %c0_i32_1 = arith.constant 0 : i32
    return %c0_i32, %c0_i32_0 : i32, i32
  }
}

</mosaic_0001>

<bundles_post_ra>
// kernel: tpu_custom_call.1
= control target key start
LH: loop header
LB: loop body
LE: loop exit
PB: predicated region body
PF: predicated region fallthrough
CT: control target
= control target key end

     0   :  { %s5491_s0 = inlined_call_operand.hbm [shape: f32[32,128], index: 0, kind: input, shape index: {}]   ;;  %s5492_s1 = inlined_call_operand.hbm [shape: f32[2,16,128], index: 1, kind: input, shape index: {}]   ;;  %s5493_s2 = inlined_call_operand.hbm [shape: bf16[2,128,128], index: 2, kind: input, shape index: {}]   ;;  %s5494_s3 = inlined_call_operand.hbm [shape: bf16[2,128,128], index: 3, kind: input, shape index: {}]   ;;  %s5495_s4 = inlined_call_operand.hbm [shape: bf16[2,128,128], index: 4, kind: input, shape index: {}]   ;;  %s5496_s5 = inlined_call_operand.hbm [shape: bf16[2,128,128], index: 5, kind: input, shape index: {}]   ;;  %s5497_s6 = inlined_call_operand.hbm [shape: bf16[2,128,512], index: 6, kind: input, shape index: {}]   ;;  %s5498_s7 = inlined_call_operand.hbm [shape: bf16[2,128,128], index: 7, kind: input, shape index: {}]   ;;  %s5499_s8 = inlined_call_operand.hbm [shape: bf16[2,512,128], index: 8, kind: input, shape index: {}]   ;;  %s5500_s9 = inlined_call_operand.hbm [shape: f32[32,128], index: 9, kind: output, shape index: {}]  }
   0x1   :  { %5520 = sst [smem:[#allocation32_spill]] %s5491_s0 }
   0x2   :  { %5521 = sst [smem:[#allocation33_spill]] %s5492_s1 }
   0x3   :  { %5522 = sst [smem:[#allocation34_spill]] %s5493_s2 }
   0x4   :  { %5523 = sst [smem:[#allocation35_spill]] %s5494_s3 }
   0x5   :  { %5524 = sst [smem:[#allocation36_spill]] %s5495_s4 }
   0x6   :  { %5525 = sst [smem:[#allocation37_spill]] %s5497_s6 }
   0x7   :  { %5526 = sst [smem:[#allocation38_spill]] %s5499_s8 }
   0x8   :  { %5527 = sst [smem:[#allocation39_spill]] %s5500_s9 }
   0x9   :  { %14 = vsyncpa [#allocation5], 0 }
   0xa   :  { %15 = vsyncpa [#allocation8], 0 }
   0xb   :  { %17 = vsyncpa [#allocation8 + $0x1], 0 }
   0xc   :  { %18 = vsyncpa [#allocation11], 0 }
   0xd   :  { %20 = vsyncpa [#allocation11 + $0x1], 0 }
   0xe   :  { %21 = vsyncpa [#allocation14], 0 }
   0xf   :  { %23 = vsyncpa [#allocation14 + $0x1], 0 }
  0x10   :  { %24 = vsyncpa [#allocation17], 0 }
  0x11   :  { %26 = vsyncpa [#allocation17 + $0x1], 0 }
  0x12   :  { %27 = vsyncpa [#allocation6], 0  ;;  %s4534_s30 = smov 0   ;;  %s4536_s10 = smov 0  }
  0x13   :  { %s4538_s11 = smov 0   ;;  %s4540_s12 = smov 0  }
  0x14 LB: > { %5528 = sst [smem:[#allocation26_spill]] %s4451_s11  ;;  %s4555_s13 = sadd.s32 1, %s4455_s12   ;;  %s4455_s12 = sphi %s4540_s12, %s5562_s12   ;;  %s4451_s11 = sphi %s4538_s11, %s5564_s11   ;;  %s4447_s10 = sphi %s4536_s10, %s5566_s10   ;;  %s4443_s30 = sphi %s4534_s30, %s5565_s30  }
  0x15   : > { %5529 = sst [smem:[#allocation27_spill]] %s4555_s13  ;;  %s61_s14 = sadd.s32 1, %s4451_s11 }
  0x16   : > { %s58_s15 = ssub.s32 %s4455_s12, %s4555_s13  ;;  %p68_p0 = scmp.ne.s32.totalorder %s4451_s11, %s4447_s10 }
  0x17   : > { %p59_p1 = scmp.eq.s32.totalorder %s58_s15, 0  ;;  %p69_p2 = scmp.eq.s32.totalorder %s4455_s12, 0 }
  0x18   : > { %p3868_p4 = scmp.lt.s32.totalorder %s4455_s12, 2  ;;  %s4568_s17 = sand.u32 1, %s4455_s12  }
  0x19   : > { %s4564_s16 = scalar_select %p59_p1, %s4451_s11, %s61_s14  }
  0x1a   : > { %p70_p3 = por %p69_p2, %p68_p0  ;;  %s4571_s18 = sand.u32 1, %s4451_s11  }
  0x1b   : > { %5530 = sst [smem:[#allocation28_spill]] %s4564_s16  ;;  %s3230_s19 = sshll.u32 %s4571_s18, 4 }
  0x1c   : > { %s3694_s20 = sshll.u32 %s4455_s12, 4  ;;  %s5531_s1 = sld [smem:[#allocation33_spill]] }
  0x1d   : > { %s319_s25 = scalar_lea.vmem [#allocation7], %s3230_s19  ;;  %p4578_p5 = pnand %p3868_p4, %p70_p3 }
  0x1e   : > { %s327_s26 = sshll.u32 %s319_s25, 4  ;;  %s4583_s28 = sshll.u32 %s4571_s18, 6  ;;  %s328_s26 = int_to_ptr.vmem [resolvable:$true] %s327_s26 }
  0x1f   : > { %s4586_s29 = sshll.u32 %s4455_s12, 6  ;;  %p4591_p7 = pneg %p4578_p5 }
  0x22   : > { %s324_s23 = scalar_lea.hbm %s5531_s1, %s3694_s20  ;;  %s4094_s22 = scalar_lea.hbm %s5531_s1, 32 }
  0x23   : > { %s325_s24 = sshll.u32 %s324_s23, 4  ;;  %s326_s24 = int_to_ptr.hbm [resolvable:$true] %s325_s24 }
  0x24   : > { %s4087_s15 = sshra.s32 %s326_s24, 4  ;;  %s4088_s15 = int_to_ptr.hbm [resolvable:$true] %s4087_s15 }
  0x25   : > { %s4089_s16 = scalar_lea.hbm %s4088_s15, 16  ;;  %p4095_p10 = scmp.lt.s32.totalorder %s4088_s15, %s5531_s1 }
  0x26   : > { %p4090_p6 = scmp.ne.s32.totalorder %s4088_s15, %s4089_s16  ;;  %p4096_p11 = scmp.lt.s32.totalorder %s4094_s22, %s4089_s16 }
  0x28   : > { %p4092_p8 = pnand %p4591_p7, %p4090_p6  ;;  %p4097_p12 = por %p4096_p11, %p4095_p10 }
  0x2a   : > { %p4093_p9 = pneg %p4092_p8 }
  0x2c   : > { %p4098_p13 = pnand %p4097_p12, %p4093_p9 }
  0x2e   : > { %4101 = shalt.err (!%p4098_p13)
}
  0x2f   : > { %s5506_s14 = smov 128   ;;  %s5507_s11 = smov 8  }
  0x30   : > { %s5534_s20 = scalar_lea.sflag [#allocation8], %s4568_s17  ;;  %s5535_s3 = sld [smem:[#allocation35_spill]] }
  0x31   : > { %3845 = dma.hbm_to_vmem [thread:$0]  (!%p4578_p5), %s326_s24, 256, %s328_s26, %s5534_s20, %s5506_s14, %s5506_s14, %s5507_s11  }
  0x32   : > { %s363_s22 = scalar_lea.vmem [#allocation10], %s4583_s28  ;;  %s5508_s1 = scalar_lea.sflag [#allocation11], %s4568_s17 }
  0x33   : > { %s371_s23 = sshll.u32 %s363_s22, 4  ;;  %s372_s23 = int_to_ptr.vmem [resolvable:$true] %s371_s23 }
  0x36   : > { %s368_s16 = scalar_lea.hbm %s5535_s3, %s4586_s29  ;;  %s4124_s24 = scalar_lea.hbm %s5535_s3, 128 }
  0x37   : > { %s369_s25 = sshll.u32 %s368_s16, 4  ;;  %s370_s25 = int_to_ptr.hbm [resolvable:$true] %s369_s25 }
  0x38   : > { %s4117_s13 = sshra.s32 %s370_s25, 4  ;;  %s4118_s13 = int_to_ptr.hbm [resolvable:$true] %s4117_s13 }
  0x39   : > { %s4119_s9 = scalar_lea.hbm %s4118_s13, 64  ;;  %p4125_p3 = scmp.lt.s32.totalorder %s4118_s13, %s5535_s3 }
  0x3a   : > { %p4120_p0 = scmp.ne.s32.totalorder %s4118_s13, %s4119_s9  ;;  %p4126_p4 = scmp.lt.s32.totalorder %s4124_s24, %s4119_s9 }
  0x3c   : > { %p4122_p1 = pnand %p4120_p0, %p4591_p7  ;;  %p4127_p6 = por %p4126_p4, %p4125_p3 }
  0x3e   : > { %p4123_p2 = pneg %p4122_p1 }
  0x40   : > { %p4128_p8 = pnand %p4127_p6, %p4123_p2 }
  0x42   : > { %4131 = shalt.err (!%p4128_p8)
}
  0x43   : > { %s5511_s21 = smov 64   ;;  %s5513_s15 = smov 4  }
  0x44   : > { %3851 = dma.hbm_to_vmem [thread:$0]  (!%p4578_p5), %s370_s25, 1024, %s372_s23, %s5508_s1, %s5511_s21, %s5511_s21, %s5513_s15  }
  0x45   : > { %s412_s9 = scalar_lea.hbm %s5496_s5, %s4586_s29  ;;  %s407_s16 = scalar_lea.vmem [#allocation13], %s4583_s28 }
  0x46   : > { %s413_s13 = sshll.u32 %s412_s9, 4  ;;  %s415_s22 = sshll.u32 %s407_s16, 4  ;;  %s414_s13 = int_to_ptr.hbm [resolvable:$true] %s413_s13  ;;  %s416_s22 = int_to_ptr.vmem [resolvable:$true] %s415_s22 }
  0x47   : > { %s5510_s24 = scalar_lea.sflag [#allocation14], %s4568_s17  ;;  %s4147_s26 = sshra.s32 %s414_s13, 4  ;;  %s4148_s26 = int_to_ptr.hbm [resolvable:$true] %s4147_s26 }
  0x48   : > { %s4149_s20 = scalar_lea.hbm %s4148_s26, 64  ;;  %s4154_s23 = scalar_lea.hbm %s5496_s5, 128 }
  0x49   : > { %p4150_p9 = scmp.ne.s32.totalorder %s4148_s26, %s4149_s20  ;;  %p4155_p12 = scmp.lt.s32.totalorder %s4148_s26, %s5496_s5 }
  0x4a   : > { %p4156_p13 = scmp.lt.s32.totalorder %s4154_s23, %s4149_s20 }
  0x4b   : > { %p4152_p10 = pnand %p4150_p9, %p4591_p7 }
  0x4c   : > { %p4157_p0 = por %p4156_p13, %p4155_p12 }
  0x4d   : > { %p4153_p11 = pneg %p4152_p10 }
  0x4f   : > { %p4158_p1 = pnand %p4157_p0, %p4153_p11 }
  0x51   : > { %4161 = shalt.err (!%p4158_p1)
}
  0x52   : > { %3857 = dma.hbm_to_vmem [thread:$0]  (!%p4578_p5), %s414_s13, 1024, %s416_s22, %s5510_s24, %s5511_s21, %s5511_s21, %s5513_s15  }
  0x53   : > { %s456_s8 = scalar_lea.hbm %s5498_s7, %s4586_s29  ;;  %s451_s9 = scalar_lea.vmem [#allocation16], %s4583_s28 }
  0x54   : > { %s459_s16 = sshll.u32 %s451_s9, 4  ;;  %s457_s26 = sshll.u32 %s456_s8, 4  ;;  %s460_s16 = int_to_ptr.vmem [resolvable:$true] %s459_s16  ;;  %s458_s26 = int_to_ptr.hbm [resolvable:$true] %s457_s26 }
  0x55   : > { %s5509_s20 = scalar_lea.sflag [#allocation17], %s4568_s17  ;;  %s4177_s23 = sshra.s32 %s458_s26, 4  ;;  %s4178_s23 = int_to_ptr.hbm [resolvable:$true] %s4177_s23 }
  0x56   : > { %s4179_s25 = scalar_lea.hbm %s4178_s23, 64  ;;  %s4184_s13 = scalar_lea.hbm %s5498_s7, 128 }
  0x57   : > { %p4180_p2 = scmp.ne.s32.totalorder %s4178_s23, %s4179_s25  ;;  %p4185_p6 = scmp.lt.s32.totalorder %s4178_s23, %s5498_s7 }
  0x58   : > { %p4186_p8 = scmp.lt.s32.totalorder %s4184_s13, %s4179_s25 }
  0x59   : > { %p4182_p3 = pnand %p4180_p2, %p4591_p7 }
  0x5a   : > { %p4187_p9 = por %p4186_p8, %p4185_p6 }
  0x5b   : > { %p4183_p4 = pneg %p4182_p3 }
  0x5d   : > { %p4188_p10 = pnand %p4187_p9, %p4183_p4 }
  0x5f   : > { %4191 = shalt.err (!%p4188_p10)
}
  0x60   : > { %3863 = dma.hbm_to_vmem [thread:$0]  (!%p4578_p5), %s458_s26, 1024, %s460_s16, %s5509_s20, %s5511_s21, %s5511_s21, %s5513_s15  }
  0x61   : > { %s4674_s1 = sadd.s32 4294967295, %s4455_s12   ;;  %p74_p11 = scmp.ne.s32.totalorder %s4447_s10, %s4443_s30 }
  0x62   : > { %p75_p12 = scmp.eq.s32.totalorder %s4674_s1, 0  ;;  %p3227_p13 = scmp.ge.s32.totalorder %s4455_s12, 1 }
  0x63   : > { %p288_p0 = scmp.lt.s32.totalorder %s4455_s12, 3  ;;  %p3228_p2 = scmp.ne.s32.totalorder %s4674_s1, 0 }
  0x64   : > { %p4683_p1 = por %p75_p12, %p74_p11  ;;  %s5538_s0 = sld [smem:[#allocation32_spill]] }
  0x65   : > { %p4688_p3 = pnand %p3227_p13, %p288_p0  ;;  %s4477_s30 = smov [#allocation4]  }
  0x66   : > { %s301_s23 = sshll.u32 %s4477_s30, 4  ;;  %s5539_s2 = sld [smem:[#allocation34_spill]]  ;;  %s302_s23 = int_to_ptr.vmem [resolvable:$true] %s301_s23 }
  0x67   : > { %p3838_p4 = pneg %p4688_p3  ;;  %s341_s11 = scalar_lea.vmem [#allocation9], %s4583_s28 }
  0x68   : > { %s349_s20 = sshll.u32 %s341_s11, 4  ;;  %s5540_s9 = smov 8   ;;  %s350_s20 = int_to_ptr.vmem [resolvable:$true] %s349_s20 }
  0x69   : > { %p3839_p6 = pnand %p3838_p4, %p75_p12  ;;  %s5541_s16 = smov 128  }
  0x6a   : > { %s299_s26 = sshll.u32 %s5538_s0, 4  ;;  %s300_s26 = int_to_ptr.hbm [resolvable:$true] %s299_s26 }
  0x6b   : > { %3841 = dma.hbm_to_vmem [thread:$0]  (!%p3839_p6), %s300_s26, 512, %s302_s23, [#allocation5], %s5541_s16, %s5541_s16, %s5540_s9  }
  0x6c   : > { %s346_s13 = scalar_lea.hbm %s5539_s2, %s4586_s29  ;;  %s4244_s25 = scalar_lea.hbm %s5539_s2, 128 }
  0x6d   : > { %s347_s22 = sshll.u32 %s346_s13, 4  ;;  %s348_s22 = int_to_ptr.hbm [resolvable:$true] %s347_s22 }
  0x6e   : > { %s4237_s24 = sshra.s32 %s348_s22, 4  ;;  %s4238_s24 = int_to_ptr.hbm [resolvable:$true] %s4237_s24 }
  0x6f   : > { %s4239_s21 = scalar_lea.hbm %s4238_s24, 64  ;;  %p4245_p11 = scmp.lt.s32.totalorder %s4238_s24, %s5539_s2 }
  0x70   : > { %p4240_p8 = scmp.ne.s32.totalorder %s4238_s24, %s4239_s21  ;;  %p4246_p13 = scmp.lt.s32.totalorder %s4244_s25, %s4239_s21 }
  0x72   : > { %p4242_p9 = pnand %p4240_p8, %p4591_p7  ;;  %p4247_p0 = por %p4246_p13, %p4245_p11 }
  0x74   : > { %p4243_p10 = pneg %p4242_p9 }
  0x76   : > { %p4248_p4 = pnand %p4247_p0, %p4243_p10 }
  0x78   : > { %4251 = shalt.err (!%p4248_p4)
}
  0x79   : > { %s5542_s26 = smov 4   ;;  %s5543_s23 = smov 64  }
  0x7a   : > { %s5544_s11 = scalar_lea.sflag [#allocation8], %s4568_s17  ;;  %s5545_s4 = sld [smem:[#allocation36_spill]] }
  0x7b   : > { %3848 = dma.hbm_to_vmem [thread:$0]  (!%p4578_p5), %s348_s22, 1024, %s350_s20, %s5544_s11, %s5543_s23, %s5543_s23, %s5542_s26  }
  0x7c   : > { %s385_s21 = scalar_lea.vmem [#allocation12], %s4583_s28  ;;  %s3245_s25 = sshll.u32 %s4571_s18, 8 }
  0x7d   : > { %s393_s16 = sshll.u32 %s385_s21, 4  ;;  %s394_s16 = int_to_ptr.vmem [resolvable:$true] %s393_s16 }
  0x80   : > { %s390_s24 = scalar_lea.hbm %s5545_s4, %s4586_s29  ;;  %s4274_s20 = scalar_lea.hbm %s5545_s4, 128 }
  0x81   : > { %s391_s30 = sshll.u32 %s390_s24, 4  ;;  %s392_s30 = int_to_ptr.hbm [resolvable:$true] %s391_s30 }
  0x82   : > { %s4267_s6 = sshra.s32 %s392_s30, 4  ;;  %s4268_s6 = int_to_ptr.hbm [resolvable:$true] %s4267_s6 }
  0x83   : > { %s4269_s13 = scalar_lea.hbm %s4268_s6, 64  ;;  %p4275_p10 = scmp.lt.s32.totalorder %s4268_s6, %s5545_s4 }
  0x84   : > { %p4270_p6 = scmp.ne.s32.totalorder %s4268_s6, %s4269_s13  ;;  %p4276_p11 = scmp.lt.s32.totalorder %s4274_s20, %s4269_s13 }
  0x86   : > { %p4272_p8 = pnand %p4270_p6, %p4591_p7  ;;  %p4277_p13 = por %p4276_p11, %p4275_p10 }
  0x88   : > { %p4273_p9 = pneg %p4272_p8 }
  0x8a   : > { %p4278_p0 = pnand %p4277_p13, %p4273_p9 }
  0x8c   : > { %4281 = shalt.err (!%p4278_p0)
}
  0x8d   : > { %s5546_s28 = scalar_lea.sflag [#allocation11], %s4568_s17  ;;  %s3699_s0 = sshll.u32 %s4455_s12, 8 }
  0x8e   : > { %3854 = dma.hbm_to_vmem [thread:$0]  (!%p4578_p5), %s392_s30, 1024, %s394_s16, %s5546_s28, %s5543_s23, %s5543_s23, %s5542_s26  }
  0x8f   : > { %s5547_s15 = sld [smem:[#allocation37_spill]]  ;;  %s429_s24 = scalar_lea.vmem [#allocation15], %s3245_s25 }
  0x90   : > { %s437_s21 = sshll.u32 %s429_s24, 4  ;;  %s438_s21 = int_to_ptr.vmem [resolvable:$true] %s437_s21 }
  0x95   : > { %s434_s9 = scalar_lea.hbm %s5547_s15, %s3699_s0  ;;  %s4304_s12 = scalar_lea.hbm %s5547_s15, 512 }
  0x96   : > { %s435_s6 = sshll.u32 %s434_s9, 4  ;;  %s436_s6 = int_to_ptr.hbm [resolvable:$true] %s435_s6 }
  0x97   : > { %s4297_s13 = sshra.s32 %s436_s6, 4  ;;  %s4298_s13 = int_to_ptr.hbm [resolvable:$true] %s4297_s13 }
  0x98   : > { %s4299_s20 = scalar_lea.hbm %s4298_s13, 256  ;;  %p4305_p9 = scmp.lt.s32.totalorder %s4298_s13, %s5547_s15 }
  0x99   : > { %p4300_p4 = scmp.ne.s32.totalorder %s4298_s13, %s4299_s20  ;;  %p4306_p10 = scmp.lt.s32.totalorder %s4304_s12, %s4299_s20 }
  0x9b   : > { %p4302_p6 = pnand %p4300_p4, %p4591_p7  ;;  %p4307_p11 = por %p4306_p10, %p4305_p9 }
  0x9d   : > { %p4303_p8 = pneg %p4302_p6 }
  0x9f   : > { %p4308_p13 = pnand %p4307_p11, %p4303_p8 }
  0xa1   : > { %4311 = shalt.err (!%p4308_p13)
}
  0xa2   : > { %s4478_s28 = smov 256   ;;  %s4479_s2 = smov 16  }
  0xa3   : > { %s5548_s29 = scalar_lea.sflag [#allocation14], %s4568_s17  ;;  %s5549_s22 = sld [smem:[#allocation38_spill]] }
  0xa4   : > { %3860 = dma.hbm_to_vmem [thread:$0]  (!%p4578_p5), %s436_s6, 4096, %s438_s21, %s5548_s29, %s4478_s28, %s4478_s28, %s4479_s2  }
  0xa5   : > { %s473_s30 = scalar_lea.vmem [#allocation18], %s3245_s25 }
  0xa6   : > { %s481_s13 = sshll.u32 %s473_s30, 4  ;;  %s482_s13 = int_to_ptr.vmem [resolvable:$true] %s481_s13 }
  0xa9   : > { %s478_s16 = scalar_lea.hbm %s5549_s22, %s3699_s0  ;;  %s4334_s21 = scalar_lea.hbm %s5549_s22, 512 }
  0xaa   : > { %s479_s20 = sshll.u32 %s478_s16, 4  ;;  %s480_s20 = int_to_ptr.hbm [resolvable:$true] %s479_s20 }
  0xab   : > { %s4327_s12 = sshra.s32 %s480_s20, 4  ;;  %s4328_s12 = int_to_ptr.hbm [resolvable:$true] %s4327_s12 }
  0xac   : > { %s4329_s11 = scalar_lea.hbm %s4328_s12, 256  ;;  %p4335_p8 = scmp.lt.s32.totalorder %s4328_s12, %s5549_s22 }
  0xad   : > { %p4330_p0 = scmp.ne.s32.totalorder %s4328_s12, %s4329_s11  ;;  %p4336_p9 = scmp.lt.s32.totalorder %s4334_s21, %s4329_s11 }
  0xaf   : > { %p4332_p4 = pnand %p4330_p0, %p4591_p7  ;;  %p4337_p10 = por %p4336_p9, %p4335_p8 }
  0xb1   : > { %p4333_p6 = pneg %p4332_p4 }
  0xb3   : > { %p4338_p11 = pnand %p4337_p10, %p4333_p6 }
  0xb5   : > { %4341 = shalt.err (!%p4338_p11)
}
  0xb6   : > { %s5550_s18 = scalar_lea.sflag [#allocation17], %s4568_s17  ;;  %493 = sbr.rel (%p4688_p3) target bundleno = 1608 (0x648), region = 56 }
  0xb7   : > { %3866 = dma.hbm_to_vmem [thread:$0]  (!%p4578_p5), %s480_s20, 4096, %s482_s13, %s5550_s18, %s5543_s23, %s5543_s23, %s5542_s26  }
  0xbb   : > { %4418 = dma.done.wait (%p75_p12), [#allocation5], 512  }
  0xbc   : > { %4420 = vsyncadd (%p75_p12), [#allocation5], 4294966784  ;;  %s500_s3 = sand.u32 1, %s4674_s1   ;;  %s502_s4 = sand.u32 1, %s4447_s10  }
  0xbd   : > { %s3256_s27 = sshll.u32 %s502_s4, 4  ;;  %s501_s19 = scalar_lea.sflag [#allocation8], %s500_s3 }
  0xbe   : > { %s4789_s25 = scalar_lea.vmem [#allocation7], %s3256_s27 }
  0xbf   : > { %4422 = dma.done.wait (%p4683_p1), %s501_s19, 1280  }
  0xc0   : > { %4424 = vsyncadd (%p4683_p1), %s501_s19, 4294966016  ;;  %s3257_s17 = sshll.u32 %s502_s4, 6  ;;  %s521_s26 = scalar_lea.sflag [#allocation11], %s500_s3 }
  0xc1   : > { %s4795_s8 = scalar_lea.vmem [#allocation9], %s3257_s17  ;;  %s4797_s23 = scalar_lea.vmem [#allocation10], %s3257_s17 }
  0xc2   : > { %4426 = dma.done.wait (%p4683_p1), %s521_s26, 2048  }
  0xc3   : > { %4428 = vsyncadd (%p4683_p1), %s521_s26, 4294965248  ;;  %s4803_s0 = scalar_lea.vmem [#allocation12], %s3257_s17  ;;  %s541_s2 = scalar_lea.sflag [#allocation14], %s500_s3 }
  0xc4   : > { %s4805_s29 = scalar_lea.vmem [#allocation13], %s3257_s17 }
  0xc5   : > { %4430 = dma.done.wait (%p4683_p1), %s541_s2, 5120  }
  0xc6   : > { %4432 = vsyncadd (%p4683_p1), %s541_s2, 4294962176  ;;  %s3261_s9 = sshll.u32 %s502_s4, 8  ;;  %s561_s16 = scalar_lea.sflag [#allocation17], %s500_s3 }
  0xc7   : > { %s4811_s24 = scalar_lea.vmem [#allocation15], %s3261_s9  ;;  %s4813_s30 = scalar_lea.vmem [#allocation16], %s3257_s17 }
  0xc8   : > { %4434 = dma.done.wait (%p4683_p1), %s561_s16, 5120  }
  0xc9   : > { %4436 = vsyncadd (%p4683_p1), %s561_s16, 4294962176  ;;  %s4819_s13 = scalar_lea.vmem [#allocation18], %s3261_s9  ;;  %643 = sbr.rel (%p3228_p2) target bundleno = 211 (0xd3), region = 96 }
  0xce   : > { %v644_v0 = vld [vmem:[#allocation4] sm:$0xff]  ;;  %v645_v1 = vld [vmem:[#allocation4 + $0x8] sm:$0xff]  ;;  %v646_v2 = vld [vmem:[#allocation4 + $0x10] sm:$0xff] }
  0xcf   : > { %648 = vst [vmem:[#allocation19] sm:$0xff] %v644_v0  ;;  %v647_v3 = vld [vmem:[#allocation4 + $0x18] sm:$0xff] }
  0xd0   : > { %649 = vst [vmem:[#allocation19 + $0x8] sm:$0xff] %v645_v1 }
  0xd1   : > { %650 = vst [vmem:[#allocation19 + $0x10] sm:$0xff] %v646_v2 }
  0xd2   : > { %651 = vst [vmem:[#allocation19 + $0x18] sm:$0xff] %v647_v3 }
  0xd3 PF: > { %v4480_v8 = vmov 128.0   ;;  %v4836_v11 = vld [vmem:[%s4789_s25] sm:$0xff]  ;;  %v3709_v35 = vld [vmem:[%s4795_s8 + $0x38] sm:$0xff]  ;;  %v3707_v41 = vld [vmem:[%s4795_s8 + $0x28] sm:$0xff]  ;;  %s4952_s14 = smov 0  }
  0xd4   : > { %3947 = vrcp.f32 %v4480_v8  ;;  %5551 = vst [vmem:[#allocation29_spill] sm:$0xff] %v4836_v11  ;;  %v1342_v12 = vmul.f32 1.442695, %v4836_v11  ;;  %v3717_v36 = vld [vmem:[%s4797_s23 + $0x38] sm:$0xff]  ;;  %893 = vmatpush.bf16.msra.mxu0 %v3709_v35  ;;  %v3708_v38 = vld [vmem:[%s4795_s8 + $0x30] sm:$0xff]  ;;  %v3715_v42 = vld [vmem:[%s4797_s23 + $0x28] sm:$0xff] }
  0xd5   : > { %v3725_v37 = vld [vmem:[%s4803_s0 + $0x38] sm:$0xff]  ;;  %978 = vmatpush.bf16.msra.mxu1 %v3717_v36  ;;  %v3716_v39 = vld [vmem:[%s4797_s23 + $0x30] sm:$0xff]  ;;  %v3723_v43 = vld [vmem:[%s4803_s0 + $0x28] sm:$0xff] }
  0xd6   : > { %v4825_v5 = vld [vmem:[#allocation19] sm:$0xff]  ;;  %3949 = vpow2.f32 %v1342_v12  ;;  %1063 = vmatpush.bf16.msra.mxu2 %v3725_v37  ;;  %v3724_v40 = vld [vmem:[%s4803_s0 + $0x30] sm:$0xff]  ;;  %v3705_v47 = vld [vmem:[%s4795_s8 + $0x18] sm:$0xff] }
  0xd7   : > { %v4823_v4 = vld [vmem:[#allocation19 + $0x8] sm:$0xff]  ;;  %667 = vadd.xlane.f32.xlu0 %v4825_v5  ;;  %v3706_v44 = vld [vmem:[%s4795_s8 + $0x20] sm:$0xff]  ;;  %v3713_v48 = vld [vmem:[%s4797_s23 + $0x18] sm:$0xff] }
  0xd8   : > { %669 = vadd.xlane.f32.xlu1 %v4823_v4  ;;  %v4829_v6 = vld [vmem:[#allocation19 + $0x10] sm:$0xff]  ;;  %894 = vmatpush.bf16.msra.mxu0 %v3708_v38  ;;  %v3714_v45 = vld [vmem:[%s4797_s23 + $0x20] sm:$0xff]  ;;  %v3721_v49 = vld [vmem:[%s4803_s0 + $0x18] sm:$0xff] }
  0xd9   : > { %v4831_v7 = vld [vmem:[#allocation19 + $0x18] sm:$0xff]  ;;  %979 = vmatpush.bf16.msra.mxu1 %v3716_v39  ;;  %v3722_v46 = vld [vmem:[%s4803_s0 + $0x20] sm:$0xff]  ;;  %v3704_v56 = vld [vmem:[%s4795_s8 + $0x10] sm:$0xff] }
  0xda   : > { %v3948_v9 = vpop.eup %3947  ;;  %1064 = vmatpush.bf16.msra.mxu2 %v3724_v40  ;;  %v3712_v57 = vld [vmem:[%s4797_s23 + $0x10] sm:$0xff]  ;;  %v3703_v59 = vld [vmem:[%s4795_s8 + $0x8] sm:$0xff]  ;;  %v3702_v2 = vld [vmem:[%s4795_s8] sm:$0xff] }
  0xdb   : > { %v676_v10 = vmul.f32 128.0, %v3948_v9  ;;  %vm680_vm0 = vweird.f32 %v3948_v9  ;;  %v3720_v58 = vld [vmem:[%s4803_s0 + $0x10] sm:$0xff]  ;;  %v3711_v60 = vld [vmem:[%s4797_s23 + $0x8] sm:$0xff]  ;;  %v3710_v3 = vld [vmem:[%s4797_s23] sm:$0xff] }
  0xdc   : > { %v3950_v15 = vpop.eup %3949  ;;  %895 = vmatpush.bf16.msra.mxu0 %v3707_v41  ;;  %v3719_v61 = vld [vmem:[%s4803_s0 + $0x8] sm:$0xff]  ;;  %v3718_v8 = vld [vmem:[%s4803_s0] sm:$0xff] }
  0xdd   : > { %v677_v13 = vsub.f32 1.0, %v676_v10  ;;  %v4839_v16 = vsub.f32 0.0, %v3950_v15  ;;  %980 = vmatpush.bf16.msra.mxu1 %v3715_v42  ;;  %v759_v42 = vperm.slane %v4836_v11, 1 }
  0xde   : > { %1065 = vmatpush.bf16.msra.mxu2 %v3723_v43 }
  0xdf   : > { %673 = vadd.xlane.f32.xlu0 %v4831_v7  ;;  %v678_v14 = vmul.f32 %v3948_v9, %v677_v13  ;;  %5552 = vst [vmem:[#allocation30_spill] sm:$0xff] %v4839_v16 }
  0xe0   : > { %671 = vadd.xlane.f32.xlu1 %v4829_v6  ;;  %896 = vmatpush.bf16.msra.mxu0 %v3706_v44 }
  0xe1   : > { %v679_v17 = vadd.f32 %v3948_v9, %v678_v14  ;;  %981 = vmatpush.bf16.msra.mxu1 %v3714_v45  ;;  %v658_v45 = vlaneseq }
  0xe2   : > { %1066 = vmatpush.bf16.msra.mxu2 %v3722_v46 }
  0xe3   : > { %v4841_v18 = vsel %vm680_vm0, %v3948_v9, %v679_v17 }
  0xe4   : > { %897 = vmatpush.bf16.msra.mxu0 %v3705_v47 }
  0xe5   : > { %982 = vmatpush.bf16.msra.mxu1 %v3713_v48 }
  0xe6   : > { %1067 = vmatpush.bf16.msra.mxu2 %v3721_v49 }
  0xe8   : > { %898 = vmatpush.bf16.msra.mxu0 %v3704_v56 }
  0xe9   : > { %983 = vmatpush.bf16.msra.mxu1 %v3712_v57 }
  0xea   : > { %1068 = vmatpush.bf16.msra.mxu2 %v3720_v58 }
  0xec   : > { %899 = vmatpush.bf16.msra.mxu0 %v3703_v59 }
  0xed   : > { %984 = vmatpush.bf16.msra.mxu1 %v3711_v60  ;;  %v785_v60 = vperm.slane %v4836_v11, 4 }
  0xee   : > { %1069 = vmatpush.bf16.msra.mxu2 %v3719_v61 }
  0xf0   : > { %900 = vmatpush.bf16.msra.mxu0 %v3702_v2  ;;  %v813_v2 = vperm.slane %v4836_v11, 6 }
  0xf1   : > { %985 = vmatpush.bf16.msra.mxu1 %v3710_v3 }
  0xf2   : > { %1070 = vmatpush.bf16.msra.mxu2 %v3718_v8 }
 0x14a   : > { %v668_v20 = vpop.xlane.xlu0 %667 }
 0x14b   : > { %v670_v19 = vpop.xlane.xlu1 %669  ;;  %v682_v22 = vmul.f32 %v4841_v18, %v668_v20 }
 0x14c   : > { %v683_v21 = vmul.f32 %v4841_v18, %v670_v19 }
 0x14d   : > { %v4849_v24 = vsub.f32 %v4825_v5, %v682_v22 }
 0x14e   : > { %v4846_v23 = vsub.f32 %v4823_v4, %v683_v21 }
 0x14f   : > { %v690_v26 = vmul.f32 %v4849_v24, %v4849_v24 }
 0x150   : > { %v691_v25 = vmul.f32 %v4846_v23, %v4846_v23 }
 0x151   : > { %694 = vadd.xlane.f32.xlu2 %v690_v26 }
 0x152   : > { %696 = vadd.xlane.f32.xlu0 %v691_v25  ;;  %v674_v28 = vpop.xlane.xlu0 %673 }
 0x153   : > { %v672_v27 = vpop.xlane.xlu1 %671  ;;  %v685_v30 = vmul.f32 %v4841_v18, %v674_v28 }
 0x154   : > { %v684_v29 = vmul.f32 %v4841_v18, %v672_v27 }
 0x155   : > { %v4861_v32 = vsub.f32 %v4831_v7, %v685_v30  ;;  %v754_v30 = vperm.slane %v4836_v11, 0 }
 0x156   : > { %v4858_v31 = vsub.f32 %v4829_v6, %v684_v29 }
 0x157   : > { %v693_v34 = vmul.f32 %v4861_v32, %v4861_v32 }
 0x158   : > { %v692_v33 = vmul.f32 %v4858_v31, %v4858_v31 }
 0x159   : > { %700 = vadd.xlane.f32.xlu2 %v693_v34 }
 0x15a   : > { %698 = vadd.xlane.f32.xlu1 %v692_v33 }
 0x1c4   : > { %v695_v50 = vpop.xlane.xlu2 %694 }
 0x1c5   : > { %v697_v51 = vpop.xlane.xlu0 %696  ;;  %v702_v52 = vmul.f32 %v695_v50, %v4841_v18 }
 0x1c6   : > { %v703_v53 = vmul.f32 %v697_v51, %v4841_v18 }
 0x1c7   : > { %v706_v54 = vadd.f32 1e-05, %v702_v52 }
 0x1c8   : > { %v707_v55 = vadd.f32 1e-05, %v703_v53 }
 0x1c9   : > { %3951 = vrsqrt.f32 %v706_v54  ;;  %vm716_vm4 = vweird.f32 %v706_v54 }
 0x1ca   : > { %3953 = vrsqrt.f32 %v707_v55  ;;  %vm726_vm2 = vweird.f32 %v707_v55 }
 0x1cc   : > { %v701_v63 = vpop.xlane.xlu2 %700 }
 0x1cd   : > { %v699_v62 = vpop.xlane.xlu1 %698  ;;  %v705_v1 = vmul.f32 %v701_v63, %v4841_v18 }
 0x1ce   : > { %v704_v0 = vmul.f32 %v699_v62, %v4841_v18 }
 0x1cf   : > { %v3952_v9 = vpop.eup %3951  ;;  %v709_v12 = vadd.f32 1e-05, %v705_v1 }
 0x1d0   : > { %v708_v10 = vadd.f32 1e-05, %v704_v0  ;;  %v3954_v13 = vpop.eup %3953  ;;  %v711_v14 = vmul.f32 %v3952_v9, %v706_v54  ;;  %vm717_vm1 = vweird.f32 %v3952_v9 }
 0x1d1   : > { %v721_v15 = vmul.f32 %v3954_v13, %v707_v55  ;;  %vm727_vm3 = vweird.f32 %v3954_v13  ;;  %vm718_vm5 = vmor %vm716_vm4, %vm717_vm1  ;;  %vm746_vm11 = vweird.f32 %v709_v12  ;;  %v4903_v55 = vld [vmem:[%s4789_s25 + $0x8] sm:$0xff] }
 0x1d2   : > { %3955 = vrsqrt.f32 %v708_v10  ;;  %v712_v17 = vmul.f32 %v3952_v9, %v711_v14  ;;  %vm728_vm6 = vmor %vm726_vm2, %vm727_vm3  ;;  %vm736_vm7 = vweird.f32 %v708_v10  ;;  %v790_v61 = vperm.slane %v4903_v55, 3 }
 0x1d3   : > { %3957 = vrsqrt.f32 %v709_v12  ;;  %v722_v19 = vmul.f32 %v3954_v13, %v721_v15  ;;  %v804_v62 = vperm.slane %v4903_v55, 4  ;;  %v818_v1 = vperm.slane %v4903_v55, 5 }
 0x1d4   : > { %v713_v20 = vmul.f32 0.5, %v712_v17 }
 0x1d5   : > { %v723_v21 = vmul.f32 0.5, %v722_v19 }
 0x1d6   : > { %v714_v22 = vsub.f32 1.5, %v713_v20 }
 0x1d7   : > { %v724_v26 = vsub.f32 1.5, %v723_v21 }
 0x1d8   : > { %v3956_v25 = vpop.eup %3955  ;;  %v715_v28 = vmul.f32 %v3952_v9, %v714_v22 }
 0x1d9   : > { %v3958_v27 = vpop.eup %3957  ;;  %v731_v29 = vmul.f32 %v3956_v25, %v708_v10  ;;  %v725_v33 = vmul.f32 %v3954_v13, %v724_v26  ;;  %vm737_vm8 = vweird.f32 %v3956_v25 }
 0x1da   : > { %v741_v34 = vmul.f32 %v3958_v27, %v709_v12  ;;  %v719_v35 = vsel %vm718_vm5, %v3952_v9, %v715_v28  ;;  %vm747_vm9 = vweird.f32 %v3958_v27  ;;  %vm738_vm10 = vmor %vm736_vm7, %vm737_vm8 }
 0x1db   : > { %v732_v36 = vmul.f32 %v3956_v25, %v731_v29  ;;  %v750_v37 = vmul.f32 %v719_v35, %v4849_v24  ;;  %v729_v38 = vsel %vm728_vm6, %v3954_v13, %v725_v33  ;;  %vm748_vm12 = vmor %vm746_vm11, %vm747_vm9 }
 0x1dc   : > { %v742_v39 = vmul.f32 %v3958_v27, %v741_v34  ;;  %v751_v40 = vmul.f32 %v729_v38, %v4846_v23  ;;  %v4899_v23 = vshrl.u32 %v658_v45, 7 }
 0x1dd   : > { %v733_v41 = vmul.f32 0.5, %v732_v36  ;;  %v755_v43 = vmul.f32 %v754_v30, %v750_v37 }
 0x1de   : > { %v743_v44 = vmul.f32 0.5, %v742_v39  ;;  %v756_v46 = vmul.f32 %v754_v30, %v751_v40  ;;  %5553 = vst [vmem:[#allocation31_spill] sm:$0xff] %v4899_v23  ;;  %vm768_vm13 = vcmp.lt.s32.totalorder %v4899_v23, 1  ;;  %vm663_vm14 = vcmp.eq.s32.totalorder %v4899_v23, 0 }
 0x1df   : > { %v734_v47 = vsub.f32 1.5, %v733_v41  ;;  %v760_v50 = vadd.f32 %v759_v42, %v755_v43 }
 0x1e0   : > { %v744_v48 = vsub.f32 1.5, %v743_v44  ;;  %v761_v24 = vadd.f32 %v759_v42, %v756_v46 }
 0x1e1   : > { %v735_v49 = vmul.f32 %v3956_v25, %v734_v47  ;;  %v764_v56 = vrot.slane %v760_v50, 7  ;;  %v786_v12 = vmul.f32 %v785_v60, %v760_v50  ;;  %v814_v20 = vmul.f32 %v813_v2, %v760_v50 }
 0x1e2   : > { %v745_v51 = vmul.f32 %v3958_v27, %v744_v48  ;;  %v765_v57 = vrot.slane %v761_v24, 7  ;;  %v787_v17 = vmul.f32 %v785_v60, %v761_v24 }
 0x1e3   : > { %v739_v53 = vsel %vm738_vm10, %v3956_v25, %v735_v49  ;;  %v815_v25 = vmul.f32 %v813_v2, %v761_v24 }
 0x1e4   : > { %v749_v52 = vsel %vm748_vm12, %v3958_v27, %v745_v51  ;;  %v752_v59 = vmul.f32 %v739_v53, %v4858_v31  ;;  %v771_v0 = vsel %vm768_vm13, %v764_v56, %v765_v57 }
 0x1e5   : > { %v753_v54 = vmul.f32 %v749_v52, %v4861_v32  ;;  %v799_v32 = vperm.slane %v4836_v11, 5  ;;  %v792_v8 = vmul.f32 %v790_v61, %v771_v0  ;;  %v806_v9 = vmul.f32 %v804_v62, %v771_v0 }
 0x1e6   : > { %v757_v31 = vmul.f32 %v754_v30, %v752_v59  ;;  %v820_v14 = vmul.f32 %v818_v1, %v771_v0 }
 0x1e7   : > { %v758_v58 = vmul.f32 %v754_v30, %v753_v54  ;;  %v800_v13 = vmul.f32 %v799_v32, %v760_v50  ;;  %v801_v19 = vmul.f32 %v799_v32, %v761_v24  ;;  %v796_v27 = vadd.f32 %v792_v8, %v787_v17 }
 0x1e8   : > { %v762_v29 = vadd.f32 %v759_v42, %v757_v31  ;;  %v824_v35 = vadd.f32 %v820_v14, %v815_v25 }
 0x1e9   : > { %v763_v63 = vadd.f32 %v759_v42, %v758_v58  ;;  %v810_v28 = vadd.f32 %v806_v9, %v801_v19 }
 0x1ea   : > { %v766_v39 = vrot.slane %v762_v29, 7  ;;  %v788_v48 = vmul.f32 %v785_v60, %v762_v29  ;;  %v802_v50 = vmul.f32 %v799_v32, %v762_v29  ;;  %v816_v51 = vmul.f32 %v813_v2, %v762_v29 }
 0x1eb   : > { %v767_v3 = vrot.slane %v763_v63, 7  ;;  %v789_v49 = vmul.f32 %v785_v60, %v763_v63  ;;  %v803_v24 = vmul.f32 %v799_v32, %v763_v63  ;;  %v817_v52 = vmul.f32 %v813_v2, %v763_v63 }
 0x1ec   : > { %v770_v41 = vsel %vm768_vm13, %v765_v57, %v766_v39 }
 0x1ed   : > { %v772_v10 = vsel %vm768_vm13, %v767_v3, %v764_v56  ;;  %v769_v40 = vsel %vm768_vm13, %v766_v39, %v767_v3  ;;  %v793_v43 = vmul.f32 %v790_v61, %v770_v41  ;;  %v807_v42 = vmul.f32 %v804_v62, %v770_v41 }
 0x1ee   : > { %v781_v15 = vsel %vm663_vm14, 0.0, %v772_v10  ;;  %v794_v44 = vmul.f32 %v790_v61, %v769_v40  ;;  %v808_v45 = vmul.f32 %v804_v62, %v769_v40  ;;  %v821_v46 = vmul.f32 %v818_v1, %v770_v41 }
 0x1ef   : > { %v791_v21 = vmul.f32 %v790_v61, %v781_v15  ;;  %v805_v22 = vmul.f32 %v804_v62, %v781_v15  ;;  %v819_v26 = vmul.f32 %v818_v1, %v781_v15  ;;  %v822_v47 = vmul.f32 %v818_v1, %v769_v40 }
 0x1f0   : > { %v797_v53 = vadd.f32 %v793_v43, %v788_v48  ;;  %v798_v54 = vadd.f32 %v794_v44, %v789_v49  ;;  %v811_v56 = vadd.f32 %v807_v42, %v802_v50  ;;  %v812_v58 = vadd.f32 %v808_v45, %v803_v24 }
 0x1f1   : > { %v795_v30 = vadd.f32 %v791_v21, %v786_v12  ;;  %v809_v33 = vadd.f32 %v805_v22, %v800_v13  ;;  %v823_v34 = vadd.f32 %v819_v26, %v814_v20  ;;  %v825_v59 = vadd.f32 %v821_v46, %v816_v51 }
 0x1f2   : > { %v826_v0 = vadd.f32 %v822_v47, %v817_v52  ;;  %v844_v3 = vpack.c.bf16 %v798_v54, %v797_v53  ;;  %v929_v57 = vpack.c.bf16 %v812_v58, %v811_v56 }
 0x1f3   : > { %v843_v36 = vpack.c.bf16 %v796_v27, %v795_v30  ;;  %v928_v37 = vpack.c.bf16 %v810_v28, %v809_v33  ;;  %v1013_v38 = vpack.c.bf16 %v824_v35, %v823_v34 }
 0x1f4   : > { %v1014_v31 = vpack.c.bf16 %v826_v0, %v825_v59 }
 0x1f5   : > { %901 = vmatmul.bf16.vlgmr.msra.gmra.mxu0 %v843_v36  ;;  %986 = vmatmul.bf16.vlgmr.msra.gmra.mxu1 %v928_v37 }
 0x1f6   : > { %1071 = vmatmul.bf16.vlgmr.msra.gmra.mxu2 %v1013_v38 }
 0x205   : > { %906 = vmatmul.bf16.gmra.mxu0 %v844_v3  ;;  %991 = vmatmul.bf16.gmra.mxu1 %v929_v57 }
 0x206   : > { %1076 = vmatmul.bf16.gmra.mxu2 %v1014_v31 }
 0x272   : > { %v902_v61 = vpop.f32.mrf.mxu0  ;;  %v987_v62 = vpop.f32.mrf.mxu1 }
 0x273   : > { %v1162_v1 = vrot.slane %v902_v61, 1  ;;  %v1163_v60 = vrot.slane %v902_v61, 2  ;;  %v1164_v8 = vrot.slane %v902_v61, 3  ;;  %1218 = vst [vmem:[#allocation2] sm:$0x1] %v902_v61  ;;  %v1165_v32 = vrot.slane %v902_v61, 4 }
 0x274   : > { %1310 = vst [vmem:[#allocation3] sm:$0x1] %v987_v62  ;;  %v1166_v63 = vrot.slane %v902_v61, 5  ;;  %v1167_v2 = vrot.slane %v902_v61, 6  ;;  %v1168_v9 = vrot.slane %v902_v61, 7  ;;  %v1254_v10 = vrot.slane %v987_v62, 1 }
 0x275   : > { %1219 = vst [vmem:[#allocation2 + $0x1] sm:$0x1] %v1162_v1  ;;  %v1255_v12 = vrot.slane %v987_v62, 2  ;;  %v1256_v14 = vrot.slane %v987_v62, 3  ;;  %v1257_v17 = vrot.slane %v987_v62, 4  ;;  %v1258_v19 = vrot.slane %v987_v62, 5 }
 0x276   : > { %1220 = vst [vmem:[#allocation2 + $0x2] sm:$0x1] %v1163_v60  ;;  %v1259_v20 = vrot.slane %v987_v62, 6  ;;  %v1260_v22 = vrot.slane %v987_v62, 7 }
 0x277   : > { %1221 = vst [vmem:[#allocation2 + $0x3] sm:$0x1] %v1164_v8 }
 0x278   : > { %1222 = vst [vmem:[#allocation2 + $0x4] sm:$0x1] %v1165_v32 }
 0x279   : > { %1223 = vst [vmem:[#allocation2 + $0x5] sm:$0x1] %v1166_v63  ;;  %v1072_v13 = vpop.f32.mrf.mxu2 }
 0x27a   : > { %1224 = vst [vmem:[#allocation2 + $0x6] sm:$0x1] %v1167_v2  ;;  %v3361_v15 = vmul.f32 -1.442695, %v1072_v13  ;;  %v904_v21 = vpop.f32.mrf.mxu0  ;;  %v989_v37 = vpop.f32.mrf.mxu1 }
 0x27b   : > { %1225 = vst [vmem:[#allocation2 + $0x7] sm:$0x1] %v1168_v9  ;;  %v1169_v25 = vrot.slane %v904_v21, 1  ;;  %v1170_v26 = vrot.slane %v904_v21, 2  ;;  %v1171_v29 = vrot.slane %v904_v21, 3  ;;  %v1172_v34 = vrot.slane %v904_v21, 4 }
 0x27c   : > { %1311 = vst [vmem:[#allocation3 + $0x1] sm:$0x1] %v1254_v10  ;;  %3959 = vpow2.f32 %v3361_v15  ;;  %v1173_v35 = vrot.slane %v904_v21, 5  ;;  %v1174_v36 = vrot.slane %v904_v21, 6  ;;  %v1175_v38 = vrot.slane %v904_v21, 7 }
 0x27d   : > { %1312 = vst [vmem:[#allocation3 + $0x2] sm:$0x1] %v1255_v12  ;;  %v1261_v39 = vrot.slane %v989_v37, 1  ;;  %v1262_v40 = vrot.slane %v989_v37, 2  ;;  %v1263_v44 = vrot.slane %v989_v37, 3  ;;  %v1264_v46 = vrot.slane %v989_v37, 4 }
 0x27e   : > { %1313 = vst [vmem:[#allocation3 + $0x3] sm:$0x1] %v1256_v14  ;;  %v1265_v49 = vrot.slane %v989_v37, 5  ;;  %v1266_v50 = vrot.slane %v989_v37, 6  ;;  %v1267_v52 = vrot.slane %v989_v37, 7 }
 0x27f   : > { %1314 = vst [vmem:[#allocation3 + $0x4] sm:$0x1] %v1257_v17 }
 0x280   : > { %1315 = vst [vmem:[#allocation3 + $0x5] sm:$0x1] %v1258_v19 }
 0x281   : > { %1316 = vst [vmem:[#allocation3 + $0x6] sm:$0x1] %v1259_v20  ;;  %v1074_v27 = vpop.f32.mrf.mxu2 }
 0x282   : > { %v3960_v28 = vpop.eup %3959  ;;  %1317 = vst [vmem:[#allocation3 + $0x7] sm:$0x1] %v1260_v22  ;;  %v3362_v30 = vmul.f32 -1.442695, %v1074_v27  ;;  %v907_v24 = vpop.f32.mrf.mxu0 }
 0x283   : > { %v1094_v33 = vadd.f32 1.0, %v3960_v28  ;;  %1226 = vst [vmem:[#allocation2 + $0x8] sm:$0x1] %v904_v21  ;;  %v1176_v58 = vrot.slane %v907_v24, 1  ;;  %v1177_v59 = vrot.slane %v907_v24, 2  ;;  %v1178_v57 = vrot.slane %v907_v24, 3  ;;  %v992_v12 = vpop.f32.mrf.mxu1 }
 0x284   : > { %1227 = vst [vmem:[#allocation2 + $0x9] sm:$0x1] %v1169_v25  ;;  %3961 = vpow2.f32 %v3362_v30  ;;  %v1179_v31 = vrot.slane %v907_v24, 4  ;;  %v1180_v2 = vrot.slane %v907_v24, 5  ;;  %v1181_v10 = vrot.slane %v907_v24, 6 }
 0x285   : > { %3963 = vrcp.f32 %v1094_v33  ;;  %1228 = vst [vmem:[#allocation2 + $0xa] sm:$0x1] %v1170_v26  ;;  %v1109_v53 = vand.u32 2147483648, %v1094_v33  ;;  %v1107_v56 = vand.u32 2147483647, %v1094_v33  ;;  %vm1103_vm0 = vweird.f32 %v1094_v33 }
 0x286   : > { %1229 = vst [vmem:[#allocation2 + $0xb] sm:$0x1] %v1171_v29  ;;  %v1182_v14 = vrot.slane %v907_v24, 7  ;;  %v1268_v20 = vrot.slane %v992_v12, 1  ;;  %v1269_v21 = vrot.slane %v992_v12, 2  ;;  %v1270_v25 = vrot.slane %v992_v12, 3 }
 0x287   : > { %1230 = vst [vmem:[#allocation2 + $0xc] sm:$0x1] %v1172_v34  ;;  %v1110_v1 = vor.u32 1.1754944e-38, %v1109_v53  ;;  %vm1108_vm2 = vcmp.eq.f32.partialorder %v1107_v56, 8.507059e+37  ;;  %v1271_v28 = vrot.slane %v992_v12, 4 }
 0x288   : > { %1231 = vst [vmem:[#allocation2 + $0xd] sm:$0x1] %v1173_v35 }
 0x289   : > { %1232 = vst [vmem:[#allocation2 + $0xe] sm:$0x1] %v1174_v36  ;;  %v1077_v41 = vpop.f32.mrf.mxu2  ;;  %v1273_v36 = vrot.slane %v992_v12, 6 }
 0x28a   : > { %v3962_v43 = vpop.eup %3961  ;;  %1233 = vst [vmem:[#allocation2 + $0xf] sm:$0x1] %v1175_v38  ;;  %v3363_v42 = vmul.f32 -1.442695, %v1077_v41 }
 0x28b   : > { %v3964_v45 = vpop.eup %3963  ;;  %1318 = vst [vmem:[#allocation3 + $0x8] sm:$0x1] %v989_v37  ;;  %v4924_v47 = vadd.f32 1.0, %v3962_v43  ;;  %v909_v37 = vpop.f32.mrf.mxu0 }
 0x28c   : > { %v1099_v48 = vmul.f32 %v3964_v45, %v1094_v33  ;;  %1319 = vst [vmem:[#allocation3 + $0x9] sm:$0x1] %v1261_v39  ;;  %3965 = vpow2.f32 %v3363_v42  ;;  %vm1104_vm15 = vweird.f32 %v3964_v45  ;;  %v1272_v33 = vrot.slane %v992_v12, 5 }
 0x28d   : > { %1320 = vst [vmem:[#allocation3 + $0xa] sm:$0x1] %v1262_v40  ;;  %3967 = vrcp.f32 %v4924_v47  ;;  %vm1105_vm1 = vmor %vm1103_vm0, %vm1104_vm15  ;;  %v1124_v15 = vand.u32 2147483648, %v4924_v47  ;;  %v1122_v19 = vand.u32 2147483647, %v4924_v47  ;;  %vm1118_vm4 = vweird.f32 %v4924_v47 }
 0x28e   : > { %v1100_v51 = vsub.f32 1.0, %v1099_v48  ;;  %1321 = vst [vmem:[#allocation3 + $0xb] sm:$0x1] %v1263_v44  ;;  %v1274_v39 = vrot.slane %v992_v12, 7  ;;  %v1183_v42 = vrot.slane %v909_v37, 1  ;;  %v1188_v53 = vrot.slane %v909_v37, 6 }
 0x28f   : > { %1322 = vst [vmem:[#allocation3 + $0xc] sm:$0x1] %v1264_v46  ;;  %v1125_v27 = vor.u32 1.1754944e-38, %v1124_v15  ;;  %vm1123_vm6 = vcmp.eq.f32.partialorder %v1122_v19, 8.507059e+37  ;;  %v1189_v56 = vrot.slane %v909_v37, 7  ;;  %v4950_v15 = vmov 0.0  }
 0x290   : > { %v1101_v54 = vmul.f32 %v3964_v45, %v1100_v51  ;;  %1323 = vst [vmem:[#allocation3 + $0xd] sm:$0x1] %v1265_v49  ;;  %v1186_v49 = vrot.slane %v909_v37, 4 }
 0x291   : > { %1324 = vst [vmem:[#allocation3 + $0xe] sm:$0x1] %v1266_v50  ;;  %v1079_v61 = vpop.f32.mrf.mxu2 }
 0x292   : > { %v3966_v0 = vpop.eup %3965  ;;  %v1102_v3 = vadd.f32 %v3964_v45, %v1101_v54  ;;  %1325 = vst [vmem:[#allocation3 + $0xf] sm:$0x1] %v1267_v52  ;;  %v3364_v8 = vmul.f32 -1.442695, %v1079_v61  ;;  %v994_v54 = vpop.f32.mrf.mxu1 }
 0x293   : > { %v3968_v62 = vpop.eup %3967  ;;  %1234 = vst [vmem:[#allocation2 + $0x10] sm:$0x1] %v907_v24  ;;  %v4927_v60 = vadd.f32 1.0, %v3966_v0  ;;  %v1187_v24 = vrot.slane %v909_v37, 5 }
 0x294   : > { %v1106_v32 = vsel %vm1105_vm1, %v3964_v45, %v1102_v3  ;;  %v1114_v63 = vmul.f32 %v3968_v62, %v4924_v47  ;;  %1235 = vst [vmem:[#allocation2 + $0x11] sm:$0x1] %v1176_v58  ;;  %vm1119_vm3 = vweird.f32 %v3968_v62  ;;  %v1184_v45 = vrot.slane %v909_v37, 2 }
 0x295   : > { %v4930_v9 = vsel %vm1108_vm2, %v1110_v1, %v1106_v32  ;;  %1236 = vst [vmem:[#allocation2 + $0x12] sm:$0x1] %v1177_v59  ;;  %3969 = vrcp.f32 %v4927_v60  ;;  %vm1120_vm5 = vmor %vm1118_vm4, %vm1119_vm3  ;;  %v1139_v41 = vand.u32 2147483648, %v4927_v60  ;;  %v1137_v44 = vand.u32 2147483647, %v4927_v60 }
 0x296   : > { %v1115_v13 = vsub.f32 1.0, %v1114_v63  ;;  %1237 = vst [vmem:[#allocation2 + $0x13] sm:$0x1] %v1178_v57  ;;  %3971 = vpow2.f32 %v3364_v8  ;;  %vm1133_vm8 = vweird.f32 %v4927_v60  ;;  %v1185_v47 = vrot.slane %v909_v37, 3 }
 0x297   : > { %1238 = vst [vmem:[#allocation2 + $0x14] sm:$0x1] %v1179_v31  ;;  %v1140_v48 = vor.u32 1.1754944e-38, %v1139_v41  ;;  %vm1138_vm10 = vcmp.eq.f32.partialorder %v1137_v44, 8.507059e+37  ;;  %v1275_v59 = vrot.slane %v994_v54, 1  ;;  %v1276_v3 = vrot.slane %v994_v54, 2 }
 0x298   : > { %v1116_v17 = vmul.f32 %v3968_v62, %v1115_v13  ;;  %1239 = vst [vmem:[#allocation2 + $0x15] sm:$0x1] %v1180_v2  ;;  %v1277_v31 = vrot.slane %v994_v54, 3  ;;  %v1278_v1 = vrot.slane %v994_v54, 4  ;;  %v1280_v32 = vrot.slane %v994_v54, 6 }
 0x299   : > { %1240 = vst [vmem:[#allocation2 + $0x16] sm:$0x1] %v1181_v10  ;;  %v1281_v2 = vrot.slane %v994_v54, 7  ;;  %v4946_v13 = vmov -1e+38  }
 0x29a   : > { %v1117_v22 = vadd.f32 %v3968_v62, %v1116_v17  ;;  %1241 = vst [vmem:[#allocation2 + $0x17] sm:$0x1] %v1182_v14  ;;  %v4948_v14 = vmov 0.0  }
 0x29b   : > { %v3970_v26 = vpop.eup %3969  ;;  %1326 = vst [vmem:[#allocation3 + $0x10] sm:$0x1] %v992_v12 }
 0x29c   : > { %v3972_v29 = vpop.eup %3971  ;;  %v1121_v30 = vsel %vm1120_vm5, %v3968_v62, %v1117_v22  ;;  %1327 = vst [vmem:[#allocation3 + $0x11] sm:$0x1] %v1268_v20  ;;  %v1129_v34 = vmul.f32 %v3970_v26, %v4927_v60  ;;  %vm1134_vm7 = vweird.f32 %v3970_v26  ;;  %v1279_v60 = vrot.slane %v994_v54, 5 }
 0x29d   : > { %v4937_v35 = vsel %vm1123_vm6, %v1125_v27, %v1121_v30  ;;  %1328 = vst [vmem:[#allocation3 + $0x12] sm:$0x1] %v1269_v21  ;;  %v1097_v38 = vadd.f32 1.0, %v3972_v29  ;;  %vm1135_vm9 = vmor %vm1133_vm8, %vm1134_vm7 }
 0x29e   : > { %1329 = vst [vmem:[#allocation3 + $0x13] sm:$0x1] %v1270_v25  ;;  %v1130_v40 = vsub.f32 1.0, %v1129_v34 }
 0x29f   : > { %1330 = vst [vmem:[#allocation3 + $0x14] sm:$0x1] %v1271_v28  ;;  %3973 = vrcp.f32 %v1097_v38  ;;  %v1154_v57 = vand.u32 2147483648, %v1097_v38  ;;  %v1152_v62 = vand.u32 2147483647, %v1097_v38  ;;  %vm1148_vm12 = vweird.f32 %v1097_v38 }
 0x2a0   : > { %1331 = vst [vmem:[#allocation3 + $0x15] sm:$0x1] %v1272_v33  ;;  %v1131_v43 = vmul.f32 %v3970_v26, %v1130_v40 }
 0x2a1   : > { %1332 = vst [vmem:[#allocation3 + $0x16] sm:$0x1] %v1273_v36  ;;  %v1155_v63 = vor.u32 1.1754944e-38, %v1154_v57  ;;  %vm1153_vm0 = vcmp.eq.f32.partialorder %v1152_v62, 8.507059e+37 }
 0x2a2   : > { %1333 = vst [vmem:[#allocation3 + $0x17] sm:$0x1] %v1274_v39  ;;  %v1132_v46 = vadd.f32 %v3970_v26, %v1131_v43 }
 0x2a3   : > { %1242 = vst [vmem:[#allocation2 + $0x18] sm:$0x1] %v909_v37 }
 0x2a4   : > { %v1136_v50 = vsel %vm1135_vm9, %v3970_v26, %v1132_v46  ;;  %1243 = vst [vmem:[#allocation2 + $0x19] sm:$0x1] %v1183_v42 }
 0x2a5   : > { %v3974_v51 = vpop.eup %3973  ;;  %v4942_v52 = vsel %vm1138_vm10, %v1140_v48, %v1136_v50  ;;  %1244 = vst [vmem:[#allocation2 + $0x1a] sm:$0x1] %v1184_v45 }
 0x2a6   : > { %1245 = vst [vmem:[#allocation2 + $0x1b] sm:$0x1] %v1185_v47  ;;  %v1144_v58 = vmul.f32 %v3974_v51, %v1097_v38  ;;  %vm1149_vm11 = vweird.f32 %v3974_v51 }
 0x2a7   : > { %1246 = vst [vmem:[#allocation2 + $0x1c] sm:$0x1] %v1186_v49  ;;  %vm1150_vm15 = vmor %vm1148_vm12, %vm1149_vm11 }
 0x2a8   : > { %1247 = vst [vmem:[#allocation2 + $0x1d] sm:$0x1] %v1187_v24  ;;  %v1145_v0 = vsub.f32 1.0, %v1144_v58 }
 0x2a9   : > { %1248 = vst [vmem:[#allocation2 + $0x1e] sm:$0x1] %v1188_v53 }
 0x2aa   : > { %1249 = vst [vmem:[#allocation2 + $0x1f] sm:$0x1] %v1189_v56  ;;  %v1146_v61 = vmul.f32 %v3974_v51, %v1145_v0 }
 0x2ab   : > { %1334 = vst [vmem:[#allocation3 + $0x18] sm:$0x1] %v994_v54 }
 0x2ac   : > { %1335 = vst [vmem:[#allocation3 + $0x19] sm:$0x1] %v1275_v59  ;;  %v1147_v8 = vadd.f32 %v3974_v51, %v1146_v61 }
 0x2ad   : > { %1336 = vst [vmem:[#allocation3 + $0x1a] sm:$0x1] %v1276_v3 }
 0x2ae   : > { %1337 = vst [vmem:[#allocation3 + $0x1b] sm:$0x1] %v1277_v31  ;;  %v1151_v10 = vsel %vm1150_vm15, %v3974_v51, %v1147_v8 }
 0x2af   : > { %1338 = vst [vmem:[#allocation3 + $0x1c] sm:$0x1] %v1278_v1  ;;  %v4944_v12 = vsel %vm1153_vm0, %v1155_v63, %v1151_v10 }
 0x2b0   : > { %1339 = vst [vmem:[#allocation3 + $0x1d] sm:$0x1] %v1279_v60 }
 0x2b1   : > { %1340 = vst [vmem:[#allocation3 + $0x1e] sm:$0x1] %v1280_v32 }
 0x2b2   : > { %1341 = vst [vmem:[#allocation3 + $0x1f] sm:$0x1] %v1281_v2 }
 0x2b3 LB: >> { %v5554_v16 = vld [vmem:[#allocation30_spill] sm:$0xff]  ;;  %s3365_s20 = sshll.u32 %s4471_s14, 3  ;;  %s1350_s14 = sadd.s32 1, %s4471_s14   ;;  %v4459_v13 = vphi %v4946_v13, %v5558_v13   ;;  %s4471_s14 = sphi %s4952_s14, %s1350_s14   ;;  %v4467_v15 = vphi %v4950_v15, %v1823_v15   ;;  %v4463_v14 = vphi %v4948_v14, %v1828_v14  }
 0x2b4   : >> { %v1403_v17 = vadd.f32 %v4459_v13, %v5554_v16  ;;  %s4971_s12 = scalar_lea.vmem [#allocation2], %s3365_s20  ;;  %s5035_s11 = scalar_lea.vmem [#allocation3], %s3365_s20 }
 0x2b5   : >> { %v3975_v19 = vld [vmem:[%s4971_s12] ss:$0 sm:$0xff]  ;;  %v4975_v20 = vld [vmem:[%s4971_s12 + $0x1] sm:$0x1]  ;;  %v4978_v21 = vld [vmem:[%s4971_s12 + $0x2] sm:$0x1] }
 0x2b6   : >> { %v1430_v22 = vadd.f32 %v4975_v20, %v4903_v55  ;;  %v1407_v25 = vmax.f32 %v1403_v17, %v3975_v19  ;;  %v3976_v26 = vld [vmem:[%s4971_s12 + $0x1] ss:$0 sm:$0xff]  ;;  %v1487_v27 = vadd.f32 %v4978_v21, %v4903_v55  ;;  %v4986_v28 = vld [vmem:[%s4971_s12 + $0x3] sm:$0x1]  ;;  %v4990_v33 = vld [vmem:[%s4971_s12 + $0x4] sm:$0x1] }
 0x2b7   : >> { %v3977_v38 = vld [vmem:[%s4971_s12 + $0x2] ss:$0 sm:$0xff]  ;;  %v1544_v40 = vadd.f32 %v4986_v28, %v4903_v55  ;;  %v1601_v41 = vadd.f32 %v4990_v33, %v4903_v55  ;;  %v4999_v45 = vld [vmem:[%s4971_s12] sm:$0x1]  ;;  %v3978_v50 = vld [vmem:[%s4971_s12 + $0x3] ss:$0 sm:$0xff] }
 0x2b8   : >> { %v1408_v29 = vsub.f32 %v1403_v17, %v1407_v25  ;;  %1412 = vst [vmem:[#allocation1] sm:$0xff] %v1407_v25  ;;  %v1460_v30 = vadd.f32 %v1407_v25, %v5554_v16  ;;  %v1432_v34 = vrot.slane %v1430_v22, 1  ;;  %v1489_v36 = vrot.slane %v1487_v27, 1  ;;  %v5003_v24 = vld [vmem:[%s4971_s12 + $0x5] sm:$0x1]  ;;  %p1347_p5 = scmp.ge.s32.totalorder %s1350_s14, 4  }
 0x2b9   : >> { %v1546_v51 = vrot.slane %v1544_v40, 1  ;;  %v1603_v59 = vrot.slane %v1601_v41, 1  ;;  %v5009_v1 = vadd.f32 %v5003_v24, %v4903_v55  ;;  %v3979_v8 = vld [vmem:[%s4971_s12 + $0x4] ss:$0 sm:$0xff]  ;;  %s4481_s21 = smov (%p1347_p5), [#allocation19]   ;;  %s5561_s3 = sld [smem:[#allocation39_spill]] (%p1347_p5) }
 0x2ba   : >> { %v1464_v37 = vmax.f32 %v1460_v30, %v3976_v26  ;;  %v1434_v39 = vmax.f32 %v1407_v25, %v1432_v34  ;;  %v1409_v43 = vmul.f32 1.442695, %v1408_v29  ;;  %s2991_s6 = sshll.u32 (%p1347_p5), %s4481_s21, 4  ;;  %p3870_p7 = scmp.eq.s32.totalorder (%p1347_p5), %s4674_s1, 1  ;;  %s2992_s6 = int_to_ptr.vmem [resolvable:$true] %s2991_s6 }
 0x2bb   : > { %s4482_s27 = smov (%p1347_p5), 128   ;;  %s4483_s19 = smov (%p1347_p5), 8  }
 0x2bc   : >> { %v1465_v44 = vsub.f32 %v1460_v30, %v1464_v37  ;;  %v1517_v42 = vadd.f32 %v1464_v37, %v5554_v16  ;;  %v1435_v46 = vsub.f32 %v1407_v25, %v1434_v39  ;;  %v1439_v47 = vrot.slane %v1434_v39, 7 }
 0x2bd   : >> { %v1491_v48 = vmax.f32 %v1464_v37, %v1489_v36  ;;  %3983 = vpow2.f32 %v1409_v43  ;;  %v1660_v36 = vrot.slane %v5009_v1, 1 }
 0x2be   : >> { %v1521_v49 = vmax.f32 %v1517_v42, %v3977_v38  ;;  %v1466_v54 = vmul.f32 1.442695, %v1465_v44  ;;  %v1441_v56 = vsub.f32 %v1430_v22, %v1439_v47  ;;  %v1436_v31 = vmul.f32 1.442695, %v1435_v46  ;;  %v3980_v46 = vld [vmem:[%s4971_s12 + $0x5] ss:$0 sm:$0xff] }
 0x2bf   : >> { %v1414_v53 = vld [vmem:[#allocation1 + $0x7] ss:$9 sm:$0xff]  ;;  %v1496_v58 = vrot.slane %v1491_v48, 7  ;;  %v1492_v63 = vsub.f32 %v1464_v37, %v1491_v48  ;;  %s2993_s4 = sshll.u32 (%p1347_p5), %s5561_s3, 4  ;;  %s2994_s4 = int_to_ptr.hbm [resolvable:$true] %s2993_s4 }
 0x2c0   : >> { %1469 = vst [vmem:[#allocation1] sm:$0xff] %v1464_v37  ;;  %v1522_v0 = vsub.f32 %v1517_v42, %v1521_v49  ;;  %v1574_v3 = vadd.f32 %v1521_v49, %v5554_v16  ;;  %v1416_v57 = vsub.f32 %v4999_v45, %v1414_v53  ;;  %v1442_v61 = vmul.f32 1.442695, %v1441_v56 }
 0x2c1   : >> { %v1498_v62 = vsub.f32 %v1487_v27, %v1496_v58  ;;  %v1548_v2 = vmax.f32 %v1521_v49, %v1546_v51  ;;  %3985 = vpow2.f32 %v1466_v54  ;;  %v1493_v34 = vmul.f32 1.442695, %v1492_v63 }
 0x2c2   : >> { %v5011_v60 = vmax.f32 %v1574_v3, %v3978_v50  ;;  %v1417_v32 = vmul.f32 1.442695, %v1416_v57  ;;  %v1523_v10 = vmul.f32 1.442695, %v1522_v0  ;;  %3987 = vpow2.f32 %v1442_v61  ;;  %v5038_v50 = vld [vmem:[%s5035_s11] sm:$0x1] }
 0x2c3   : >> { %v1499_v22 = vmul.f32 1.442695, %v1498_v62  ;;  %v1549_v25 = vsub.f32 %v1521_v49, %v1548_v2  ;;  %v1553_v26 = vrot.slane %v1548_v2, 7  ;;  %v3984_v29 = vpop.eup %3983 }
 0x2c4   : >> { %v1579_v17 = vsub.f32 %v1574_v3, %v5011_v60  ;;  %v5017_v19 = vadd.f32 %v5011_v60, %v5554_v16  ;;  %3989 = vpow2.f32 %v1417_v32  ;;  %v1605_v27 = vmax.f32 %v5011_v60, %v1603_v59 }
 0x2c5   : >> { %3991 = vpow2.f32 %v1436_v31  ;;  %v1555_v39 = vsub.f32 %v1544_v40, %v1553_v26  ;;  %v1550_v40 = vmul.f32 1.442695, %v1549_v25  ;;  %v1425_v53 = vmul.f32 %v4463_v14, %v3984_v29  ;;  %v1366_v31 = vld [vmem:[%s5035_s11 + $0x1] sm:$0x1] }
 0x2c6   : >> { %v5021_v30 = vmax.f32 %v5017_v19, %v3979_v8  ;;  %v1580_v38 = vmul.f32 1.442695, %v1579_v17  ;;  %v1606_v43 = vsub.f32 %v5011_v60, %v1605_v27  ;;  %v1610_v44 = vrot.slane %v1605_v27, 7  ;;  %v5058_v27 = vld [vmem:[%s5035_s11 + $0x2] sm:$0x1] }
 0x2c7   : >> { %v1471_v37 = vld [vmem:[#allocation1 + $0x7] ss:$9 sm:$0xff]  ;;  %3993 = vpow2.f32 %v1523_v10  ;;  %v5031_v48 = vpop.eup %3985  ;;  %v1419_v61 = vmul.f32 %v4467_v15, %v3984_v29 }
 0x2c8   : >> { %1526 = vst [vmem:[#allocation1] sm:$0xff] %v1521_v49  ;;  %v5027_v42 = vadd.f32 %v5021_v30, %v5554_v16  ;;  %v1473_v47 = vsub.f32 %v4975_v20, %v1471_v37  ;;  %3995 = vpow2.f32 %v1499_v22  ;;  %v1612_v51 = vsub.f32 %v1601_v41, %v1610_v44  ;;  %v3988_v49 = vpop.eup %3987  ;;  %v3981_v22 = vld [vmem:[%s4971_s12 + $0x6] ss:$0 sm:$0xff] }
 0x2c9   : >> { %3997 = vpow2.f32 %v1493_v34  ;;  %v1556_v20 = vmul.f32 1.442695, %v1555_v39  ;;  %v1607_v58 = vmul.f32 1.442695, %v1606_v43  ;;  %v1662_v59 = vmax.f32 %v5021_v30, %v1660_v36 }
 0x2ca   : >> { %v1474_v54 = vmul.f32 1.442695, %v1473_v47  ;;  %v3990_v56 = vpop.eup %3989  ;;  %3999 = vpow2.f32 %v1580_v38  ;;  %v5043_v3 = vmax.f32 %v5027_v42, %v3980_v46  ;;  %v1613_v62 = vmul.f32 1.442695, %v1612_v51 }
 0x2cb   : >> { %v3992_v0 = vpop.eup %3991  ;;  %v1420_v57 = vmul.f32 %v3990_v56, %v5038_v50  ;;  %v1427_v41 = vperm.slane %v3990_v56, 0  ;;  %v1636_v8 = vsub.f32 %v5017_v19, %v5021_v30  ;;  %v1452_v10 = vrot.slane %v3988_v49, 1 }
 0x2cc   : >> { %4001 = vpow2.f32 %v1474_v54  ;;  %v5054_v17 = vadd.f32 %v5043_v3, %v5554_v16  ;;  %v1667_v29 = vrot.slane %v1662_v59, 7  ;;  %v1445_v36 = vmul.f32 %v3988_v49, %v1366_v31 }
 0x2cd   : >> { %4003 = vpow2.f32 %v1550_v40  ;;  %v5050_v32 = vpop.eup %3993  ;;  %v1422_v63 = vperm.slane %v1420_v57, 0  ;;  %v1429_v2 = vadd.f32 %v1427_v41, %v1425_v53  ;;  %v1637_v43 = vmul.f32 1.442695, %v1636_v8  ;;  %v5088_v8 = vld [vmem:[%s5035_s11 + $0x3] sm:$0x1] }
 0x2ce   : >> { %v3996_v25 = vpop.eup %3995  ;;  %4005 = vpow2.f32 %v1556_v20  ;;  %v1663_v44 = vsub.f32 %v5021_v30, %v1662_v59  ;;  %v5068_v40 = vmax.f32 %v5054_v17, %v3981_v22  ;;  %v1669_v56 = vsub.f32 %v5009_v1, %v1667_v29  ;;  %v3982_v59 = vld [vmem:[%s4971_s12 + $0x7] ss:$0 sm:$0xff] }
 0x2cf   : >> { %v1528_v26 = vld [vmem:[#allocation1 + $0x7] ss:$9 sm:$0xff]  ;;  %v5060_v34 = vpop.eup %3997  ;;  %v1450_v37 = vmul.f32 %v3992_v0, %v1429_v2  ;;  %4007 = vpow2.f32 %v1607_v58  ;;  %v1424_v39 = vadd.f32 %v1422_v63, %v1419_v61  ;;  %v1482_v53 = vmul.f32 %v5031_v48, %v1429_v2  ;;  %v5094_v2 = vld [vmem:[%s5035_s11 + $0x4] sm:$0x1] }
 0x2d0   : >> { %v1530_v19 = vsub.f32 %v4978_v21, %v1528_v26  ;;  %1583 = vst [vmem:[#allocation1] sm:$0xff] %v5011_v60  ;;  %v5064_v38 = vpop.eup %3999  ;;  %4009 = vpow2.f32 %v1613_v62  ;;  %v5071_v21 = vmul.f32 %v3996_v25, %v5058_v27  ;;  %v1447_v20 = vrot.slane %v1445_v36, 1  ;;  %v5085_v61 = vld [vmem:[%s4971_s12 + $0x6] sm:$0x1] }
 0x2d1   : >> { %v1454_v47 = vadd.f32 %v1452_v10, %v1450_v37  ;;  %v5079_v58 = vadd.f32 %v5068_v40, %v5554_v16  ;;  %v1444_v41 = vmul.f32 %v3992_v0, %v1424_v39  ;;  %v1664_v10 = vmul.f32 1.442695, %v1663_v44 }
 0x2d2   : >> { %v4002_v46 = vpop.eup %4001  ;;  %v1531_v60 = vmul.f32 1.442695, %v1530_v19  ;;  %v1476_v0 = vmul.f32 %v5031_v48, %v1424_v39  ;;  %v1715_v44 = vadd.f32 %v5085_v61, %v4903_v55 }
 0x2d3   : >> { %v5073_v51 = vpop.eup %4003  ;;  %v1477_v49 = vmul.f32 %v4002_v46, %v1366_v31  ;;  %v1484_v54 = vperm.slane %v4002_v46, 0  ;;  %4011 = vrcp.f32 %v1454_v47  ;;  %v1509_v31 = vrot.slane %v3996_v25, 1 }
 0x2d4   : >> { %v5082_v57 = vpop.eup %4005  ;;  %4013 = vpow2.f32 %v1531_v60  ;;  %v1670_v25 = vmul.f32 1.442695, %v1669_v56  ;;  %v5103_v37 = vmax.f32 %v5079_v58, %v3982_v59   ;;  %v1449_v46 = vadd.f32 %v1447_v20, %v1444_v41 }
 0x2d5   : >> { %v1486_v62 = vadd.f32 %v1484_v54, %v1482_v53  ;;  %v5090_v63 = vpop.eup %4007  ;;  %4015 = vpow2.f32 %v1637_v43  ;;  %v1479_v29 = vperm.slane %v1477_v49, 0  ;;  %v5107_v43 = vmul.f32 %v5082_v57, %v5088_v8 }
 0x2d6   : >> { %v5096_v22 = vpop.eup %4009  ;;  %v1566_v39 = vrot.slane %v5082_v57, 1  ;;  %v1693_v53 = vsub.f32 %v5027_v42, %v5043_v3  ;;  %v1717_v54 = vrot.slane %v1715_v44, 1 }
 0x2d7   : >> { %v1585_v26 = vld [vmem:[#allocation1 + $0x7] ss:$9 sm:$0xff]  ;;  %v1507_v19 = vmul.f32 %v5060_v34, %v1486_v62  ;;  %v5118_v49 = vmul.f32 %v5096_v22, %v5094_v2  ;;  %v1481_v59 = vadd.f32 %v1479_v29, %v1476_v0  ;;  %v1623_v29 = vrot.slane %v5096_v22, 1 }
 0x2d8   : >> { %v1587_v36 = vsub.f32 %v4986_v28, %v1585_v26  ;;  %1640 = vst [vmem:[#allocation1] sm:$0xff] %v5021_v30  ;;  %v5114_v28 = vadd.f32 %v4999_v45, %v4903_v55  ;;  %v5126_v45 = vld [vmem:[%s4971_s12 + $0x7] sm:$0x1]  ;;  %v1694_v0 = vmul.f32 1.442695, %v1693_v53 }
 0x2d9   : >> { %v1511_v48 = vadd.f32 %v1509_v31, %v1507_v19  ;;  %v4012_v30 = vpop.eup %4011  ;;  %v1539_v31 = vmul.f32 %v5050_v32, %v1486_v62  ;;  %v1719_v19 = vmax.f32 %v5043_v3, %v1717_v54  ;;  %v5136_v62 = vadd.f32 %v5126_v45, %v4903_v55 }
 0x2da   : >> { %v1588_v60 = vmul.f32 1.442695, %v1587_v36  ;;  %v4014_v56 = vpop.eup %4013  ;;  %v1456_v20 = vmul.f32 %v4012_v30, %v1454_v47  ;;  %v1375_v57 = vrot.slane %v5114_v28, 1 }
 0x2db   : >> { %4017 = vrcp.f32 %v1511_v48  ;;  %v5123_v41 = vpop.eup %4015  ;;  %v1541_v26 = vperm.slane %v4014_v56, 0  ;;  %v1534_v42 = vmul.f32 %v4014_v56, %v5058_v27  ;;  %v1724_v23 = vrot.slane %v1719_v19, 7 }
 0x2dc   : >> { %4019 = vpow2.f32 %v1588_v60  ;;  %v1457_v36 = vsub.f32 2.0, %v1456_v20  ;;  %v1377_v11 = vmax.f32 %v4459_v13, %v1375_v57  ;;  %v1501_v27 = vmul.f32 %v5060_v34, %v1481_v59 }
 0x2dd   : >> { %4021 = vpow2.f32 %v1664_v10  ;;  %v1543_v47 = vadd.f32 %v1541_v26, %v1539_v31  ;;  %v1536_v53 = vperm.slane %v1534_v42, 0  ;;  %v1533_v56 = vmul.f32 %v5050_v32, %v1481_v59 }
 0x2de   : >> { %4023 = vpow2.f32 %v1670_v25  ;;  %v1458_v60 = vmul.f32 %v4012_v30, %v1457_v36  ;;  %v1378_v20 = vsub.f32 %v4459_v13, %v1377_v11  ;;  %v1720_v13 = vsub.f32 %v5043_v3, %v1719_v19 }
 0x2df   : >> { %v1642_v16 = vld [vmem:[#allocation1 + $0x7] ss:$9 sm:$0xff]  ;;  %v1564_v10 = vmul.f32 %v5073_v51, %v1543_v47  ;;  %v1596_v1 = vmul.f32 %v5064_v38, %v1543_v47 }
 0x2e0   : >> { %v1644_v54 = vsub.f32 %v4990_v33, %v1642_v16  ;;  %1697 = vst [vmem:[#allocation1] sm:$0xff] %v5043_v3  ;;  %v1459_v30 = vmul.f32 %v1458_v60, %v1449_v46  ;;  %v1726_v33 = vsub.f32 %v1715_v44, %v1724_v23  ;;  %v1774_v46 = vrot.slane %v5136_v62, 1 }
 0x2e1   : >> { %v4018_v25 = vpop.eup %4017  ;;  %v1568_v16 = vadd.f32 %v1566_v39, %v1564_v10  ;;  %v1538_v23 = vadd.f32 %v1536_v53, %v1533_v56  ;;  %v1379_v39 = vmul.f32 1.442695, %v1378_v20 }
 0x2e2   : >> { %v4020_v57 = vpop.eup %4019  ;;  %v1645_v31 = vmul.f32 1.442695, %v1644_v54  ;;  %v1513_v26 = vmul.f32 %v4018_v25, %v1511_v48  ;;  %1830 = vst [vmem:[%s4971_s12 - $0x6] sm:$0x80] %v1459_v30  ;;  %v1750_v48 = vsub.f32 %v5054_v17, %v5068_v40  ;;  %v1727_v60 = vmul.f32 1.442695, %v1726_v33 }
 0x2e3   : >> { %v5145_v36 = vpop.eup %4021  ;;  %v1591_v34 = vmul.f32 %v4020_v57, %v5088_v8  ;;  %v1598_v22 = vperm.slane %v4020_v57, 0  ;;  %v5555_v8 = vrot.slane %v5071_v21, 1  ;;  %v1382_v54 = vrot.slane %v1377_v11, 7 }
 0x2e4   : >> { %v5151_v42 = vpop.eup %4023  ;;  %4025 = vpow2.f32 %v1645_v31  ;;  %v1514_v32 = vsub.f32 2.0, %v1513_v26  ;;  %v1776_v3 = vmax.f32 %v5068_v40, %v1774_v46  ;;  %v1590_v19 = vmul.f32 %v5064_v38, %v1538_v23  ;;  %v1370_v31 = vld [vmem:[%s5035_s11 + $0x5] sm:$0x1] }
 0x2e5   : >> { %4027 = vrcp.f32 %v1568_v16  ;;  %v1600_v44 = vadd.f32 %v1598_v22, %v1596_v1  ;;  %v1506_v59 = vadd.f32 %v5555_v8, %v1501_v27  ;;  %v1593_v30 = vperm.slane %v1591_v34, 0 }
 0x2e6   : >> { %v1515_v47 = vmul.f32 %v4018_v25, %v1514_v32  ;;  %4029 = vpow2.f32 %v1694_v0  ;;  %v1384_v21 = vsub.f32 %v5114_v28, %v1382_v54  ;;  %v1721_v27 = vmul.f32 1.442695, %v1720_v13 }
 0x2e7   : >> { %v1699_v10 = vld [vmem:[#allocation1 + $0x7] ss:$9 sm:$0xff]  ;;  %v1621_v57 = vmul.f32 %v5090_v63, %v1600_v44  ;;  %4031 = vpow2.f32 %v1379_v39  ;;  %v1751_v22 = vmul.f32 1.442695, %v1750_v48  ;;  %v1558_v0 = vmul.f32 %v5073_v51, %v1538_v23 }
 0x2e8   : >> { %v1701_v17 = vsub.f32 %v5003_v24, %v1699_v10  ;;  %1754 = vst [vmem:[#allocation1] sm:$0xff] %v5068_v40  ;;  %v1516_v1 = vmul.f32 %v1515_v47, %v1506_v59  ;;  %4033 = vpow2.f32 %v1727_v60  ;;  %v1385_v56 = vmul.f32 1.442695, %v1384_v21 }
 0x2e9   : >> { %v1625_v11 = vadd.f32 %v1623_v29, %v1621_v57  ;;  %v1595_v20 = vadd.f32 %v1593_v30, %v1590_v19  ;;  %v1653_v26 = vmul.f32 %v5123_v41, %v1600_v44  ;;  %v1781_v29 = vrot.slane %v1776_v3, 7 }
 0x2ea   : >> { %v4026_v25 = vpop.eup %4025  ;;  %1831 = vst [vmem:[%s4971_s12 - $0x5] sm:$0x80] %v1516_v1  ;;  %v1702_v53 = vmul.f32 1.442695, %v1701_v17  ;;  %v1680_v32 = vrot.slane %v5151_v42, 1  ;;  %v1777_v51 = vsub.f32 %v5068_v40, %v1776_v3  ;;  %v5556_v48 = vrot.slane %v5107_v43, 1 }
 0x2eb   : >> { %v4028_v24 = vpop.eup %4027  ;;  %4035 = vrcp.f32 %v1625_v11  ;;  %v1655_v33 = vperm.slane %v4026_v25, 0  ;;  %v1648_v38 = vmul.f32 %v4026_v25, %v5094_v2  ;;  %v5176_v44 = vmul.f32 %v5151_v42, %v1370_v31 }
 0x2ec   : >> { %v1570_v28 = vmul.f32 %v4028_v24, %v1568_v16  ;;  %4037 = vpow2.f32 %v1702_v53  ;;  %v4030_v34 = vpop.eup %4029  ;;  %v1563_v23 = vadd.f32 %v5556_v48, %v1558_v0  ;;  %v1615_v16 = vmul.f32 %v5090_v63, %v1595_v20 }
 0x2ed   : >> { %v1657_v46 = vadd.f32 %v1655_v33, %v1653_v26  ;;  %4039 = vpow2.f32 %v1721_v27  ;;  %v5171_v13 = vpop.eup %4031  ;;  %v1647_v8 = vmul.f32 %v5123_v41, %v1595_v20  ;;  %v1650_v43 = vperm.slane %v1648_v38, 0 }
 0x2ee   : >> { %v1571_v39 = vsub.f32 2.0, %v1570_v28  ;;  %4041 = vpow2.f32 %v1385_v56  ;;  %v5181_v47 = vpop.eup %4033  ;;  %v1783_v42 = vsub.f32 %v5136_v62, %v1781_v29  ;;  %v1393_v63 = vmul.f32 %v4463_v14, %v5171_v13 }
 0x2ef   : >> { %v1756_v2 = vld [vmem:[#allocation1 + $0x7] ss:$9 sm:$0xff]  ;;  %v1678_v59 = vmul.f32 %v5145_v36, %v1657_v46  ;;  %4043 = vpow2.f32 %v1751_v22  ;;  %v1778_v41 = vmul.f32 1.442695, %v1777_v51  ;;  %v1807_v30 = vsub.f32 %v5079_v58, %v5103_v37 }
 0x2f0   : >> { %1811 = vst [vmem:[#allocation1] sm:$0xff] %v5103_v37  ;;  %v1572_v40 = vmul.f32 %v4028_v24, %v1571_v39  ;;  %v1758_v60 = vsub.f32 %v5085_v61, %v1756_v2  ;;  %v1784_v21 = vmul.f32 1.442695, %v1783_v42  ;;  %v1710_v62 = vmul.f32 %v4030_v34, %v1657_v46 }
 0x2f1   : >> { %v4036_v54 = vpop.eup %4035  ;;  %v1682_v10 = vadd.f32 %v1680_v32, %v1678_v59  ;;  %v5557_v25 = vrot.slane %v5118_v49, 1  ;;  %v1652_v53 = vadd.f32 %v1650_v43, %v1647_v8  ;;  %v1675_v29 = vrot.slane %v5176_v44, 1  ;;  %v1371_v8 = vld [vmem:[%s5035_s11 + $0x6] sm:$0x1] }
 0x2f2   : >> { %v4038_v57 = vpop.eup %4037  ;;  %v1573_v3 = vmul.f32 %v1572_v40, %v1563_v23  ;;  %v1627_v17 = vmul.f32 %v4036_v54, %v1625_v11  ;;  %v1759_v1 = vmul.f32 1.442695, %v1758_v60  ;;  %v1737_v11 = vrot.slane %v5181_v47, 1 }
 0x2f3   : >> { %v5190_v19 = vpop.eup %4039  ;;  %4045 = vrcp.f32 %v1682_v10  ;;  %v1705_v61 = vmul.f32 %v4038_v57, %v1370_v31  ;;  %v1712_v27 = vperm.slane %v4038_v57, 0  ;;  %v1620_v14 = vadd.f32 %v5557_v25, %v1615_v16 }
 0x2f4   : >> { %v4042_v22 = vpop.eup %4041  ;;  %1832 = vst [vmem:[%s4971_s12 - $0x4] sm:$0x80] %v1573_v3  ;;  %v1628_v0 = vsub.f32 2.0, %v1627_v17  ;;  %4047 = vpow2.f32 %v1759_v1  ;;  %v1808_v31 = vmul.f32 1.442695, %v1807_v30  ;;  %v1704_v46 = vmul.f32 %v4030_v34, %v1652_v53 }
 0x2f5   : >> { %v4044_v58 = vpop.eup %4043  ;;  %v1714_v56 = vadd.f32 %v1712_v27, %v1710_v62  ;;  %v1395_v24 = vrot.slane %v4042_v22, 1  ;;  %4049 = vpow2.f32 %v1778_v41  ;;  %v1707_v26 = vperm.slane %v1705_v61, 0 }
 0x2f6   : >> { %v1629_v20 = vmul.f32 %v4036_v54, %v1628_v0  ;;  %4051 = vpow2.f32 %v1784_v21  ;;  %v1672_v48 = vmul.f32 %v5145_v36, %v1652_v53  ;;  %v1388_v39 = vmul.f32 %v4042_v22, %v5038_v50 }
 0x2f7   : >> { %v1735_v33 = vmul.f32 %v5190_v19, %v1714_v56  ;;  %v1397_v28 = vadd.f32 %v1395_v24, %v1393_v63  ;;  %v1813_v49 = vld [vmem:[#allocation1 + $0x7] ss:$9 sm:$0xff]  ;;  %v1709_v59 = vadd.f32 %v1707_v26, %v1704_v46  ;;  %v1767_v34 = vmul.f32 %v4044_v58, %v1714_v56 }
 0x2f8   : >> { %v1630_v38 = vmul.f32 %v1629_v20, %v1620_v14  ;;  %v1815_v32 = vsub.f32 %v5126_v45, %v1813_v49  ;;  %v1730_v36 = vmul.f32 %v5181_v47, %v1371_v8  ;;  %v1677_v41 = vadd.f32 %v1675_v29, %v1672_v48 }
 0x2f9   : >> { %v4046_v51 = vpop.eup %4045  ;;  %v1739_v23 = vadd.f32 %v1737_v11, %v1735_v33  ;;  %4053 = vrcp.f32 %v1397_v28  ;;  %v1387_v30 = vmul.f32 %v4467_v15, %v5171_v13  ;;  %v1390_v57 = vrot.slane %v1388_v39, 1  ;;  %v1372_v15 = vld [vmem:[%s5035_s11 + $0x7] sm:$0x1] }
 0x2fa   : >> { %v4048_v2 = vpop.eup %4047  ;;  %1833 = vst [vmem:[%s4971_s12 - $0x3] sm:$0x80] %v1630_v38  ;;  %v1684_v16 = vmul.f32 %v4046_v51, %v1682_v10  ;;  %4055 = vpow2.f32 %v1808_v31  ;;  %v1816_v40 = vmul.f32 1.442695, %v1815_v32  ;;  %v1761_v17 = vmul.f32 %v4044_v58, %v1709_v59 }
 0x2fb   : >> { %v4050_v43 = vpop.eup %4049  ;;  %4057 = vrcp.f32 %v1739_v23  ;;  %v1762_v44 = vmul.f32 %v4048_v2, %v1371_v8  ;;  %v1769_v60 = vperm.slane %v4048_v2, 0  ;;  %v1732_v22 = vrot.slane %v1730_v36, 1  ;;  %v3733_v8 = vld [vmem:[%s4805_s29 + $0x38] sm:$0xff] (%p1347_p5) }
 0x2fc   : >> { %v4052_v45 = vpop.eup %4051  ;;  %v1685_v42 = vsub.f32 2.0, %v1684_v16  ;;  %4059 = vpow2.f32 %v1816_v40  ;;  %v1729_v0 = vmul.f32 %v5190_v19, %v1709_v59  ;;  %v1392_v56 = vadd.f32 %v1390_v57, %v1387_v30  ;;  %2018 = vmatpush.bf16.msra.mxu3 (%p1347_p5), %v3733_v8  ;;  %v3732_v59 = vld [vmem:[%s4805_s29 + $0x30] sm:$0xff] (%p1347_p5)  ;;  %v3727_v30 = vld [vmem:[%s4805_s29 + $0x8] sm:$0xff] (%p1347_p5) }
 0x2fd   : >> { %v1764_v54 = vperm.slane %v1762_v44, 0  ;;  %v1771_v50 = vadd.f32 %v1769_v60, %v1767_v34  ;;  %v1794_v63 = vrot.slane %v4052_v45, 1  ;;  %v1787_v19 = vmul.f32 %v4052_v45, %v1372_v15  ;;  %v3730_v45 = vld [vmem:[%s4805_s29 + $0x20] sm:$0xff] (%p1347_p5) }
 0x2fe   : >> { %v1686_v10 = vmul.f32 %v4046_v51, %v1685_v42 }
 0x2ff   : >> { %v4054_v3 = vpop.eup %4053  ;;  %v1792_v1 = vmul.f32 %v4050_v43, %v1771_v50  ;;  %v1766_v47 = vadd.f32 %v1764_v54, %v1761_v17  ;;  %v1789_v51 = vrot.slane %v1787_v19, 1 }
 0x300   : >> { %v4056_v21 = vpop.eup %4055  ;;  %v1687_v61 = vmul.f32 %v1686_v10, %v1677_v41  ;;  %v1399_v62 = vmul.f32 %v4054_v3, %v1397_v28  ;;  %v1734_v28 = vadd.f32 %v1732_v22, %v1729_v0  ;;  %2019 = vmatpush.bf16.msra.mxu3 (%p1347_p5), %v3732_v59 }
 0x301   : >> { %v4058_v27 = vpop.eup %4057  ;;  %v1796_v25 = vadd.f32 %v1794_v63, %v1792_v1  ;;  %v1824_v58 = vmul.f32 %v4056_v21, %v1771_v50  ;;  %v1818_v31 = vmul.f32 %v4056_v21, %v1766_v47  ;;  %v1786_v32 = vmul.f32 %v4050_v43, %v1766_v47  ;;  %v3731_v43 = vld [vmem:[%s4805_s29 + $0x28] sm:$0xff] (%p1347_p5)  ;;  %v3729_v50 = vld [vmem:[%s4805_s29 + $0x18] sm:$0xff] (%p1347_p5)  ;;  %v3728_v63 = vld [vmem:[%s4805_s29 + $0x10] sm:$0xff] (%p1347_p5) }
 0x302   : >> { %v4060_v14 = vpop.eup %4059  ;;  %1834 = vst [vmem:[%s4971_s12 - $0x2] sm:$0x80] %v1687_v61  ;;  %v1741_v53 = vmul.f32 %v4058_v27, %v1739_v23  ;;  %v1400_v11 = vsub.f32 2.0, %v1399_v62  ;;  %v3726_v61 = vld [vmem:[%s4805_s29] sm:$0xff] (%p1347_p5) }
 0x303   : >> { %4061 = vrcp.f32 %v1796_v25  ;;  %v1819_v13 = vmul.f32 %v4060_v14, %v1372_v15  ;;  %v1826_v24 = vperm.slane %v4060_v14, 0  ;;  %v1791_v39 = vadd.f32 %v1789_v51, %v1786_v32 }
 0x304   : >> { %v1742_v20 = vsub.f32 2.0, %v1741_v53  ;;  %v1401_v26 = vmul.f32 %v4054_v3, %v1400_v11  ;;  %2020 = vmatpush.bf16.msra.mxu3 (%p1347_p5), %v3731_v43 }
 0x305   : >> { %v1821_v33 = vperm.slane %v1819_v13, 0  ;;  %v1828_v14 = vadd.f32 %v1826_v24, %v1824_v58   ;;  %v5558_v13 = vmov %v5103_v37 }
 0x306   : >> { %v1743_v49 = vmul.f32 %v4058_v27, %v1742_v20  ;;  %v1402_v38 = vmul.f32 %v1401_v26, %v1392_v56 }
 0x307   : >> { %v1823_v15 = vadd.f32 %v1821_v33, %v1818_v31  }
 0x308   : >> { %v1744_v29 = vmul.f32 %v1743_v49, %v1734_v28  ;;  %1829 = vst [vmem:[%s4971_s12 - $0x7] sm:$0x80] %v1402_v38  ;;  %2021 = vmatpush.bf16.msra.mxu3 (%p1347_p5), %v3730_v45 }
 0x309   : >> { %v4062_v46 = vpop.eup %4061 }
 0x30a   : >> { %1835 = vst [vmem:[%s4971_s12 - $0x1] sm:$0x80] %v1744_v29  ;;  %v1798_v48 = vmul.f32 %v4062_v46, %v1796_v25 }
 0x30c   : >> { %v1799_v23 = vsub.f32 2.0, %v1798_v48  ;;  %2022 = vmatpush.bf16.msra.mxu3 (%p1347_p5), %v3729_v50 }
 0x30e   : >> { %v1800_v2 = vmul.f32 %v4062_v46, %v1799_v23  ;;  %1349 = sbr.rel (!%p1347_p5) target bundleno = 691 (0x2b3), region = 209 }
 0x310   : >> { %v1801_v16 = vmul.f32 %v1800_v2, %v1791_v39  ;;  %2023 = vmatpush.bf16.msra.mxu3 (%p1347_p5), %v3728_v63 }
 0x312   : >> { %1836 = vst [vmem:[%s4971_s12] sm:$0x80] %v1801_v16 }
 0x314   : > { %2024 = vmatpush.bf16.msra.mxu3 %v3727_v30 }
 0x318   : > { %2025 = vmatpush.bf16.msra.mxu3 %v3726_v61  ;;  %v3770_v61 = vld [vmem:[%s4811_s24 + $0xe4] sm:$0xf] }
 0x319   : > { %v1837_v40 = vld [vmem:[#allocation2] sm:$0x1]  ;;  %v1838_v44 = vld [vmem:[#allocation2 + $0x1] sm:$0x1]  ;;  %v1839_v37 = vld [vmem:[#allocation2 + $0x2] sm:$0x1] }
 0x31a   : > { %v1840_v34 = vld [vmem:[#allocation2 + $0x3] sm:$0x1]  ;;  %1901 = vst [vmem:[#allocation1] ss:$9 sm:$0xff] %v1837_v40  ;;  %v1841_v60 = vld [vmem:[#allocation2 + $0x4] sm:$0x1] }
 0x31b   : > { %1903 = vst [vmem:[#allocation1 + $0x1] ss:$9 sm:$0xff] %v1838_v44  ;;  %v1842_v42 = vld [vmem:[#allocation2 + $0x5] sm:$0x1]  ;;  %v1843_v36 = vld [vmem:[#allocation2 + $0x6] sm:$0x1] }
 0x31c   : > { %1905 = vst [vmem:[#allocation1 + $0x2] ss:$9 sm:$0xff] %v1839_v37  ;;  %v1844_v54 = vld [vmem:[#allocation2 + $0x7] sm:$0x1]  ;;  %v1845_v41 = vld [vmem:[#allocation2 + $0x8] sm:$0x1] }
 0x31d   : > { %1907 = vst [vmem:[#allocation1 + $0x3] ss:$9 sm:$0xff] %v1840_v34  ;;  %v1846_v10 = vld [vmem:[#allocation2 + $0x9] sm:$0x1]  ;;  %v1847_v57 = vld [vmem:[#allocation2 + $0xa] sm:$0x1] }
 0x31e   : > { %1909 = vst [vmem:[#allocation1 + $0x4] ss:$9 sm:$0xff] %v1841_v60  ;;  %v1848_v17 = vld [vmem:[#allocation2 + $0xb] sm:$0x1]  ;;  %v1849_v1 = vld [vmem:[#allocation2 + $0xc] sm:$0x1] }
 0x31f   : > { %1911 = vst [vmem:[#allocation1 + $0x5] ss:$9 sm:$0xff] %v1842_v42  ;;  %v1850_v21 = vld [vmem:[#allocation2 + $0xd] sm:$0x1]  ;;  %v1851_v62 = vld [vmem:[#allocation2 + $0xe] sm:$0x1] }
 0x320   : > { %1913 = vst [vmem:[#allocation1 + $0x6] ss:$9 sm:$0xff] %v1843_v36  ;;  %v1852_v27 = vld [vmem:[#allocation2 + $0xf] sm:$0x1]  ;;  %v1853_v22 = vld [vmem:[#allocation2 + $0x10] sm:$0x1] }
 0x321   : > { %1915 = vst [vmem:[#allocation1 + $0x7] ss:$9 sm:$0xff] %v1844_v54  ;;  %v1854_v25 = vld [vmem:[#allocation2 + $0x11] sm:$0x1]  ;;  %v1855_v0 = vld [vmem:[#allocation2 + $0x12] sm:$0x1] }
 0x322   : > { %v1856_v56 = vld [vmem:[#allocation2 + $0x13] sm:$0x1]  ;;  %v1857_v11 = vld [vmem:[#allocation2 + $0x14] sm:$0x1]  ;;  %v1858_v13 = vld [vmem:[#allocation2 + $0x15] sm:$0x1] }
 0x323   : > { %v1859_v58 = vld [vmem:[#allocation2 + $0x16] sm:$0x1]  ;;  %v1860_v24 = vld [vmem:[#allocation2 + $0x17] sm:$0x1]  ;;  %v1862_v20 = vld [vmem:[#allocation2 + $0x19] sm:$0x1] }
 0x324   : > { %v1863_v26 = vld [vmem:[#allocation2 + $0x1a] sm:$0x1]  ;;  %v1865_v33 = vld [vmem:[#allocation2 + $0x1c] sm:$0x1]  ;;  %v1866_v28 = vld [vmem:[#allocation2 + $0x1d] sm:$0x1] }
 0x325   : > { %v1867_v49 = vld [vmem:[#allocation2 + $0x1e] sm:$0x1]  ;;  %v1868_v38 = vld [vmem:[#allocation2 + $0x1f] sm:$0x1] }
 0x328   : > { %v1916_v3 = vld [vmem:[#allocation1] sm:$0xff] }
 0x329   : > { %1917 = vst [vmem:[#allocation1] ss:$9 sm:$0xff] %v1845_v41  ;;  %v1948_v47 = vmul.f32 %v1916_v3, %v4930_v9  ;;  %v1861_v9 = vld [vmem:[#allocation2 + $0x18] sm:$0x1]  ;;  %v3548_v3 = vld [vmem:[%s4811_s24 + $0xe0] sm:$0xf] }
 0x32a   : > { %1918 = vst [vmem:[#allocation1 + $0x1] ss:$9 sm:$0xff] %v1846_v10 }
 0x32b   : > { %1919 = vst [vmem:[#allocation1 + $0x2] ss:$9 sm:$0xff] %v1847_v57 }
 0x32c   : > { %1920 = vst [vmem:[#allocation1 + $0x3] ss:$9 sm:$0xff] %v1848_v17  ;;  %v3772_v17 = vld [vmem:[%s4811_s24 + $0xec] sm:$0xf0] }
 0x32d   : > { %1921 = vst [vmem:[#allocation1 + $0x4] ss:$9 sm:$0xff] %v1849_v1  ;;  %v3741_v1 = vld [vmem:[%s4813_s30 + $0x38] sm:$0xff] }
 0x32e   : > { %1922 = vst [vmem:[#allocation1 + $0x5] ss:$9 sm:$0xff] %v1850_v21  ;;  %v3549_v21 = vor.u32 %v3772_v17, %v3548_v3  ;;  %2237 = vmatpush.bf16.msrb.mxu0 %v3741_v1  ;;  %v3757_v1 = vld [vmem:[%s4811_s24 + $0x74] sm:$0xf0] }
 0x32f   : > { %1923 = vst [vmem:[#allocation1 + $0x6] ss:$9 sm:$0xff] %v1851_v62  ;;  %v3550_v62 = vld [vmem:[%s4811_s24 + $0xf0] sm:$0xf0] }
 0x330   : > { %1924 = vst [vmem:[#allocation1 + $0x7] ss:$9 sm:$0xff] %v1852_v27  ;;  %v3553_v27 = vor.u32 %v3770_v61, %v3550_v62  ;;  %2526 = vmatpush.bf16.msrb.mxu1 %v3549_v21 }
 0x332   : > { %2545 = vmatpush.bf16.msrb.mxu2 %v3553_v27  ;;  %v3468_v27 = vld [vmem:[%s4811_s24 + $0x40] sm:$0xf] }
 0x337   : > { %v1925_v14 = vld [vmem:[#allocation1] sm:$0xff] }
 0x338   : > { %v1949_v53 = vmul.f32 %v1925_v14, %v4937_v35  ;;  %1926 = vst [vmem:[#allocation1] ss:$9 sm:$0xff] %v1853_v22  ;;  %v1864_v35 = vld [vmem:[#allocation2 + $0x1b] sm:$0x1]  ;;  %v3556_v22 = vld [vmem:[%s4811_s24 + $0xe8] sm:$0xf] }
 0x339   : > { %1927 = vst [vmem:[#allocation1 + $0x1] ss:$9 sm:$0xff] %v1854_v25  ;;  %v3532_v14 = vld [vmem:[%s4811_s24 + $0xc0] sm:$0xf] }
 0x33a   : > { %v1968_v15 = vpack.c.bf16 %v1949_v53, %v1948_v47  ;;  %1928 = vst [vmem:[#allocation1 + $0x2] ss:$9 sm:$0xff] %v1855_v0  ;;  %v3773_v47 = vld [vmem:[%s4811_s24 + $0xf4] sm:$0xf0]  ;;  %v3768_v0 = vld [vmem:[%s4811_s24 + $0xcc] sm:$0xf0] }
 0x33b   : > { %1929 = vst [vmem:[#allocation1 + $0x3] ss:$9 sm:$0xff] %v1856_v56  ;;  %v3557_v25 = vor.u32 %v3773_v47, %v3556_v22  ;;  %v3766_v53 = vld [vmem:[%s4811_s24 + $0xc4] sm:$0xf]  ;;  %v3740_v56 = vld [vmem:[%s4813_s30 + $0x30] sm:$0xff] }
 0x33c   : > { %2026 = vmatmul.bf16.vlgmr.msra.gmra.mxu3 %v1968_v15  ;;  %1930 = vst [vmem:[#allocation1 + $0x4] ss:$9 sm:$0xff] %v1857_v11  ;;  %v3533_v11 = vor.u32 %v3768_v0, %v3532_v14  ;;  %v3534_v15 = vld [vmem:[%s4811_s24 + $0xd0] sm:$0xf0]  ;;  %2238 = vmatpush.bf16.msrb.mxu0 %v3740_v56  ;;  %v3752_v22 = vld [vmem:[%s4811_s24 + $0x4c] sm:$0xf0] }
 0x33d   : > { %1931 = vst [vmem:[#allocation1 + $0x5] ss:$9 sm:$0xff] %v1858_v13  ;;  %2564 = vmatpush.bf16.msrb.mxu3 %v3557_v25  ;;  %v3540_v13 = vld [vmem:[%s4811_s24 + $0xc8] sm:$0xf]  ;;  %v3750_v47 = vld [vmem:[%s4811_s24 + $0x44] sm:$0xf]  ;;  %v3469_v0 = vor.u32 %v3752_v22, %v3468_v27 }
 0x33e   : > { %1932 = vst [vmem:[#allocation1 + $0x6] ss:$9 sm:$0xff] %v1859_v58  ;;  %v3537_v58 = vor.u32 %v3766_v53, %v3534_v15  ;;  %2527 = vmatpush.bf16.msrb.mxu1 %v3533_v11  ;;  %v3736_v14 = vld [vmem:[%s4813_s30 + $0x10] sm:$0xff]  ;;  %v3476_v56 = vld [vmem:[%s4811_s24 + $0x48] sm:$0xf] }
 0x33f   : > { %1933 = vst [vmem:[#allocation1 + $0x7] ss:$9 sm:$0xff] %v1860_v24  ;;  %v3769_v24 = vld [vmem:[%s4811_s24 + $0xd4] sm:$0xf0]  ;;  %v3470_v53 = vld [vmem:[%s4811_s24 + $0x50] sm:$0xf0] }
 0x340   : > { %2546 = vmatpush.bf16.msrb.mxu2 %v3537_v58  ;;  %v3753_v58 = vld [vmem:[%s4811_s24 + $0x54] sm:$0xf0]  ;;  %v3526_v27 = vld [vmem:[%s4811_s24 + $0xb8] sm:$0xf0] }
 0x346   : > { %v1934_v31 = vld [vmem:[#allocation1] sm:$0xff] }
 0x347   : > { %1935 = vst [vmem:[#allocation1] ss:$9 sm:$0xff] %v1861_v9  ;;  %v1950_v19 = vmul.f32 %v1934_v31, %v4942_v52  ;;  %v3541_v9 = vor.u32 %v3769_v24, %v3540_v13  ;;  %v3762_v31 = vld [vmem:[%s4811_s24 + $0xa4] sm:$0xf]  ;;  %v3473_v13 = vor.u32 %v3750_v47, %v3470_v53  ;;  %v3735_v24 = vld [vmem:[%s4813_s30 + $0x8] sm:$0xff] }
 0x348   : > { %1936 = vst [vmem:[#allocation1 + $0x1] ss:$9 sm:$0xff] %v1862_v20  ;;  %v3516_v20 = vld [vmem:[%s4811_s24 + $0xa0] sm:$0xf] }
 0x349   : > { %1937 = vst [vmem:[#allocation1 + $0x2] ss:$9 sm:$0xff] %v1863_v26  ;;  %v3764_v26 = vld [vmem:[%s4811_s24 + $0xac] sm:$0xf0]  ;;  %2565 = vmatpush.bf16.msrb.mxu3 %v3541_v9  ;;  %v3477_v9 = vor.u32 %v3753_v58, %v3476_v56 }
 0x34a   : > { %1938 = vst [vmem:[#allocation1 + $0x3] ss:$9 sm:$0xff] %v1864_v35  ;;  %v3739_v35 = vld [vmem:[%s4813_s30 + $0x28] sm:$0xff] }
 0x34b   : > { %1939 = vst [vmem:[#allocation1 + $0x4] ss:$9 sm:$0xff] %v1865_v33  ;;  %v3517_v33 = vor.u32 %v3764_v26, %v3516_v20  ;;  %2239 = vmatpush.bf16.msrb.mxu0 %v3739_v35  ;;  %v3452_v20 = vld [vmem:[%s4811_s24 + $0x20] sm:$0xf]  ;;  %v3748_v26 = vld [vmem:[%s4811_s24 + $0x2c] sm:$0xf0] }
 0x34c   : > { %1940 = vst [vmem:[#allocation1 + $0x5] ss:$9 sm:$0xff] %v1866_v28  ;;  %v3518_v28 = vld [vmem:[%s4811_s24 + $0xb0] sm:$0xf0]  ;;  %v3453_v35 = vor.u32 %v3748_v26, %v3452_v20 }
 0x34d   : > { %1941 = vst [vmem:[#allocation1 + $0x6] ss:$9 sm:$0xff] %v1867_v49  ;;  %v3524_v49 = vld [vmem:[%s4811_s24 + $0xa8] sm:$0xf]  ;;  %2528 = vmatpush.bf16.msrb.mxu1 %v3517_v33  ;;  %v3454_v33 = vld [vmem:[%s4811_s24 + $0x30] sm:$0xf0] }
 0x34e   : > { %1942 = vst [vmem:[#allocation1 + $0x7] ss:$9 sm:$0xff] %v1868_v38 }
 0x355   : > { %v1943_v29 = vld [vmem:[#allocation1] sm:$0xff] }
 0x356   : > { %v1951_v46 = vmul.f32 %v1943_v29, %v4944_v12  ;;  %v3765_v29 = vld [vmem:[%s4811_s24 + $0xb4] sm:$0xf0] }
 0x358   : > { %v1969_v32 = vpack.c.bf16 %v1951_v46, %v1950_v19  ;;  %v3521_v19 = vor.u32 %v3762_v31, %v3518_v28  ;;  %v3746_v31 = vld [vmem:[%s4811_s24 + $0x24] sm:$0xf]  ;;  %v3460_v28 = vld [vmem:[%s4811_s24 + $0x28] sm:$0xf] }
 0x35a   : > { %2031 = vmatmul.bf16.gmra.mxu3 %v1969_v32  ;;  %v3525_v32 = vor.u32 %v3765_v29, %v3524_v49  ;;  %2547 = vmatpush.bf16.msrb.mxu2 %v3521_v19  ;;  %v3749_v49 = vld [vmem:[%s4811_s24 + $0x34] sm:$0xf0]  ;;  %v3457_v19 = vor.u32 %v3746_v31, %v3454_v33 }
 0x35b   : > { %v3461_v29 = vor.u32 %v3749_v49, %v3460_v28  ;;  %v3755_v49 = vld [vmem:[%s4811_s24 + $0x6c] sm:$0xf] }
 0x35c   : > { %2566 = vmatpush.bf16.msrb.mxu3 %v3525_v32  ;;  %v3436_v32 = vld [vmem:[%s4811_s24] sm:$0xf] }
 0x3bf   : > { %v2027_v51 = vpop.f32.mrf.mxu3 }
 0x3c0   : > { %v5235_v48 = vadd.f32 %v2027_v51, %v4825_v5  ;;  %v3500_v51 = vld [vmem:[%s4811_s24 + $0x80] sm:$0xf] }
 0x3c2   : > { %2041 = vadd.xlane.f32.xlu0 %v5235_v48 }
 0x3c7   : > { %v2029_v23 = vpop.f32.mrf.mxu3 }
 0x3c8   : > { %v5239_v39 = vadd.f32 %v2029_v23, %v4823_v4  ;;  %v3760_v23 = vld [vmem:[%s4811_s24 + $0x8c] sm:$0xf0] }
 0x3ca   : > { %2043 = vadd.xlane.f32.xlu1 %v5239_v39 }
 0x3dd   : > { %v2032_v2 = vpop.f32.mrf.mxu3 }
 0x3de   : > { %v5243_v52 = vadd.f32 %v2032_v2, %v4829_v6  ;;  %v3758_v2 = vld [vmem:[%s4811_s24 + $0x84] sm:$0xf] }
 0x3e0   : > { %2045 = vadd.xlane.f32.xlu1 %v5243_v52 }
 0x3e5   : > { %v2034_v12 = vpop.f32.mrf.mxu3 }
 0x3e6   : > { %v5247_v16 = vadd.f32 %v2034_v12, %v4831_v7 }
 0x3e8   : > { %2047 = vadd.xlane.f32.xlu0 %v5247_v16 }
 0x435   : > { %v2042_v5 = vpop.xlane.xlu0 %2041 }
 0x436   : > { %v2049_v8 = vmul.f32 %v2042_v5, %v4841_v18  ;;  %v3738_v5 = vld [vmem:[%s4813_s30 + $0x20] sm:$0xff] }
 0x437   : > { %2240 = vmatpush.bf16.msrb.mxu0 %v3738_v5  ;;  %v3745_v5 = vld [vmem:[%s4811_s24 + $0x14] sm:$0xf0] }
 0x438   : > { %v5252_v4 = vsub.f32 %v5235_v48, %v2049_v8  ;;  %v3501_v8 = vor.u32 %v3760_v23, %v3500_v51  ;;  %v3744_v51 = vld [vmem:[%s4811_s24 + $0xc] sm:$0xf0]  ;;  %v3742_v23 = vld [vmem:[%s4811_s24 + $0x4] sm:$0xf] }
 0x43a   : > { %v2057_v59 = vmul.f32 %v5252_v4, %v5252_v4  ;;  %2529 = vmatpush.bf16.msrb.mxu1 %v3501_v8 }
 0x43c   : > { %2061 = vadd.xlane.f32.xlu2 %v2057_v59  ;;  %v3502_v59 = vld [vmem:[%s4811_s24 + $0x90] sm:$0xf0] }
 0x43d   : > { %v2044_v6 = vpop.xlane.xlu1 %2043 }
 0x43e   : > { %v2050_v40 = vmul.f32 %v2044_v6, %v4841_v18  ;;  %v3508_v6 = vld [vmem:[%s4811_s24 + $0x88] sm:$0xf] }
 0x440   : > { %v5258_v43 = vsub.f32 %v5239_v39, %v2050_v40 }
 0x442   : > { %v2058_v7 = vmul.f32 %v5258_v43, %v5258_v43 }
 0x444   : > { %2063 = vadd.xlane.f32.xlu0 %v2058_v7  ;;  %v3505_v7 = vor.u32 %v3758_v2, %v3502_v59  ;;  %v3438_v2 = vld [vmem:[%s4811_s24 + $0x10] sm:$0xf0]  ;;  %v3734_v59 = vld [vmem:[%s4813_s30] sm:$0xff] }
 0x446   : > { %2548 = vmatpush.bf16.msrb.mxu2 %v3505_v7 }
 0x453   : > { %v2046_v44 = vpop.xlane.xlu1 %2045 }
 0x454   : > { %v2051_v37 = vmul.f32 %v2046_v44, %v4841_v18  ;;  %v3761_v44 = vld [vmem:[%s4811_s24 + $0x94] sm:$0xf0] }
 0x456   : > { %v5264_v34 = vsub.f32 %v5243_v52, %v2051_v37  ;;  %v3509_v37 = vor.u32 %v3761_v44, %v3508_v6  ;;  %v3437_v6 = vor.u32 %v3744_v51, %v3436_v32  ;;  %v3441_v44 = vor.u32 %v3742_v23, %v3438_v2  ;;  %v3751_v23 = vld [vmem:[%s4811_s24 + $0x4c] sm:$0xf]  ;;  %v3478_v2 = vld [vmem:[%s4811_s24 + $0x58] sm:$0xf0] }
 0x458   : > { %v2059_v60 = vmul.f32 %v5264_v34, %v5264_v34  ;;  %2567 = vmatpush.bf16.msrb.mxu3 %v3509_v37 }
 0x45a   : > { %2065 = vadd.xlane.f32.xlu1 %v2059_v60  ;;  %v3484_v60 = vld [vmem:[%s4811_s24 + $0x60] sm:$0xf] }
 0x45b   : > { %v2048_v45 = vpop.xlane.xlu0 %2047 }
 0x45c   : > { %v2052_v42 = vmul.f32 %v2048_v45, %v4841_v18  ;;  %v3756_v45 = vld [vmem:[%s4811_s24 + $0x6c] sm:$0xf0] }
 0x45e   : > { %v5270_v36 = vsub.f32 %v5247_v16, %v2052_v42  ;;  %v3754_v42 = vld [vmem:[%s4811_s24 + $0x64] sm:$0xf] }
 0x460   : > { %v2060_v54 = vmul.f32 %v5270_v36, %v5270_v36 }
 0x462   : > { %2067 = vadd.xlane.f32.xlu2 %v2060_v54 }
 0x4af   : > { %v2062_v50 = vpop.xlane.xlu2 %2061 }
 0x4b0   : > { %v2069_v63 = vmul.f32 %v2062_v50, %v4841_v18  ;;  %v3737_v50 = vld [vmem:[%s4813_s30 + $0x18] sm:$0xff] }
 0x4b1   : > { %2241 = vmatpush.bf16.msrb.mxu0 %v3737_v50  ;;  %v3771_v50 = vld [vmem:[%s4811_s24 + $0xec] sm:$0xf] }
 0x4b2   : > { %v5276_v30 = vadd.f32 1e-05, %v2069_v63  ;;  %v3485_v63 = vor.u32 %v3756_v45, %v3484_v60 }
 0x4b4   : > { %4063 = vrsqrt.f32 %v5276_v30  ;;  %2530 = vmatpush.bf16.msrb.mxu1 %v3485_v63  ;;  %v3558_v63 = vld [vmem:[%s4811_s24 + $0xf8] sm:$0xf0]  ;;  %vm2083_vm5 = vweird.f32 %v5276_v30 }
 0x4b5   : > { %2242 = vmatpush.bf16.msrb.mxu0 %v3736_v14 }
 0x4b7   : > { %v2064_v41 = vpop.xlane.xlu0 %2063 }
 0x4b8   : > { %v2070_v10 = vmul.f32 %v2064_v41, %v4841_v18  ;;  %v3486_v41 = vld [vmem:[%s4811_s24 + $0x70] sm:$0xf0]  ;;  %2531 = vmatpush.bf16.msrb.mxu1 %v3469_v0  ;;  %v5559_v0 = vld [vmem:[#allocation29_spill] sm:$0xff] }
 0x4b9   : > { %v3489_v17 = vor.u32 %v3754_v42, %v3486_v41  ;;  %2243 = vmatpush.bf16.msrb.mxu0 %v3735_v24 }
 0x4ba   : > { %v5278_v57 = vadd.f32 1e-05, %v2070_v10  ;;  %v5302_v38 = vpop.eup %4063  ;;  %v3492_v10 = vld [vmem:[%s4811_s24 + $0x68] sm:$0xf] }
 0x4bb   : > { %v2078_v12 = vmul.f32 %v5302_v38, %v5276_v30  ;;  %v3493_v61 = vor.u32 %v3757_v1, %v3492_v10  ;;  %2549 = vmatpush.bf16.msrb.mxu2 %v3489_v17  ;;  %vm2084_vm2 = vweird.f32 %v5302_v38  ;;  %v3561_v10 = vor.u32 %v3771_v50, %v3558_v63  ;;  %v3542_v17 = vld [vmem:[%s4811_s24 + $0xd8] sm:$0xf0]  ;;  %v3743_v50 = vld [vmem:[%s4811_s24 + $0xc] sm:$0xf] }
 0x4bc   : > { %4065 = vrsqrt.f32 %v5278_v57  ;;  %2532 = vmatpush.bf16.msrb.mxu1 %v3453_v35  ;;  %vm2093_vm3 = vweird.f32 %v5278_v57  ;;  %vm2085_vm6 = vmor %vm2083_vm5, %vm2084_vm2  ;;  %v3446_v63 = vld [vmem:[%s4811_s24 + $0x18] sm:$0xf0] }
 0x4bd   : > { %v2079_v54 = vmul.f32 %v5302_v38, %v2078_v12  ;;  %2568 = vmatpush.bf16.msrb.mxu3 %v3493_v61  ;;  %v3444_v12 = vld [vmem:[%s4811_s24 + $0x8] sm:$0xf]  ;;  %2244 = vmatpush.bf16.msrb.mxu0 %v3734_v59 }
 0x4be   : > { %v3445_v37 = vor.u32 %v3745_v5, %v3444_v12 }
 0x4bf   : > { %v2080_v25 = vmul.f32 0.5, %v2079_v54  ;;  %2550 = vmatpush.bf16.msrb.mxu2 %v3473_v13  ;;  %v3510_v13 = vld [vmem:[%s4811_s24 + $0x98] sm:$0xf0] }
 0x4c0   : > { %2533 = vmatpush.bf16.msrb.mxu1 %v3437_v6  ;;  %v3747_v6 = vld [vmem:[%s4811_s24 + $0x2c] sm:$0xf] }
 0x4c1   : > { %2569 = vmatpush.bf16.msrb.mxu3 %v3477_v9  ;;  %v2081_v45 = vsub.f32 1.5, %v2080_v25  ;;  %2583 = vmatpush.bf16.msra.mxu0 %v3561_v10 }
 0x4c2   : > { %v5305_v46 = vpop.eup %4065 }
 0x4c3   : > { %v2088_v40 = vmul.f32 %v5305_v46, %v5278_v57  ;;  %2551 = vmatpush.bf16.msrb.mxu2 %v3457_v19  ;;  %vm2094_vm1 = vweird.f32 %v5305_v46  ;;  %v2082_v41 = vmul.f32 %v5302_v38, %v2081_v45  ;;  %v3494_v19 = vld [vmem:[%s4811_s24 + $0x78] sm:$0xf0]  ;;  %v3784_v45 = vld [vmem:[%s4819_s13 + $0x50] sm:$0xff] }
 0x4c4   : > { %vm2095_vm4 = vmor %vm2093_vm3, %vm2094_vm1  ;;  %v3497_v32 = vor.u32 %v3755_v49, %v3494_v19  ;;  %v3781_v19 = vld [vmem:[%s4819_s13 + $0x38] sm:$0xff] }
 0x4c5   : > { %v2089_v3 = vmul.f32 %v5305_v46, %v2088_v40  ;;  %2570 = vmatpush.bf16.msrb.mxu3 %v3461_v29  ;;  %v2086_v57 = vsel %vm2085_vm6, %v5302_v38, %v2082_v41  ;;  %2898 = vmatpush.bf16.msra.mxu1 %v3781_v19 }
 0x4c6   : > { %v2117_v53 = vmul.f32 %v2086_v57, %v5252_v4 }
 0x4c7   : > { %v2090_v11 = vmul.f32 0.5, %v2089_v3  ;;  %2552 = vmatpush.bf16.msrb.mxu2 %v3441_v44  ;;  %v3767_v3 = vld [vmem:[%s4811_s24 + $0xcc] sm:$0xf]  ;;  %v2162_v44 = vperm.slane %v4903_v55, 7 }
 0x4c8   : > { %v3545_v61 = vor.u32 %v3767_v3, %v3542_v17 }
 0x4c9   : > { %v2091_v40 = vsub.f32 1.5, %v2090_v11  ;;  %2571 = vmatpush.bf16.msrb.mxu3 %v3445_v37  ;;  %v3759_v11 = vld [vmem:[%s4811_s24 + $0x8c] sm:$0xf] }
 0x4ca   : > { %2584 = vmatpush.bf16.msra.mxu0 %v3545_v61  ;;  %v3513_v38 = vor.u32 %v3759_v11, %v3510_v13 }
 0x4cb   : > { %v2092_v54 = vmul.f32 %v5305_v46, %v2091_v40  ;;  %v3462_v40 = vld [vmem:[%s4811_s24 + $0x38] sm:$0xf0] }
 0x4cd   : > { %v2066_v21 = vpop.xlane.xlu1 %2065  ;;  %v2096_v1 = vsel %vm2095_vm4, %v5305_v46, %v2092_v54  ;;  %v2121_v46 = vperm.slane %v5559_v0, 2 }
 0x4ce   : > { %v2071_v62 = vmul.f32 %v2066_v21, %v4841_v18  ;;  %v2118_v47 = vmul.f32 %v2096_v1, %v5258_v43  ;;  %v2126_v43 = vperm.slane %v5559_v0, 3 }
 0x4cf   : > { %v2122_v20 = vmul.f32 %v2121_v46, %v2117_v53 }
 0x4d0   : > { %v5334_v15 = vadd.f32 1e-05, %v2071_v62  ;;  %v3763_v62 = vld [vmem:[%s4811_s24 + $0xac] sm:$0xf]  ;;  %v2123_v58 = vmul.f32 %v2121_v46, %v2118_v47 }
 0x4d1   : > { %v3529_v30 = vor.u32 %v3763_v62, %v3526_v27  ;;  %v2127_v28 = vadd.f32 %v2126_v43, %v2122_v20 }
 0x4d2   : > { %4067 = vrsqrt.f32 %v5334_v15  ;;  %v5378_v4 = vadd.f32 %v2126_v43, %v2123_v58  ;;  %vm2103_vm11 = vweird.f32 %v5334_v15 }
 0x4d3   : > { %2585 = vmatpush.bf16.msra.mxu0 %v3529_v30  ;;  %v2131_v59 = vrot.slane %v2127_v28, 7 }
 0x4d4   : > { %v2132_v51 = vrot.slane %v5378_v4, 7 }
 0x4d5   : > { %v2068_v8 = vpop.xlane.xlu2 %2067 }
 0x4d6   : > { %v2072_v7 = vmul.f32 %v2068_v8, %v4841_v18  ;;  %v3481_v8 = vor.u32 %v3751_v23, %v3478_v2  ;;  %v3788_v23 = vld [vmem:[%s4819_s13 + $0x70] sm:$0xff] }
 0x4d7   : > { %2586 = vmatpush.bf16.msra.mxu0 %v3513_v38  ;;  %v3796_v2 = vld [vmem:[%s4819_s13 + $0xb0] sm:$0xff] }
 0x4d8   : > { %v5353_v60 = vpop.eup %4067  ;;  %v2076_v42 = vadd.f32 1e-05, %v2072_v7 }
 0x4d9   : > { %v2098_v18 = vmul.f32 %v5353_v60, %v5334_v15  ;;  %vm2104_vm9 = vweird.f32 %v5353_v60  ;;  %v2148_v15 = vperm.slane %v4903_v55, 6 }
 0x4da   : > { %4069 = vrsqrt.f32 %v2076_v42  ;;  %vm2113_vm8 = vweird.f32 %v2076_v42  ;;  %vm2105_vm12 = vmor %vm2103_vm11, %vm2104_vm9 }
 0x4db   : > { %v2099_v21 = vmul.f32 %v5353_v60, %v2098_v18  ;;  %2587 = vmatpush.bf16.msra.mxu0 %v3497_v32  ;;  %v3465_v18 = vor.u32 %v3747_v6, %v3462_v40  ;;  %v3797_v32 = vld [vmem:[%s4819_s13 + $0xb8] sm:$0xff]  ;;  %v3786_v40 = vld [vmem:[%s4819_s13 + $0x60] sm:$0xff] }
 0x4dc   : > { %2936 = vmatpush.bf16.msra.mxu3 %v3797_v32  ;;  %v3777_v6 = vld [vmem:[%s4819_s13 + $0x18] sm:$0xff] }
 0x4dd   : > { %v2100_v14 = vmul.f32 0.5, %v2099_v21 }
 0x4df   : > { %v2101_v9 = vsub.f32 1.5, %v2100_v14  ;;  %2588 = vmatpush.bf16.msra.mxu0 %v3481_v8  ;;  %v3795_v8 = vld [vmem:[%s4819_s13 + $0xa8] sm:$0xff] }
 0x4e0   : > { %v4070_v22 = vpop.eup %4069  ;;  %2937 = vmatpush.bf16.msra.mxu3 %v3796_v2 }
 0x4e1   : > { %v2108_v25 = vmul.f32 %v4070_v22, %v2076_v42  ;;  %vm2114_vm7 = vweird.f32 %v4070_v22  ;;  %v2102_v35 = vmul.f32 %v5353_v60, %v2101_v9  ;;  %v2143_v42 = vperm.slane %v4903_v55, 1 }
 0x4e2   : > { %vm2115_vm10 = vmor %vm2113_vm8, %vm2114_vm7 }
 0x4e3   : > { %v2109_v56 = vmul.f32 %v4070_v22, %v2108_v25  ;;  %v2106_v12 = vsel %vm2105_vm12, %v5353_v60, %v2102_v35  ;;  %v2137_v60 = vsel %vm768_vm13, %v2131_v59, %v2132_v51  ;;  %v2144_v61 = vmul.f32 %v2143_v42, %v2127_v28  ;;  %2589 = vmatpush.bf16.msra.mxu0 %v3465_v18  ;;  %v3791_v18 = vld [vmem:[%s4819_s13 + $0x88] sm:$0xff] }
 0x4e4   : > { %v2119_v37 = vmul.f32 %v2106_v12, %v5264_v34  ;;  %v2150_v10 = vmul.f32 %v2148_v15, %v2137_v60  ;;  %v2164_v17 = vmul.f32 %v2162_v44, %v2137_v60  ;;  %v2145_v27 = vmul.f32 %v2143_v42, %v5378_v4  ;;  %v3779_v12 = vld [vmem:[%s4819_s13 + $0x28] sm:$0xff]  ;;  %2938 = vmatpush.bf16.msra.mxu3 %v3795_v8  ;;  %v3792_v60 = vld [vmem:[%s4819_s13 + $0x90] sm:$0xff] }
 0x4e5   : > { %v2110_v24 = vmul.f32 0.5, %v2109_v56 }
 0x4e6   : > { %v2124_v1 = vmul.f32 %v2121_v46, %v2119_v37  ;;  %v2154_v14 = vadd.f32 %v2150_v10, %v2145_v27  ;;  %v3775_v37 = vld [vmem:[%s4819_s13 + $0x8] sm:$0xff]  ;;  %v3804_v10 = vld [vmem:[%s4819_s13 + $0xf0] sm:$0xff] }
 0x4e7   : > { %v2111_v26 = vsub.f32 1.5, %v2110_v24 }
 0x4e8   : > { %v2129_v30 = vadd.f32 %v2126_v43, %v2124_v1  ;;  %v3801_v1 = vld [vmem:[%s4819_s13 + $0xd8] sm:$0xff] }
 0x4e9   : > { %v2112_v31 = vmul.f32 %v4070_v22, %v2111_v26 }
 0x4eb   : > { %v2116_v33 = vsel %vm2115_vm10, %v4070_v22, %v2112_v31  ;;  %v3449_v22 = vor.u32 %v3743_v50, %v3446_v63  ;;  %v2146_v31 = vmul.f32 %v2143_v42, %v2129_v30  ;;  %v3805_v50 = vld [vmem:[%s4819_s13 + $0xf8] sm:$0xff]  ;;  %v3782_v63 = vld [vmem:[%s4819_s13 + $0x40] sm:$0xff] }
 0x4ec   : > { %v2120_v29 = vmul.f32 %v2116_v33, %v5270_v36  ;;  %v2157_v36 = vperm.slane %v4903_v55, 2 }
 0x4ed   : > { %2590 = vmatpush.bf16.msra.mxu0 %v3449_v22  ;;  %v3799_v22 = vld [vmem:[%s4819_s13 + $0xc8] sm:$0xff] }
 0x4ee   : > { %v2125_v5 = vmul.f32 %v2121_v46, %v2120_v29  ;;  %v2158_v3 = vmul.f32 %v2157_v36, %v2127_v28  ;;  %v2159_v21 = vmul.f32 %v2157_v36, %v5378_v4  ;;  %v2133_v46 = vrot.slane %v2129_v30, 7  ;;  %v3789_v29 = vld [vmem:[%s4819_s13 + $0x78] sm:$0xff] }
 0x4ef   : > { %2917 = vmatpush.bf16.msra.mxu2 %v3789_v29 }
 0x4f0   : > { %v2130_v7 = vadd.f32 %v2126_v43, %v2125_v5  ;;  %v2168_v47 = vadd.f32 %v2164_v17, %v2159_v21  ;;  %v2136_v11 = vsel %vm768_vm13, %v2132_v51, %v2133_v46  ;;  %v2160_v43 = vmul.f32 %v2157_v36, %v2129_v30  ;;  %v3780_v51 = vld [vmem:[%s4819_s13 + $0x30] sm:$0xff]  ;;  %v3787_v5 = vld [vmem:[%s4819_s13 + $0x68] sm:$0xff]  ;;  %v3802_v17 = vld [vmem:[%s4819_s13 + $0xe0] sm:$0xff] }
 0x4f1   : > { %v2151_v24 = vmul.f32 %v2148_v15, %v2136_v11  ;;  %v2165_v38 = vmul.f32 %v2162_v44, %v2136_v11  ;;  %2899 = vmatpush.bf16.msra.mxu1 %v3780_v51 }
 0x4f2   : > { %v2134_v54 = vrot.slane %v2130_v7, 7  ;;  %v2161_v9 = vmul.f32 %v2157_v36, %v2130_v7  ;;  %v2147_v20 = vmul.f32 %v2143_v42, %v2130_v7  ;;  %v3794_v7 = vld [vmem:[%s4819_s13 + $0xa0] sm:$0xff]  ;;  %v3785_v36 = vld [vmem:[%s4819_s13 + $0x58] sm:$0xff] }
 0x4f3   : > { %v2169_v35 = vadd.f32 %v2165_v38, %v2160_v43  ;;  %v2155_v33 = vadd.f32 %v2151_v24, %v2146_v31  ;;  %2918 = vmatpush.bf16.msra.mxu2 %v3788_v23  ;;  %2939 = vmatpush.bf16.msra.mxu3 %v3794_v7  ;;  %v3774_v42 = vld [vmem:[%s4819_s13] sm:$0xff] }
 0x4f4   : > { %v2138_v41 = vsel %vm768_vm13, %v2134_v54, %v2131_v59  ;;  %v2135_v56 = vsel %vm768_vm13, %v2133_v46, %v2134_v54  ;;  %v3778_v59 = vld [vmem:[%s4819_s13 + $0x20] sm:$0xff]  ;;  %v3783_v54 = vld [vmem:[%s4819_s13 + $0x48] sm:$0xff] }
 0x4f5   : > { %v2139_v34 = vsel %vm663_vm14, 0.0, %v2138_v41  ;;  %v2152_v13 = vmul.f32 %v2148_v15, %v2135_v56  ;;  %v2166_v58 = vmul.f32 %v2162_v44, %v2135_v56  ;;  %2900 = vmatpush.bf16.msra.mxu1 %v3779_v12  ;;  %v3790_v41 = vld [vmem:[%s4819_s13 + $0x80] sm:$0xff] }
 0x4f6   : > { %v2149_v62 = vmul.f32 %v2148_v15, %v2139_v34  ;;  %v2163_v55 = vmul.f32 %v2162_v44, %v2139_v34  ;;  %v3776_v15 = vld [vmem:[%s4819_s13 + $0x10] sm:$0xff]  ;;  %v3793_v44 = vld [vmem:[%s4819_s13 + $0x98] sm:$0xff] }
 0x4f7   : > { %v2170_v26 = vadd.f32 %v2166_v58, %v2161_v9  ;;  %v2156_v4 = vadd.f32 %v2152_v13, %v2147_v20  ;;  %2919 = vmatpush.bf16.msra.mxu2 %v3787_v5  ;;  %2940 = vmatpush.bf16.msra.mxu3 %v3793_v44 }
 0x4f8   : > { %v2167_v57 = vadd.f32 %v2163_v55, %v2158_v3  ;;  %v2153_v25 = vadd.f32 %v2149_v62, %v2144_v61  ;;  %v3803_v3 = vld [vmem:[%s4819_s13 + $0xe8] sm:$0xff]  ;;  %v3800_v61 = vld [vmem:[%s4819_s13 + $0xd0] sm:$0xff] }
 0x4f9   : > { %v2188_v28 = vpack.c.bf16 %v2170_v26, %v2169_v35  ;;  %v2365_v49 = vpack.c.bf16 %v2156_v4, %v2155_v33  ;;  %2901 = vmatpush.bf16.msra.mxu1 %v3778_v59 }
 0x4fa   : > { %v2187_v0 = vpack.c.bf16 %v2168_v47, %v2167_v57  ;;  %v2364_v53 = vpack.c.bf16 %v2154_v14, %v2153_v25 }
 0x4fb   : > { %2920 = vmatpush.bf16.msra.mxu2 %v3786_v40  ;;  %2941 = vmatpush.bf16.msra.mxu3 %v3792_v60 }
 0x4fc   : > { %2245 = vmatmul.bf16.vlgmr.msrb.gmra.mxu0 %v2187_v0  ;;  %2534 = vmatmul.bf16.vlgmr.msrb.gmra.mxu1 %v2364_v53  ;;  %v3798_v0 = vld [vmem:[%s4819_s13 + $0xc0] sm:$0xff] }
 0x4fd   : > { %2553 = vmatmul.bf16.vlgmr.msrb.gmra.mxu2 %v2364_v53  ;;  %2572 = vmatmul.bf16.vlgmr.msrb.gmra.mxu3 %v2364_v53 }
 0x4fe   : > { %2902 = vmatpush.bf16.msra.mxu1 %v3777_v6  ;;  %2955 = vmatpush.bf16.msrb.mxu0 %v3805_v50 }
 0x4ff   : > { %2921 = vmatpush.bf16.msra.mxu2 %v3785_v36  ;;  %2942 = vmatpush.bf16.msra.mxu3 %v3791_v18 }
 0x502   : > { %2903 = vmatpush.bf16.msra.mxu1 %v3776_v15  ;;  %2956 = vmatpush.bf16.msrb.mxu0 %v3804_v10 }
 0x503   : > { %2922 = vmatpush.bf16.msra.mxu2 %v3784_v45  ;;  %2943 = vmatpush.bf16.msra.mxu3 %v3790_v41 }
 0x506   : > { %2904 = vmatpush.bf16.msra.mxu1 %v3775_v37  ;;  %2957 = vmatpush.bf16.msrb.mxu0 %v3803_v3 }
 0x507   : > { %2923 = vmatpush.bf16.msra.mxu2 %v3783_v54 }
 0x50a   : > { %2905 = vmatpush.bf16.msra.mxu1 %v3774_v42  ;;  %2958 = vmatpush.bf16.msrb.mxu0 %v3802_v17 }
 0x50b   : > { %2924 = vmatpush.bf16.msra.mxu2 %v3782_v63 }
 0x50c   : > { %2250 = vmatmul.bf16.gmra.mxu0 %v2188_v28  ;;  %2539 = vmatmul.bf16.gmra.mxu1 %v2365_v49 }
 0x50d   : > { %2558 = vmatmul.bf16.gmra.mxu2 %v2365_v49  ;;  %2577 = vmatmul.bf16.gmra.mxu3 %v2365_v49 }
 0x50e   : > { %3806 = vmatpush.bf16.msrb.mxu1 %v3805_v50  ;;  %2959 = vmatpush.bf16.msrb.mxu0 %v3801_v1 }
 0x512   : > { %3807 = vmatpush.bf16.msrb.mxu1 %v3804_v10  ;;  %2960 = vmatpush.bf16.msrb.mxu0 %v3800_v61 }
 0x516   : > { %3808 = vmatpush.bf16.msrb.mxu1 %v3803_v3  ;;  %2961 = vmatpush.bf16.msrb.mxu0 %v3799_v22 }
 0x51a   : > { %3809 = vmatpush.bf16.msrb.mxu1 %v3802_v17  ;;  %2962 = vmatpush.bf16.msrb.mxu0 %v3798_v0 }
 0x51c   : > { %2591 = vmatmul.bf16.vlgmr.msra.gmra.mxu0 %v2364_v53 }
 0x51e   : > { %3810 = vmatpush.bf16.msrb.mxu1 %v3801_v1 }
 0x522   : > { %3811 = vmatpush.bf16.msrb.mxu1 %v3800_v61 }
 0x526   : > { %3812 = vmatpush.bf16.msrb.mxu1 %v3799_v22 }
 0x52a   : > { %3813 = vmatpush.bf16.msrb.mxu1 %v3798_v0 }
 0x52c   : > { %2596 = vmatmul.bf16.gmra.mxu0 %v2365_v49 }
 0x579   : > { %v5440_v34 = vpop.f32.mrf.mxu0  ;;  %v2535_v21 = vpop.f32.mrf.mxu1 }
 0x57a   : > { %v2602_v62 = vmax.f32 %v2535_v21, 0.0 }
 0x57c   : > { %v2618_v14 = vmul.f32 %v2602_v62, %v2602_v62 }
 0x580   : > { %v2554_v55 = vpop.f32.mrf.mxu2  ;;  %v2573_v27 = vpop.f32.mrf.mxu3 }
 0x581   : > { %v5444_v57 = vpop.f32.mrf.mxu0  ;;  %v2537_v47 = vpop.f32.mrf.mxu1  ;;  %v2603_v46 = vmax.f32 %v2554_v55, 0.0  ;;  %v2604_v56 = vmax.f32 %v2573_v27, 0.0  ;;  %v3430_v55 = vmul.f32 -1.442695, %v5440_v34 }
 0x582   : > { %v2606_v25 = vmax.f32 %v2537_v47, 0.0  ;;  %v3431_v27 = vmul.f32 -1.442695, %v5444_v57 }
 0x583   : > { %v2619_v20 = vmul.f32 %v2603_v46, %v2603_v46  ;;  %v2620_v43 = vmul.f32 %v2604_v56, %v2604_v56  ;;  %4071 = vpow2.f32 %v3430_v55 }
 0x584   : > { %v2622_v30 = vmul.f32 %v2606_v25, %v2606_v25  ;;  %4073 = vpow2.f32 %v3431_v27 }
 0x586   : > { %v2698_v53 = vpack.c.bf16 %v2622_v30, %v2618_v14 }
 0x588   : > { %v2556_v11 = vpop.f32.mrf.mxu2  ;;  %v2575_v13 = vpop.f32.mrf.mxu3  ;;  %2906 = vmatmul.bf16.vlgmr.msra.gmra.mxu1 %v2698_v53 }
 0x589   : > { %v2607_v58 = vmax.f32 %v2556_v11, 0.0  ;;  %v2608_v24 = vmax.f32 %v2575_v13, 0.0  ;;  %v2251_v9 = vpop.f32.mrf.mxu0  ;;  %v2540_v38 = vpop.f32.mrf.mxu1 }
 0x58a   : > { %v2610_v33 = vmax.f32 %v2540_v38, 0.0  ;;  %v4072_v22 = vpop.eup %4071  ;;  %v3432_v25 = vmul.f32 -1.442695, %v2251_v9 }
 0x58b   : > { %v2623_v26 = vmul.f32 %v2607_v58, %v2607_v58  ;;  %v2624_v31 = vmul.f32 %v2608_v24, %v2608_v24  ;;  %v2268_v47 = vadd.f32 1.0, %v4072_v22  ;;  %v4074_v14 = vpop.eup %4073 }
 0x58c   : > { %v2626_v51 = vmul.f32 %v2610_v33, %v2610_v33  ;;  %v2269_v30 = vadd.f32 1.0, %v4074_v14 }
 0x58d   : > { %v2699_v4 = vpack.c.bf16 %v2623_v26, %v2619_v20  ;;  %v2700_v35 = vpack.c.bf16 %v2624_v31, %v2620_v43  ;;  %4075 = vrcp.f32 %v2268_v47  ;;  %vm2277_vm14 = vweird.f32 %v2268_v47 }
 0x58e   : > { %4077 = vpow2.f32 %v3432_v25  ;;  %vm2292_vm2 = vweird.f32 %v2269_v30 }
 0x58f   : > { %2925 = vmatmul.bf16.vlgmr.msra.gmra.mxu2 %v2699_v4  ;;  %2944 = vmatmul.bf16.vlgmr.msra.gmra.mxu3 %v2700_v35  ;;  %4079 = vrcp.f32 %v2269_v30 }
 0x590   : > { %v2559_v28 = vpop.f32.mrf.mxu2  ;;  %v2578_v49 = vpop.f32.mrf.mxu3 }
 0x591   : > { %v2253_v19 = vpop.f32.mrf.mxu0  ;;  %v2542_v29 = vpop.f32.mrf.mxu1  ;;  %v2611_v12 = vmax.f32 %v2559_v28, 0.0  ;;  %v2612_v5 = vmax.f32 %v2578_v49, 0.0  ;;  %v2283_v49 = vand.u32 2147483648, %v2268_v47 }
 0x592   : > { %v2614_v32 = vmax.f32 %v2542_v29, 0.0  ;;  %v3433_v46 = vmul.f32 -1.442695, %v2253_v19  ;;  %v2281_v19 = vand.u32 2147483647, %v2268_v47 }
 0x593   : > { %v2627_v15 = vmul.f32 %v2611_v12, %v2611_v12  ;;  %v2628_v36 = vmul.f32 %v2612_v5, %v2612_v5  ;;  %v4076_v53 = vpop.eup %4075  ;;  %v2284_v12 = vor.u32 1.1754944e-38, %v2283_v49 }
 0x594   : > { %v2630_v23 = vmul.f32 %v2614_v32, %v2614_v32  ;;  %v4078_v56 = vpop.eup %4077  ;;  %v2273_v11 = vmul.f32 %v4076_v53, %v2268_v47  ;;  %4081 = vpow2.f32 %v3433_v46  ;;  %vm2278_vm13 = vweird.f32 %v4076_v53 }
 0x595   : > { %v5449_v13 = vadd.f32 1.0, %v4078_v56  ;;  %v4080_v57 = vpop.eup %4079  ;;  %vm2279_vm15 = vmor %vm2277_vm14, %vm2278_vm13  ;;  %vm2282_vm0 = vcmp.eq.f32.partialorder %v2281_v19, 8.507059e+37 }
 0x596   : > { %v2702_v2 = vpack.c.bf16 %v2630_v23, %v2626_v51  ;;  %v2274_v58 = vsub.f32 1.0, %v2273_v11  ;;  %v2288_v20 = vmul.f32 %v4080_v57, %v2269_v30  ;;  %vm2293_vm1 = vweird.f32 %v4080_v57 }
 0x597   : > { %4083 = vrcp.f32 %v5449_v13  ;;  %vm2294_vm3 = vmor %vm2292_vm2, %vm2293_vm1  ;;  %v2313_v27 = vand.u32 2147483648, %v5449_v13  ;;  %vm2307_vm6 = vweird.f32 %v5449_v13  ;;  %v2311_v47 = vand.u32 2147483647, %v5449_v13 }
 0x598   : > { %v2561_v8 = vpop.f32.mrf.mxu2  ;;  %v2580_v59 = vpop.f32.mrf.mxu3  ;;  %2911 = vmatmul.bf16.gmra.mxu1 %v2702_v2  ;;  %v2275_v38 = vmul.f32 %v4076_v53, %v2274_v58  ;;  %v2289_v35 = vsub.f32 1.0, %v2288_v20 }
 0x599   : > { %v2615_v6 = vmax.f32 %v2561_v8, 0.0  ;;  %v2616_v40 = vmax.f32 %v2580_v59, 0.0  ;;  %v2592_v7 = vpop.f32.mrf.mxu0  ;;  %vm2312_vm8 = vcmp.eq.f32.partialorder %v2311_v47, 8.507059e+37 }
 0x59a   : > { %v2605_v42 = vmax.f32 %v2592_v7, 0.0  ;;  %v4082_v9 = vpop.eup %4081  ;;  %v2276_v4 = vadd.f32 %v4076_v53, %v2275_v38  ;;  %v2290_v23 = vmul.f32 %v4080_v57, %v2289_v35 }
 0x59b   : > { %v2631_v44 = vmul.f32 %v2615_v6, %v2615_v6  ;;  %v2632_v37 = vmul.f32 %v2616_v40, %v2616_v40  ;;  %v5452_v26 = vadd.f32 1.0, %v4082_v9 }
 0x59c   : > { %v2621_v50 = vmul.f32 %v2605_v42, %v2605_v42  ;;  %v2280_v51 = vsel %vm2279_vm15, %v4076_v53, %v2276_v4  ;;  %v2314_v53 = vor.u32 1.1754944e-38, %v2313_v27 }
 0x59d   : > { %v2703_v45 = vpack.c.bf16 %v2631_v44, %v2627_v15  ;;  %v2704_v60 = vpack.c.bf16 %v2632_v37, %v2628_v36  ;;  %v5454_v33 = vpop.eup %4083  ;;  %4085 = vrcp.f32 %v5452_v26  ;;  %v2285_v6 = vsel %vm2282_vm0, %v2284_v12, %v2280_v51 }
 0x59e   : > { %v2303_v2 = vmul.f32 %v5454_v33, %v5449_v13  ;;  %v2291_v15 = vadd.f32 %v4080_v57, %v2290_v23  ;;  %v2298_v37 = vand.u32 2147483648, %v2269_v30  ;;  %vm2308_vm5 = vweird.f32 %v5454_v33 }
 0x59f   : > { %2930 = vmatmul.bf16.gmra.mxu2 %v2703_v45  ;;  %2949 = vmatmul.bf16.gmra.mxu3 %v2704_v60  ;;  %v2296_v60 = vand.u32 2147483647, %v2269_v30  ;;  %vm2309_vm7 = vmor %vm2307_vm6, %vm2308_vm5  ;;  %vm2322_vm10 = vweird.f32 %v5452_v26 }
 0x5a0   : > { %v2304_v36 = vsub.f32 1.0, %v2303_v2 }
 0x5a1   : > { %v2594_v54 = vpop.f32.mrf.mxu0  ;;  %vm2297_vm4 = vcmp.eq.f32.partialorder %v2296_v60, 8.507059e+37 }
 0x5a2   : > { %v2609_v18 = vmax.f32 %v2594_v54, 0.0 }
 0x5a3   : > { %v4086_v44 = vpop.eup %4085 }
 0x5a4   : > { %v2625_v63 = vmul.f32 %v2609_v18, %v2609_v18  ;;  %v2295_v18 = vsel %vm2294_vm3, %v4080_v57, %v2291_v15  ;;  %vm2323_vm9 = vweird.f32 %v4086_v44 }
 0x5a5   : > { %vm2324_vm11 = vmor %vm2322_vm10, %vm2323_vm9 }
 0x5a6   : > { %v2701_v41 = vpack.c.bf16 %v2625_v63, %v2621_v50  ;;  %v2305_v50 = vmul.f32 %v5454_v33, %v2304_v36  ;;  %v2318_v63 = vmul.f32 %v4086_v44, %v5452_v26 }
 0x5a8   : > { %2963 = vmatmul.bf16.vlgmr.msrb.gmra.mxu0 %v2701_v41 }
 0x5a9   : > { %v2597_v10 = vpop.f32.mrf.mxu0 }
 0x5aa   : > { %v2613_v3 = vmax.f32 %v2597_v10, 0.0  ;;  %v2299_v10 = vor.u32 1.1754944e-38, %v2298_v37 }
 0x5ac   : > { %v2629_v21 = vmul.f32 %v2613_v3, %v2613_v3 }
 0x5b1   : > { %v2599_v17 = vpop.f32.mrf.mxu0 }
 0x5b2   : > { %v2617_v1 = vmax.f32 %v2599_v17, 0.0 }
 0x5b4   : > { %v2633_v61 = vmul.f32 %v2617_v1, %v2617_v1  ;;  %v2300_v1 = vsel %vm2297_vm4, %v2299_v10, %v2295_v18 }
 0x5b6   : > { %v2705_v62 = vpack.c.bf16 %v2633_v61, %v2629_v21  ;;  %v2306_v61 = vadd.f32 %v5454_v33, %v2305_v50 }
 0x5b8   : > { %2968 = vmatmul.bf16.vlgmr.msrb.gmra.mxu1 %v2705_v62  ;;  %v2319_v62 = vsub.f32 1.0, %v2318_v63  ;;  %v2310_v14 = vsel %vm2309_vm7, %v5454_v33, %v2306_v61 }
 0x5b9   : > { %v2315_v11 = vsel %vm2312_vm8, %v2314_v53, %v2310_v14 }
 0x5ba   : > { %v2320_v30 = vmul.f32 %v4086_v44, %v2319_v62 }
 0x5bc   : > { %v2321_v57 = vadd.f32 %v4086_v44, %v2320_v30 }
 0x5be   : > { %v2325_v20 = vsel %vm2324_vm11, %v4086_v44, %v2321_v57 }
 0x605   : > { %v2907_v0 = vpop.f32.mrf.mxu1 }
 0x60d   : > { %v2909_v24 = vpop.f32.mrf.mxu1 }
 0x612   : > { %v2926_v34 = vpop.f32.mrf.mxu2  ;;  %v2945_v43 = vpop.f32.mrf.mxu3 }
 0x613   : > { %v2927_v31 = vadd.f32 %v2926_v34, %v2907_v0 }
 0x615   : > { %v2912_v29 = vpop.f32.mrf.mxu1  ;;  %v2946_v32 = vadd.f32 %v2945_v43, %v2927_v31 }
 0x61a   : > { %v2928_v28 = vpop.f32.mrf.mxu2  ;;  %v2947_v59 = vpop.f32.mrf.mxu3 }
 0x61b   : > { %v2929_v40 = vadd.f32 %v2928_v28, %v2909_v24  ;;  %v2326_v24 = vand.u32 2147483647, %v5452_v26 }
 0x61d   : > { %v2948_v54 = vadd.f32 %v2947_v59, %v2929_v40  ;;  %v2914_v41 = vpop.f32.mrf.mxu1  ;;  %vm2327_vm12 = vcmp.eq.f32.partialorder %v2326_v24, 8.507059e+37 }
 0x622   : > { %v2931_v42 = vpop.f32.mrf.mxu2  ;;  %v2950_v55 = vpop.f32.mrf.mxu3 }
 0x625   : > { %v2964_v5 = vpop.f32.mrf.mxu0 }
 0x626   : > { %v2965_v8 = vadd.f32 %v2964_v5, %v2946_v32 }
 0x628   : > { %v2974_v7 = vmul.f32 %v2965_v8, %v2285_v6 }
 0x62a   : > { %v2978_v45 = vadd.f32 %v2974_v7, %v5235_v48  ;;  %v2932_v48 = vadd.f32 %v2931_v42, %v2912_v29  ;;  %v2933_v0 = vpop.f32.mrf.mxu2  ;;  %v2952_v9 = vpop.f32.mrf.mxu3 }
 0x62b   : > { %v2934_v34 = vadd.f32 %v2933_v0, %v2914_v41 }
 0x62c   : > { %2982 = vst [vmem:[#allocation19] sm:$0xff] %v2978_v45  ;;  %v2951_v25 = vadd.f32 %v2950_v55, %v2932_v48 }
 0x62d   : > { %v2966_v3 = vpop.f32.mrf.mxu0  ;;  %v2953_v38 = vadd.f32 %v2952_v9, %v2934_v34 }
 0x62e   : > { %v2967_v17 = vadd.f32 %v2966_v3, %v2948_v54 }
 0x630   : > { %v2975_v21 = vmul.f32 %v2967_v17, %v2300_v1 }
 0x632   : > { %v2979_v22 = vadd.f32 %v2975_v21, %v5239_v39  ;;  %v2328_v39 = vand.u32 2147483648, %v5452_v26 }
 0x634   : > { %2983 = vst [vmem:[#allocation19 + $0x8] sm:$0xff] %v2979_v22  ;;  %v2329_v43 = vor.u32 1.1754944e-38, %v2328_v39 }
 0x635   : > { %v2969_v46 = vpop.f32.mrf.mxu1 }
 0x636   : > { %v2970_v56 = vadd.f32 %v2969_v46, %v2951_v25 }
 0x638   : > { %v2976_v58 = vmul.f32 %v2970_v56, %v2315_v11 }
 0x63a   : > { %v2980_v13 = vadd.f32 %v2976_v58, %v5243_v52  ;;  %v2330_v52 = vsel %vm2327_vm12, %v2329_v43, %v2325_v20 }
 0x63c   : > { %2984 = vst [vmem:[#allocation19 + $0x10] sm:$0xff] %v2980_v13 }
 0x63d   : > { %v2971_v31 = vpop.f32.mrf.mxu1 }
 0x63e   : > { %v2972_v4 = vadd.f32 %v2971_v31, %v2953_v38 }
 0x640   : > { %v2977_v35 = vmul.f32 %v2972_v4, %v2330_v52 }
 0x642   : > { %v2981_v26 = vadd.f32 %v2977_v35, %v5247_v16 }
 0x644   : > { %2985 = vst [vmem:[#allocation19 + $0x18] sm:$0xff] %v2981_v26 }
 0x645   : > { %3835 = dma.vmem_to_hbm [thread:$0]  (%p3870_p7), %s2992_s6, 512, %s2994_s4, [#allocation6], %s4482_s27, %s4482_s27, %s4483_s19  }
 0x646   : > { %4438 = dma.done.wait (%p3870_p7), [#allocation6], 512  }
 0x647   : > { %4440 = vsyncadd (%p3870_p7), [#allocation6], 4294966784 }
 0x648 PF: > { %s5562_s12 = sld [smem:[#allocation27_spill]]  ;;  %s5565_s30 = smov %s4447_s10 }
 0x649   : > { %s5563_s25 = sld [smem:[#allocation26_spill]] }
 0x64a   : > { %s5564_s11 = sld [smem:[#allocation28_spill]] }
 0x64e   : > { %p30_p12 = scmp.ge.s32.totalorder %s5562_s12, 4  }
 0x64f   : > { %s5566_s10 = smov %s5563_s25 }
 0x650   :  { %32 = sbr.rel (!%p30_p12) target bundleno = 20 (0x14), region = 220 }
 0x655   :  { %3010 = vsyncpa [#allocation5], 1 }
 0x656   :  { %3012 = vsyncpa [#allocation5 + $0x1], 1 }
 0x657   :  { %3013 = vsyncpa [#allocation8], 1 }
 0x658   :  { %3015 = vsyncpa [#allocation8 + $0x1], 1 }
 0x659   :  { %3016 = vsyncpa [#allocation11], 1 }
 0x65a   :  { %3018 = vsyncpa [#allocation11 + $0x1], 1 }
 0x65b   :  { %3019 = vsyncpa [#allocation14], 1 }
 0x65c   :  { %3021 = vsyncpa [#allocation14 + $0x1], 1 }
 0x65d   :  { %3022 = vsyncpa [#allocation17], 1 }
 0x65e   :  { %3024 = vsyncpa [#allocation17 + $0x1], 1 }
 0x65f   :  { %3025 = vsyncpa [#allocation6], 1 }
 0x660   :  { %3027 = vsyncpa [#allocation6 + $0x1], 1 }

</bundles_post_ra>
